<compile_context>
chip_gen: v5e
topology: v5e:2x2
jax: 0.10.0
libtpu: 0.0.40
codegen_flags: <defaults>
</compile_context>

<pallas_src>
import jax
import jax.numpy as jnp
from jax import lax
from jax.experimental import pallas as pl
from jax.experimental.pallas import tpu as pltpu
import numpy as np

VOCAB, EMBED, HIDDEN = 100, 32, 64
SEQ, BATCH = 15, 8


def _bilstm_kernel(eproj_ref, whh_ref, out_ref):
    """Fused bidirectional LSTM recurrence.

    eproj_ref: (T*B, 8H)  precomputed input projection (+bias), rows t*B..t*B+B
                          hold [fwd step t | bwd step t] gate-interleaved.
    whh_ref  : (2H, 8H)   block-diag recurrent weights, gate-interleaved cols.
    out_ref  : (B, 2H)    [last_forward | first_backward].
    """
    B, G = out_ref.shape            # (8, 128); G = 2H = one fused gate slab
    T = eproj_ref.shape[0] // B     # 15

    def _sig(x):
        # sigmoid(x) == 0.5 * tanh(0.5 * x) + 0.5  -> single EUP push.
        return 0.5 * jnp.tanh(0.5 * x) + 0.5

    def step(t, carry):
        h, c = carry
        base = pl.multiple_of(t * B, B)
        gates = (eproj_ref[pl.ds(base, B), :]
                 + jnp.dot(h, whh_ref[...],
                           preferred_element_type=jnp.float32))   # (B, 8H)
        # 128-lane-aligned gate slabs, each already laid out as [fwd | bwd].
        i = _sig(gates[:, 0 * G:1 * G])
        f = _sig(gates[:, 1 * G:2 * G])
        g = jnp.tanh(gates[:, 2 * G:3 * G])
        o = _sig(gates[:, 3 * G:4 * G])
        c = f * c + i * g
        h = o * jnp.tanh(c)
        return h, c

    h0 = jnp.zeros((B, G), jnp.float32)
    c0 = jnp.zeros((B, G), jnp.float32)
    h, _ = lax.fori_loop(0, T, step, (h0, c0), unroll=True)

    # Lane-dense single store: [:, :H] = last_forward, [:, H:] = first_backward.
    out_ref[...] = h


def bilstm_pallas(eproj, whh):
    TB, G8 = eproj.shape
    H = HIDDEN
    return pl.pallas_call(
        _bilstm_kernel,
        out_shape=jax.ShapeDtypeStruct((BATCH, 2 * H), jnp.float32),
        grid=(1,),
        in_specs=[
            pl.BlockSpec((TB, G8), lambda i: (0, 0)),
            pl.BlockSpec((2 * H, G8), lambda i: (0, 0)),
        ],
        out_specs=pl.BlockSpec((BATCH, 2 * H), lambda i: (0, 0)),
        compiler_params=pltpu.CompilerParams(
            dimension_semantics=("arbitrary",)),
    )(eproj, whh)


def _pack_gates(Wf, Wb):
    """Block-diagonal weights with gate-interleaved columns.

    Wf, Wb: (in_dim, 4H) with torch gate order [i,f,g,o].
    Returns (in_f + in_b, 8H) with columns [i_f,i_b,f_f,f_b,g_f,g_b,o_f,o_b];
    rows of Wf feed only the *_f columns, rows of Wb only the *_b columns.
    """
    H = HIDDEN
    df, db = Wf.shape[0], Wb.shape[0]
    blocks = []
    for g in range(4):
        top = jnp.concatenate(
            [Wf[:, g * H:(g + 1) * H], jnp.zeros((df, H), Wf.dtype)], axis=1)
        bot = jnp.concatenate(
            [jnp.zeros((db, H), Wb.dtype), Wb[:, g * H:(g + 1) * H]], axis=1)
        blocks.append(jnp.concatenate([top, bot], axis=0))
    return jnp.concatenate(blocks, axis=1)


def _pack_bias(bf, bb):
    H = HIDDEN
    parts = []
    for g in range(4):
        parts.append(bf[g * H:(g + 1) * H])
        parts.append(bb[g * H:(g + 1) * H])
    return jnp.concatenate(parts)[None, :]


@jax.jit
def bilstm_forward(X, xs_len, params):
    # xs_len is accepted but unused, matching the reference module's forward
    # (no pack_padded semantics in the original).
    # Embedding lookup / transpose / flip / input projection are glue that XLA
    # fuses; the serial recurrence is the only part that needs Pallas.
    E = jnp.take(params["embed"], X, axis=0)             # (B, T, D)
    E = jnp.transpose(E, (1, 0, 2)).astype(jnp.float32)  # (T, B, D)
    # Pack [forward input | time-reversed backward input] on lanes.
    E_cat = jnp.concatenate([E, E[::-1]], axis=-1)       # (T, B, 2D)
    x = E_cat.reshape(SEQ * BATCH, 2 * EMBED)            # (120, 64)

    wih = _pack_gates(params["wih_f"], params["wih_b"])  # (64, 512)
    whh = _pack_gates(params["whh_f"], params["whh_b"])  # (128, 512)
    b = _pack_bias(params["b_f"], params["b_b"])         # (1, 512)

    # Non-recurrent input projection hoisted to XLA (one matmul + bias).
    eproj = jnp.dot(x, wih, preferred_element_type=jnp.float32) + b  # (120, 512)
    return bilstm_pallas(eproj, whh)


def bilstm_reference(X, xs_len, params):
    """Pure-JAX reference (same math as torch.nn.LSTM, gate order i,f,g,o)."""
    H = HIDDEN
    E = jnp.transpose(jnp.take(params["embed"], X, axis=0), (1, 0, 2))
    E = E.astype(jnp.float32)
    B = E.shape[1]

    def make_cell(wih, whh, b):
        def cell(carry, x):
            h, c = carry
            gates = x @ wih + h @ whh + b
            i = jax.nn.sigmoid(gates[:, 0 * H:1 * H])
            f = jax.nn.sigmoid(gates[:, 1 * H:2 * H])
            g = jnp.tanh(gates[:, 2 * H:3 * H])
            o = jax.nn.sigmoid(gates[:, 3 * H:4 * H])
            c = f * c + i * g
            h = o * jnp.tanh(c)
            return (h, c), h
        return cell

    init = (jnp.zeros((B, H), jnp.float32), jnp.zeros((B, H), jnp.float32))
    (hf, _), _ = lax.scan(
        make_cell(params["wih_f"], params["whh_f"], params["b_f"]), init, E)
    (hb, _), _ = lax.scan(
        make_cell(params["wih_b"], params["whh_b"], params["b_b"]), init, E[::-1])
    return jnp.concatenate([hf, hb], axis=-1)


def init_params(key):
    ks = jax.random.split(key, 9)
    bound = 1.0 / float(np.sqrt(HIDDEN))

    def u(k, shape):
        return jax.random.uniform(k, shape, jnp.float32, -bound, bound)

    # nn.Embedding(100, 32): standard normal init.
    embed = jax.random.normal(ks[0], (VOCAB, EMBED), jnp.float32)
    # nn.LSTM weights stored torch-style (4H, in)/(4H, H) then transposed.
    wih_f = u(ks[1], (4 * HIDDEN, EMBED)).T
    whh_f = u(ks[2], (4 * HIDDEN, HIDDEN)).T
    b_f = u(ks[3], (4 * HIDDEN,)) + u(ks[4], (4 * HIDDEN,))
    wih_b = u(ks[5], (4 * HIDDEN, EMBED)).T
    whh_b = u(ks[6], (4 * HIDDEN, HIDDEN)).T
    b_b = u(ks[7], (4 * HIDDEN,)) + u(ks[8], (4 * HIDDEN,))
    return dict(embed=embed,
                wih_f=wih_f, whh_f=whh_f, b_f=b_f,
                wih_b=wih_b, whh_b=whh_b, b_b=b_b)


if __name__ == "__main__":
    key = jax.random.PRNGKey(0)
    k_x, k_len, k_p = jax.random.split(key, 3)

    # X = torch.randint(high=100, size=(8, 15)); xs_len = randint(1, 15, (8,))
    X = jax.random.randint(k_x, (BATCH, SEQ), 0, VOCAB, dtype=jnp.int32)
    xs_len = jax.random.randint(k_len, (BATCH,), 1, SEQ, dtype=jnp.int32)
    params = init_params(k_p)

    repr_out = jax.block_until_ready(bilstm_forward(X, xs_len, params))
    assert repr_out.shape == (BATCH, 2 * HIDDEN), repr_out.shape

    ref = jax.block_until_ready(bilstm_reference(X, xs_len, params))
    np.testing.assert_allclose(np.asarray(repr_out), np.asarray(ref),
                               rtol=1e-4, atol=1e-4)
    print("KERNEL_OK")
</pallas_src>

<mosaic_0001>
module attributes {stable_mosaic.version = 11 : i64} {
  func.func @_bilstm_kernel(%arg0: i32, %arg1: memref<120x512xf32, #tpu.memory_space<vmem>>, %arg2: memref<128x512xf32, #tpu.memory_space<vmem>>, %arg3: memref<8x128xf32, #tpu.memory_space<vmem>>) attributes {dimension_semantics = [#tpu.dimension_semantics<arbitrary>], iteration_bounds = array<i64: 1>, scalar_prefetch = 0 : i64, scratch_operands = 0 : i64, tpu.core_type = #tpu.core_type<tc>, window_params = [{pipeline_mode = #tpu.pipeline_mode<synchronous>, transform_indices = @transform_0, window_bounds = array<i64: 120, 512>}, {pipeline_mode = #tpu.pipeline_mode<synchronous>, transform_indices = @transform_1, window_bounds = array<i64: 128, 512>}, {pipeline_mode = #tpu.pipeline_mode<synchronous>, transform_indices = @transform_2, window_bounds = array<i64: 8, 128>}]} {
    %cst = arith.constant 0.000000e+00 : f32
    %0 = vector.broadcast %cst : f32 to vector<8x128xf32>
    %cst_0 = arith.constant 0.000000e+00 : f32
    %1 = vector.broadcast %cst_0 : f32 to vector<8x128xf32>
    %c0_i32 = arith.constant 0 : i32
    %c8_i32 = arith.constant 8 : i32
    %2 = arith.muli %c0_i32, %c8_i32 : i32
    %3 = tpu.assume_multiple %2, 8 : i32
    %4 = arith.index_cast %3 : i32 to index
    %c0 = arith.constant 0 : index
    %5 = vector.load %arg1[%4, %c0] : memref<120x512xf32, #tpu.memory_space<vmem>>, vector<8x512xf32>
    %c0_1 = arith.constant 0 : index
    %c0_2 = arith.constant 0 : index
    %6 = vector.load %arg2[%c0_1, %c0_2] : memref<128x512xf32, #tpu.memory_space<vmem>>, vector<128x512xf32>
    %cst_3 = arith.constant dense<0.000000e+00> : vector<8x512xf32>
    %7 = tpu.matmul %0, %6, %cst_3 {dimension_numbers = #tpu.dot_dimension_numbers<[1], [0], [0], [1], [0, 0, 1, 1], [], []>} : vector<8x128xf32>, vector<128x512xf32>, vector<8x512xf32> -> vector<8x512xf32>
    %8 = arith.addf %5, %7 : vector<8x512xf32>
    %9 = vector.extract_strided_slice %8 {offsets = [0, 0], sizes = [8, 128], strides = [1, 1]} : vector<8x512xf32> to vector<8x128xf32>
    %cst_4 = arith.constant 5.000000e-01 : f32
    %10 = vector.broadcast %cst_4 : f32 to vector<8x128xf32>
    %11 = arith.mulf %10, %9 : vector<8x128xf32>
    %12 = math.tanh %11 : vector<8x128xf32>
    %cst_5 = arith.constant 5.000000e-01 : f32
    %13 = vector.broadcast %cst_5 : f32 to vector<8x128xf32>
    %14 = arith.mulf %13, %12 : vector<8x128xf32>
    %cst_6 = arith.constant 5.000000e-01 : f32
    %15 = vector.broadcast %cst_6 : f32 to vector<8x128xf32>
    %16 = arith.addf %14, %15 : vector<8x128xf32>
    %17 = vector.extract_strided_slice %8 {offsets = [0, 128], sizes = [8, 128], strides = [1, 1]} : vector<8x512xf32> to vector<8x128xf32>
    %cst_7 = arith.constant 5.000000e-01 : f32
    %18 = vector.broadcast %cst_7 : f32 to vector<8x128xf32>
    %19 = arith.mulf %18, %17 : vector<8x128xf32>
    %20 = math.tanh %19 : vector<8x128xf32>
    %cst_8 = arith.constant 5.000000e-01 : f32
    %21 = vector.broadcast %cst_8 : f32 to vector<8x128xf32>
    %22 = arith.mulf %21, %20 : vector<8x128xf32>
    %cst_9 = arith.constant 5.000000e-01 : f32
    %23 = vector.broadcast %cst_9 : f32 to vector<8x128xf32>
    %24 = arith.addf %22, %23 : vector<8x128xf32>
    %25 = vector.extract_strided_slice %8 {offsets = [0, 256], sizes = [8, 128], strides = [1, 1]} : vector<8x512xf32> to vector<8x128xf32>
    %26 = math.tanh %25 : vector<8x128xf32>
    %27 = vector.extract_strided_slice %8 {offsets = [0, 384], sizes = [8, 128], strides = [1, 1]} : vector<8x512xf32> to vector<8x128xf32>
    %cst_10 = arith.constant 5.000000e-01 : f32
    %28 = vector.broadcast %cst_10 : f32 to vector<8x128xf32>
    %29 = arith.mulf %28, %27 : vector<8x128xf32>
    %30 = math.tanh %29 : vector<8x128xf32>
    %cst_11 = arith.constant 5.000000e-01 : f32
    %31 = vector.broadcast %cst_11 : f32 to vector<8x128xf32>
    %32 = arith.mulf %31, %30 : vector<8x128xf32>
    %cst_12 = arith.constant 5.000000e-01 : f32
    %33 = vector.broadcast %cst_12 : f32 to vector<8x128xf32>
    %34 = arith.addf %32, %33 : vector<8x128xf32>
    %35 = arith.mulf %24, %1 : vector<8x128xf32>
    %36 = arith.mulf %16, %26 : vector<8x128xf32>
    %37 = arith.addf %35, %36 : vector<8x128xf32>
    %38 = math.tanh %37 : vector<8x128xf32>
    %39 = arith.mulf %34, %38 : vector<8x128xf32>
    %c1_i32 = arith.constant 1 : i32
    %c8_i32_13 = arith.constant 8 : i32
    %40 = arith.muli %c1_i32, %c8_i32_13 : i32
    %41 = tpu.assume_multiple %40, 8 : i32
    %42 = arith.index_cast %41 : i32 to index
    %c0_14 = arith.constant 0 : index
    %43 = vector.load %arg1[%42, %c0_14] : memref<120x512xf32, #tpu.memory_space<vmem>>, vector<8x512xf32>
    %c0_15 = arith.constant 0 : index
    %c0_16 = arith.constant 0 : index
    %44 = vector.load %arg2[%c0_15, %c0_16] : memref<128x512xf32, #tpu.memory_space<vmem>>, vector<128x512xf32>
    %cst_17 = arith.constant dense<0.000000e+00> : vector<8x512xf32>
    %45 = tpu.matmul %39, %44, %cst_17 {dimension_numbers = #tpu.dot_dimension_numbers<[1], [0], [0], [1], [0, 0, 1, 1], [], []>} : vector<8x128xf32>, vector<128x512xf32>, vector<8x512xf32> -> vector<8x512xf32>
    %46 = arith.addf %43, %45 : vector<8x512xf32>
    %47 = vector.extract_strided_slice %46 {offsets = [0, 0], sizes = [8, 128], strides = [1, 1]} : vector<8x512xf32> to vector<8x128xf32>
    %cst_18 = arith.constant 5.000000e-01 : f32
    %48 = vector.broadcast %cst_18 : f32 to vector<8x128xf32>
    %49 = arith.mulf %48, %47 : vector<8x128xf32>
    %50 = math.tanh %49 : vector<8x128xf32>
    %cst_19 = arith.constant 5.000000e-01 : f32
    %51 = vector.broadcast %cst_19 : f32 to vector<8x128xf32>
    %52 = arith.mulf %51, %50 : vector<8x128xf32>
    %cst_20 = arith.constant 5.000000e-01 : f32
    %53 = vector.broadcast %cst_20 : f32 to vector<8x128xf32>
    %54 = arith.addf %52, %53 : vector<8x128xf32>
    %55 = vector.extract_strided_slice %46 {offsets = [0, 128], sizes = [8, 128], strides = [1, 1]} : vector<8x512xf32> to vector<8x128xf32>
    %cst_21 = arith.constant 5.000000e-01 : f32
    %56 = vector.broadcast %cst_21 : f32 to vector<8x128xf32>
    %57 = arith.mulf %56, %55 : vector<8x128xf32>
    %58 = math.tanh %57 : vector<8x128xf32>
    %cst_22 = arith.constant 5.000000e-01 : f32
    %59 = vector.broadcast %cst_22 : f32 to vector<8x128xf32>
    %60 = arith.mulf %59, %58 : vector<8x128xf32>
    %cst_23 = arith.constant 5.000000e-01 : f32
    %61 = vector.broadcast %cst_23 : f32 to vector<8x128xf32>
    %62 = arith.addf %60, %61 : vector<8x128xf32>
    %63 = vector.extract_strided_slice %46 {offsets = [0, 256], sizes = [8, 128], strides = [1, 1]} : vector<8x512xf32> to vector<8x128xf32>
    %64 = math.tanh %63 : vector<8x128xf32>
    %65 = vector.extract_strided_slice %46 {offsets = [0, 384], sizes = [8, 128], strides = [1, 1]} : vector<8x512xf32> to vector<8x128xf32>
    %cst_24 = arith.constant 5.000000e-01 : f32
    %66 = vector.broadcast %cst_24 : f32 to vector<8x128xf32>
    %67 = arith.mulf %66, %65 : vector<8x128xf32>
    %68 = math.tanh %67 : vector<8x128xf32>
    %cst_25 = arith.constant 5.000000e-01 : f32
    %69 = vector.broadcast %cst_25 : f32 to vector<8x128xf32>
    %70 = arith.mulf %69, %68 : vector<8x128xf32>
    %cst_26 = arith.constant 5.000000e-01 : f32
    %71 = vector.broadcast %cst_26 : f32 to vector<8x128xf32>
    %72 = arith.addf %70, %71 : vector<8x128xf32>
    %73 = arith.mulf %62, %37 : vector<8x128xf32>
    %74 = arith.mulf %54, %64 : vector<8x128xf32>
    %75 = arith.addf %73, %74 : vector<8x128xf32>
    %76 = math.tanh %75 : vector<8x128xf32>
    %77 = arith.mulf %72, %76 : vector<8x128xf32>
    %c2_i32 = arith.constant 2 : i32
    %c8_i32_27 = arith.constant 8 : i32
    %78 = arith.muli %c2_i32, %c8_i32_27 : i32
    %79 = tpu.assume_multiple %78, 8 : i32
    %80 = arith.index_cast %79 : i32 to index
    %c0_28 = arith.constant 0 : index
    %81 = vector.load %arg1[%80, %c0_28] : memref<120x512xf32, #tpu.memory_space<vmem>>, vector<8x512xf32>
    %c0_29 = arith.constant 0 : index
    %c0_30 = arith.constant 0 : index
    %82 = vector.load %arg2[%c0_29, %c0_30] : memref<128x512xf32, #tpu.memory_space<vmem>>, vector<128x512xf32>
    %cst_31 = arith.constant dense<0.000000e+00> : vector<8x512xf32>
    %83 = tpu.matmul %77, %82, %cst_31 {dimension_numbers = #tpu.dot_dimension_numbers<[1], [0], [0], [1], [0, 0, 1, 1], [], []>} : vector<8x128xf32>, vector<128x512xf32>, vector<8x512xf32> -> vector<8x512xf32>
    %84 = arith.addf %81, %83 : vector<8x512xf32>
    %85 = vector.extract_strided_slice %84 {offsets = [0, 0], sizes = [8, 128], strides = [1, 1]} : vector<8x512xf32> to vector<8x128xf32>
    %cst_32 = arith.constant 5.000000e-01 : f32
    %86 = vector.broadcast %cst_32 : f32 to vector<8x128xf32>
    %87 = arith.mulf %86, %85 : vector<8x128xf32>
    %88 = math.tanh %87 : vector<8x128xf32>
    %cst_33 = arith.constant 5.000000e-01 : f32
    %89 = vector.broadcast %cst_33 : f32 to vector<8x128xf32>
    %90 = arith.mulf %89, %88 : vector<8x128xf32>
    %cst_34 = arith.constant 5.000000e-01 : f32
    %91 = vector.broadcast %cst_34 : f32 to vector<8x128xf32>
    %92 = arith.addf %90, %91 : vector<8x128xf32>
    %93 = vector.extract_strided_slice %84 {offsets = [0, 128], sizes = [8, 128], strides = [1, 1]} : vector<8x512xf32> to vector<8x128xf32>
    %cst_35 = arith.constant 5.000000e-01 : f32
    %94 = vector.broadcast %cst_35 : f32 to vector<8x128xf32>
    %95 = arith.mulf %94, %93 : vector<8x128xf32>
    %96 = math.tanh %95 : vector<8x128xf32>
    %cst_36 = arith.constant 5.000000e-01 : f32
    %97 = vector.broadcast %cst_36 : f32 to vector<8x128xf32>
    %98 = arith.mulf %97, %96 : vector<8x128xf32>
    %cst_37 = arith.constant 5.000000e-01 : f32
    %99 = vector.broadcast %cst_37 : f32 to vector<8x128xf32>
    %100 = arith.addf %98, %99 : vector<8x128xf32>
    %101 = vector.extract_strided_slice %84 {offsets = [0, 256], sizes = [8, 128], strides = [1, 1]} : vector<8x512xf32> to vector<8x128xf32>
    %102 = math.tanh %101 : vector<8x128xf32>
    %103 = vector.extract_strided_slice %84 {offsets = [0, 384], sizes = [8, 128], strides = [1, 1]} : vector<8x512xf32> to vector<8x128xf32>
    %cst_38 = arith.constant 5.000000e-01 : f32
    %104 = vector.broadcast %cst_38 : f32 to vector<8x128xf32>
    %105 = arith.mulf %104, %103 : vector<8x128xf32>
    %106 = math.tanh %105 : vector<8x128xf32>
    %cst_39 = arith.constant 5.000000e-01 : f32
    %107 = vector.broadcast %cst_39 : f32 to vector<8x128xf32>
    %108 = arith.mulf %107, %106 : vector<8x128xf32>
    %cst_40 = arith.constant 5.000000e-01 : f32
    %109 = vector.broadcast %cst_40 : f32 to vector<8x128xf32>
    %110 = arith.addf %108, %109 : vector<8x128xf32>
    %111 = arith.mulf %100, %75 : vector<8x128xf32>
    %112 = arith.mulf %92, %102 : vector<8x128xf32>
    %113 = arith.addf %111, %112 : vector<8x128xf32>
    %114 = math.tanh %113 : vector<8x128xf32>
    %115 = arith.mulf %110, %114 : vector<8x128xf32>
    %c3_i32 = arith.constant 3 : i32
    %c8_i32_41 = arith.constant 8 : i32
    %116 = arith.muli %c3_i32, %c8_i32_41 : i32
    %117 = tpu.assume_multiple %116, 8 : i32
    %118 = arith.index_cast %117 : i32 to index
    %c0_42 = arith.constant 0 : index
    %119 = vector.load %arg1[%118, %c0_42] : memref<120x512xf32, #tpu.memory_space<vmem>>, vector<8x512xf32>
    %c0_43 = arith.constant 0 : index
    %c0_44 = arith.constant 0 : index
    %120 = vector.load %arg2[%c0_43, %c0_44] : memref<128x512xf32, #tpu.memory_space<vmem>>, vector<128x512xf32>
    %cst_45 = arith.constant dense<0.000000e+00> : vector<8x512xf32>
    %121 = tpu.matmul %115, %120, %cst_45 {dimension_numbers = #tpu.dot_dimension_numbers<[1], [0], [0], [1], [0, 0, 1, 1], [], []>} : vector<8x128xf32>, vector<128x512xf32>, vector<8x512xf32> -> vector<8x512xf32>
    %122 = arith.addf %119, %121 : vector<8x512xf32>
    %123 = vector.extract_strided_slice %122 {offsets = [0, 0], sizes = [8, 128], strides = [1, 1]} : vector<8x512xf32> to vector<8x128xf32>
    %cst_46 = arith.constant 5.000000e-01 : f32
    %124 = vector.broadcast %cst_46 : f32 to vector<8x128xf32>
    %125 = arith.mulf %124, %123 : vector<8x128xf32>
    %126 = math.tanh %125 : vector<8x128xf32>
    %cst_47 = arith.constant 5.000000e-01 : f32
    %127 = vector.broadcast %cst_47 : f32 to vector<8x128xf32>
    %128 = arith.mulf %127, %126 : vector<8x128xf32>
    %cst_48 = arith.constant 5.000000e-01 : f32
    %129 = vector.broadcast %cst_48 : f32 to vector<8x128xf32>
    %130 = arith.addf %128, %129 : vector<8x128xf32>
    %131 = vector.extract_strided_slice %122 {offsets = [0, 128], sizes = [8, 128], strides = [1, 1]} : vector<8x512xf32> to vector<8x128xf32>
    %cst_49 = arith.constant 5.000000e-01 : f32
    %132 = vector.broadcast %cst_49 : f32 to vector<8x128xf32>
    %133 = arith.mulf %132, %131 : vector<8x128xf32>
    %134 = math.tanh %133 : vector<8x128xf32>
    %cst_50 = arith.constant 5.000000e-01 : f32
    %135 = vector.broadcast %cst_50 : f32 to vector<8x128xf32>
    %136 = arith.mulf %135, %134 : vector<8x128xf32>
    %cst_51 = arith.constant 5.000000e-01 : f32
    %137 = vector.broadcast %cst_51 : f32 to vector<8x128xf32>
    %138 = arith.addf %136, %137 : vector<8x128xf32>
    %139 = vector.extract_strided_slice %122 {offsets = [0, 256], sizes = [8, 128], strides = [1, 1]} : vector<8x512xf32> to vector<8x128xf32>
    %140 = math.tanh %139 : vector<8x128xf32>
    %141 = vector.extract_strided_slice %122 {offsets = [0, 384], sizes = [8, 128], strides = [1, 1]} : vector<8x512xf32> to vector<8x128xf32>
    %cst_52 = arith.constant 5.000000e-01 : f32
    %142 = vector.broadcast %cst_52 : f32 to vector<8x128xf32>
    %143 = arith.mulf %142, %141 : vector<8x128xf32>
    %144 = math.tanh %143 : vector<8x128xf32>
    %cst_53 = arith.constant 5.000000e-01 : f32
    %145 = vector.broadcast %cst_53 : f32 to vector<8x128xf32>
    %146 = arith.mulf %145, %144 : vector<8x128xf32>
    %cst_54 = arith.constant 5.000000e-01 : f32
    %147 = vector.broadcast %cst_54 : f32 to vector<8x128xf32>
    %148 = arith.addf %146, %147 : vector<8x128xf32>
    %149 = arith.mulf %138, %113 : vector<8x128xf32>
    %150 = arith.mulf %130, %140 : vector<8x128xf32>
    %151 = arith.addf %149, %150 : vector<8x128xf32>
    %152 = math.tanh %151 : vector<8x128xf32>
    %153 = arith.mulf %148, %152 : vector<8x128xf32>
    %c4_i32 = arith.constant 4 : i32
    %c8_i32_55 = arith.constant 8 : i32
    %154 = arith.muli %c4_i32, %c8_i32_55 : i32
    %155 = tpu.assume_multiple %154, 8 : i32
    %156 = arith.index_cast %155 : i32 to index
    %c0_56 = arith.constant 0 : index
    %157 = vector.load %arg1[%156, %c0_56] : memref<120x512xf32, #tpu.memory_space<vmem>>, vector<8x512xf32>
    %c0_57 = arith.constant 0 : index
    %c0_58 = arith.constant 0 : index
    %158 = vector.load %arg2[%c0_57, %c0_58] : memref<128x512xf32, #tpu.memory_space<vmem>>, vector<128x512xf32>
    %cst_59 = arith.constant dense<0.000000e+00> : vector<8x512xf32>
    %159 = tpu.matmul %153, %158, %cst_59 {dimension_numbers = #tpu.dot_dimension_numbers<[1], [0], [0], [1], [0, 0, 1, 1], [], []>} : vector<8x128xf32>, vector<128x512xf32>, vector<8x512xf32> -> vector<8x512xf32>
    %160 = arith.addf %157, %159 : vector<8x512xf32>
    %161 = vector.extract_strided_slice %160 {offsets = [0, 0], sizes = [8, 128], strides = [1, 1]} : vector<8x512xf32> to vector<8x128xf32>
    %cst_60 = arith.constant 5.000000e-01 : f32
    %162 = vector.broadcast %cst_60 : f32 to vector<8x128xf32>
    %163 = arith.mulf %162, %161 : vector<8x128xf32>
    %164 = math.tanh %163 : vector<8x128xf32>
    %cst_61 = arith.constant 5.000000e-01 : f32
    %165 = vector.broadcast %cst_61 : f32 to vector<8x128xf32>
    %166 = arith.mulf %165, %164 : vector<8x128xf32>
    %cst_62 = arith.constant 5.000000e-01 : f32
    %167 = vector.broadcast %cst_62 : f32 to vector<8x128xf32>
    %168 = arith.addf %166, %167 : vector<8x128xf32>
    %169 = vector.extract_strided_slice %160 {offsets = [0, 128], sizes = [8, 128], strides = [1, 1]} : vector<8x512xf32> to vector<8x128xf32>
    %cst_63 = arith.constant 5.000000e-01 : f32
    %170 = vector.broadcast %cst_63 : f32 to vector<8x128xf32>
    %171 = arith.mulf %170, %169 : vector<8x128xf32>
    %172 = math.tanh %171 : vector<8x128xf32>
    %cst_64 = arith.constant 5.000000e-01 : f32
    %173 = vector.broadcast %cst_64 : f32 to vector<8x128xf32>
    %174 = arith.mulf %173, %172 : vector<8x128xf32>
    %cst_65 = arith.constant 5.000000e-01 : f32
    %175 = vector.broadcast %cst_65 : f32 to vector<8x128xf32>
    %176 = arith.addf %174, %175 : vector<8x128xf32>
    %177 = vector.extract_strided_slice %160 {offsets = [0, 256], sizes = [8, 128], strides = [1, 1]} : vector<8x512xf32> to vector<8x128xf32>
    %178 = math.tanh %177 : vector<8x128xf32>
    %179 = vector.extract_strided_slice %160 {offsets = [0, 384], sizes = [8, 128], strides = [1, 1]} : vector<8x512xf32> to vector<8x128xf32>
    %cst_66 = arith.constant 5.000000e-01 : f32
    %180 = vector.broadcast %cst_66 : f32 to vector<8x128xf32>
    %181 = arith.mulf %180, %179 : vector<8x128xf32>
    %182 = math.tanh %181 : vector<8x128xf32>
    %cst_67 = arith.constant 5.000000e-01 : f32
    %183 = vector.broadcast %cst_67 : f32 to vector<8x128xf32>
    %184 = arith.mulf %183, %182 : vector<8x128xf32>
    %cst_68 = arith.constant 5.000000e-01 : f32
    %185 = vector.broadcast %cst_68 : f32 to vector<8x128xf32>
    %186 = arith.addf %184, %185 : vector<8x128xf32>
    %187 = arith.mulf %176, %151 : vector<8x128xf32>
    %188 = arith.mulf %168, %178 : vector<8x128xf32>
    %189 = arith.addf %187, %188 : vector<8x128xf32>
    %190 = math.tanh %189 : vector<8x128xf32>
    %191 = arith.mulf %186, %190 : vector<8x128xf32>
    %c5_i32 = arith.constant 5 : i32
    %c8_i32_69 = arith.constant 8 : i32
    %192 = arith.muli %c5_i32, %c8_i32_69 : i32
    %193 = tpu.assume_multiple %192, 8 : i32
    %194 = arith.index_cast %193 : i32 to index
    %c0_70 = arith.constant 0 : index
    %195 = vector.load %arg1[%194, %c0_70] : memref<120x512xf32, #tpu.memory_space<vmem>>, vector<8x512xf32>
    %c0_71 = arith.constant 0 : index
    %c0_72 = arith.constant 0 : index
    %196 = vector.load %arg2[%c0_71, %c0_72] : memref<128x512xf32, #tpu.memory_space<vmem>>, vector<128x512xf32>
    %cst_73 = arith.constant dense<0.000000e+00> : vector<8x512xf32>
    %197 = tpu.matmul %191, %196, %cst_73 {dimension_numbers = #tpu.dot_dimension_numbers<[1], [0], [0], [1], [0, 0, 1, 1], [], []>} : vector<8x128xf32>, vector<128x512xf32>, vector<8x512xf32> -> vector<8x512xf32>
    %198 = arith.addf %195, %197 : vector<8x512xf32>
    %199 = vector.extract_strided_slice %198 {offsets = [0, 0], sizes = [8, 128], strides = [1, 1]} : vector<8x512xf32> to vector<8x128xf32>
    %cst_74 = arith.constant 5.000000e-01 : f32
    %200 = vector.broadcast %cst_74 : f32 to vector<8x128xf32>
    %201 = arith.mulf %200, %199 : vector<8x128xf32>
    %202 = math.tanh %201 : vector<8x128xf32>
    %cst_75 = arith.constant 5.000000e-01 : f32
    %203 = vector.broadcast %cst_75 : f32 to vector<8x128xf32>
    %204 = arith.mulf %203, %202 : vector<8x128xf32>
    %cst_76 = arith.constant 5.000000e-01 : f32
    %205 = vector.broadcast %cst_76 : f32 to vector<8x128xf32>
    %206 = arith.addf %204, %205 : vector<8x128xf32>
    %207 = vector.extract_strided_slice %198 {offsets = [0, 128], sizes = [8, 128], strides = [1, 1]} : vector<8x512xf32> to vector<8x128xf32>
    %cst_77 = arith.constant 5.000000e-01 : f32
    %208 = vector.broadcast %cst_77 : f32 to vector<8x128xf32>
    %209 = arith.mulf %208, %207 : vector<8x128xf32>
    %210 = math.tanh %209 : vector<8x128xf32>
    %cst_78 = arith.constant 5.000000e-01 : f32
    %211 = vector.broadcast %cst_78 : f32 to vector<8x128xf32>
    %212 = arith.mulf %211, %210 : vector<8x128xf32>
    %cst_79 = arith.constant 5.000000e-01 : f32
    %213 = vector.broadcast %cst_79 : f32 to vector<8x128xf32>
    %214 = arith.addf %212, %213 : vector<8x128xf32>
    %215 = vector.extract_strided_slice %198 {offsets = [0, 256], sizes = [8, 128], strides = [1, 1]} : vector<8x512xf32> to vector<8x128xf32>
    %216 = math.tanh %215 : vector<8x128xf32>
    %217 = vector.extract_strided_slice %198 {offsets = [0, 384], sizes = [8, 128], strides = [1, 1]} : vector<8x512xf32> to vector<8x128xf32>
    %cst_80 = arith.constant 5.000000e-01 : f32
    %218 = vector.broadcast %cst_80 : f32 to vector<8x128xf32>
    %219 = arith.mulf %218, %217 : vector<8x128xf32>
    %220 = math.tanh %219 : vector<8x128xf32>
    %cst_81 = arith.constant 5.000000e-01 : f32
    %221 = vector.broadcast %cst_81 : f32 to vector<8x128xf32>
    %222 = arith.mulf %221, %220 : vector<8x128xf32>
    %cst_82 = arith.constant 5.000000e-01 : f32
    %223 = vector.broadcast %cst_82 : f32 to vector<8x128xf32>
    %224 = arith.addf %222, %223 : vector<8x128xf32>
    %225 = arith.mulf %214, %189 : vector<8x128xf32>
    %226 = arith.mulf %206, %216 : vector<8x128xf32>
    %227 = arith.addf %225, %226 : vector<8x128xf32>
    %228 = math.tanh %227 : vector<8x128xf32>
    %229 = arith.mulf %224, %228 : vector<8x128xf32>
    %c6_i32 = arith.constant 6 : i32
    %c8_i32_83 = arith.constant 8 : i32
    %230 = arith.muli %c6_i32, %c8_i32_83 : i32
    %231 = tpu.assume_multiple %230, 8 : i32
    %232 = arith.index_cast %231 : i32 to index
    %c0_84 = arith.constant 0 : index
    %233 = vector.load %arg1[%232, %c0_84] : memref<120x512xf32, #tpu.memory_space<vmem>>, vector<8x512xf32>
    %c0_85 = arith.constant 0 : index
    %c0_86 = arith.constant 0 : index
    %234 = vector.load %arg2[%c0_85, %c0_86] : memref<128x512xf32, #tpu.memory_space<vmem>>, vector<128x512xf32>
    %cst_87 = arith.constant dense<0.000000e+00> : vector<8x512xf32>
    %235 = tpu.matmul %229, %234, %cst_87 {dimension_numbers = #tpu.dot_dimension_numbers<[1], [0], [0], [1], [0, 0, 1, 1], [], []>} : vector<8x128xf32>, vector<128x512xf32>, vector<8x512xf32> -> vector<8x512xf32>
    %236 = arith.addf %233, %235 : vector<8x512xf32>
    %237 = vector.extract_strided_slice %236 {offsets = [0, 0], sizes = [8, 128], strides = [1, 1]} : vector<8x512xf32> to vector<8x128xf32>
    %cst_88 = arith.constant 5.000000e-01 : f32
    %238 = vector.broadcast %cst_88 : f32 to vector<8x128xf32>
    %239 = arith.mulf %238, %237 : vector<8x128xf32>
    %240 = math.tanh %239 : vector<8x128xf32>
    %cst_89 = arith.constant 5.000000e-01 : f32
    %241 = vector.broadcast %cst_89 : f32 to vector<8x128xf32>
    %242 = arith.mulf %241, %240 : vector<8x128xf32>
    %cst_90 = arith.constant 5.000000e-01 : f32
    %243 = vector.broadcast %cst_90 : f32 to vector<8x128xf32>
    %244 = arith.addf %242, %243 : vector<8x128xf32>
    %245 = vector.extract_strided_slice %236 {offsets = [0, 128], sizes = [8, 128], strides = [1, 1]} : vector<8x512xf32> to vector<8x128xf32>
    %cst_91 = arith.constant 5.000000e-01 : f32
    %246 = vector.broadcast %cst_91 : f32 to vector<8x128xf32>
    %247 = arith.mulf %246, %245 : vector<8x128xf32>
    %248 = math.tanh %247 : vector<8x128xf32>
    %cst_92 = arith.constant 5.000000e-01 : f32
    %249 = vector.broadcast %cst_92 : f32 to vector<8x128xf32>
    %250 = arith.mulf %249, %248 : vector<8x128xf32>
    %cst_93 = arith.constant 5.000000e-01 : f32
    %251 = vector.broadcast %cst_93 : f32 to vector<8x128xf32>
    %252 = arith.addf %250, %251 : vector<8x128xf32>
    %253 = vector.extract_strided_slice %236 {offsets = [0, 256], sizes = [8, 128], strides = [1, 1]} : vector<8x512xf32> to vector<8x128xf32>
    %254 = math.tanh %253 : vector<8x128xf32>
    %255 = vector.extract_strided_slice %236 {offsets = [0, 384], sizes = [8, 128], strides = [1, 1]} : vector<8x512xf32> to vector<8x128xf32>
    %cst_94 = arith.constant 5.000000e-01 : f32
    %256 = vector.broadcast %cst_94 : f32 to vector<8x128xf32>
    %257 = arith.mulf %256, %255 : vector<8x128xf32>
    %258 = math.tanh %257 : vector<8x128xf32>
    %cst_95 = arith.constant 5.000000e-01 : f32
    %259 = vector.broadcast %cst_95 : f32 to vector<8x128xf32>
    %260 = arith.mulf %259, %258 : vector<8x128xf32>
    %cst_96 = arith.constant 5.000000e-01 : f32
    %261 = vector.broadcast %cst_96 : f32 to vector<8x128xf32>
    %262 = arith.addf %260, %261 : vector<8x128xf32>
    %263 = arith.mulf %252, %227 : vector<8x128xf32>
    %264 = arith.mulf %244, %254 : vector<8x128xf32>
    %265 = arith.addf %263, %264 : vector<8x128xf32>
    %266 = math.tanh %265 : vector<8x128xf32>
    %267 = arith.mulf %262, %266 : vector<8x128xf32>
    %c7_i32 = arith.constant 7 : i32
    %c8_i32_97 = arith.constant 8 : i32
    %268 = arith.muli %c7_i32, %c8_i32_97 : i32
    %269 = tpu.assume_multiple %268, 8 : i32
    %270 = arith.index_cast %269 : i32 to index
    %c0_98 = arith.constant 0 : index
    %271 = vector.load %arg1[%270, %c0_98] : memref<120x512xf32, #tpu.memory_space<vmem>>, vector<8x512xf32>
    %c0_99 = arith.constant 0 : index
    %c0_100 = arith.constant 0 : index
    %272 = vector.load %arg2[%c0_99, %c0_100] : memref<128x512xf32, #tpu.memory_space<vmem>>, vector<128x512xf32>
    %cst_101 = arith.constant dense<0.000000e+00> : vector<8x512xf32>
    %273 = tpu.matmul %267, %272, %cst_101 {dimension_numbers = #tpu.dot_dimension_numbers<[1], [0], [0], [1], [0, 0, 1, 1], [], []>} : vector<8x128xf32>, vector<128x512xf32>, vector<8x512xf32> -> vector<8x512xf32>
    %274 = arith.addf %271, %273 : vector<8x512xf32>
    %275 = vector.extract_strided_slice %274 {offsets = [0, 0], sizes = [8, 128], strides = [1, 1]} : vector<8x512xf32> to vector<8x128xf32>
    %cst_102 = arith.constant 5.000000e-01 : f32
    %276 = vector.broadcast %cst_102 : f32 to vector<8x128xf32>
    %277 = arith.mulf %276, %275 : vector<8x128xf32>
    %278 = math.tanh %277 : vector<8x128xf32>
    %cst_103 = arith.constant 5.000000e-01 : f32
    %279 = vector.broadcast %cst_103 : f32 to vector<8x128xf32>
    %280 = arith.mulf %279, %278 : vector<8x128xf32>
    %cst_104 = arith.constant 5.000000e-01 : f32
    %281 = vector.broadcast %cst_104 : f32 to vector<8x128xf32>
    %282 = arith.addf %280, %281 : vector<8x128xf32>
    %283 = vector.extract_strided_slice %274 {offsets = [0, 128], sizes = [8, 128], strides = [1, 1]} : vector<8x512xf32> to vector<8x128xf32>
    %cst_105 = arith.constant 5.000000e-01 : f32
    %284 = vector.broadcast %cst_105 : f32 to vector<8x128xf32>
    %285 = arith.mulf %284, %283 : vector<8x128xf32>
    %286 = math.tanh %285 : vector<8x128xf32>
    %cst_106 = arith.constant 5.000000e-01 : f32
    %287 = vector.broadcast %cst_106 : f32 to vector<8x128xf32>
    %288 = arith.mulf %287, %286 : vector<8x128xf32>
    %cst_107 = arith.constant 5.000000e-01 : f32
    %289 = vector.broadcast %cst_107 : f32 to vector<8x128xf32>
    %290 = arith.addf %288, %289 : vector<8x128xf32>
    %291 = vector.extract_strided_slice %274 {offsets = [0, 256], sizes = [8, 128], strides = [1, 1]} : vector<8x512xf32> to vector<8x128xf32>
    %292 = math.tanh %291 : vector<8x128xf32>
    %293 = vector.extract_strided_slice %274 {offsets = [0, 384], sizes = [8, 128], strides = [1, 1]} : vector<8x512xf32> to vector<8x128xf32>
    %cst_108 = arith.constant 5.000000e-01 : f32
    %294 = vector.broadcast %cst_108 : f32 to vector<8x128xf32>
    %295 = arith.mulf %294, %293 : vector<8x128xf32>
    %296 = math.tanh %295 : vector<8x128xf32>
    %cst_109 = arith.constant 5.000000e-01 : f32
    %297 = vector.broadcast %cst_109 : f32 to vector<8x128xf32>
    %298 = arith.mulf %297, %296 : vector<8x128xf32>
    %cst_110 = arith.constant 5.000000e-01 : f32
    %299 = vector.broadcast %cst_110 : f32 to vector<8x128xf32>
    %300 = arith.addf %298, %299 : vector<8x128xf32>
    %301 = arith.mulf %290, %265 : vector<8x128xf32>
    %302 = arith.mulf %282, %292 : vector<8x128xf32>
    %303 = arith.addf %301, %302 : vector<8x128xf32>
    %304 = math.tanh %303 : vector<8x128xf32>
    %305 = arith.mulf %300, %304 : vector<8x128xf32>
    %c8_i32_111 = arith.constant 8 : i32
    %c8_i32_112 = arith.constant 8 : i32
    %306 = arith.muli %c8_i32_111, %c8_i32_112 : i32
    %307 = tpu.assume_multiple %306, 8 : i32
    %308 = arith.index_cast %307 : i32 to index
    %c0_113 = arith.constant 0 : index
    %309 = vector.load %arg1[%308, %c0_113] : memref<120x512xf32, #tpu.memory_space<vmem>>, vector<8x512xf32>
    %c0_114 = arith.constant 0 : index
    %c0_115 = arith.constant 0 : index
    %310 = vector.load %arg2[%c0_114, %c0_115] : memref<128x512xf32, #tpu.memory_space<vmem>>, vector<128x512xf32>
    %cst_116 = arith.constant dense<0.000000e+00> : vector<8x512xf32>
    %311 = tpu.matmul %305, %310, %cst_116 {dimension_numbers = #tpu.dot_dimension_numbers<[1], [0], [0], [1], [0, 0, 1, 1], [], []>} : vector<8x128xf32>, vector<128x512xf32>, vector<8x512xf32> -> vector<8x512xf32>
    %312 = arith.addf %309, %311 : vector<8x512xf32>
    %313 = vector.extract_strided_slice %312 {offsets = [0, 0], sizes = [8, 128], strides = [1, 1]} : vector<8x512xf32> to vector<8x128xf32>
    %cst_117 = arith.constant 5.000000e-01 : f32
    %314 = vector.broadcast %cst_117 : f32 to vector<8x128xf32>
    %315 = arith.mulf %314, %313 : vector<8x128xf32>
    %316 = math.tanh %315 : vector<8x128xf32>
    %cst_118 = arith.constant 5.000000e-01 : f32
    %317 = vector.broadcast %cst_118 : f32 to vector<8x128xf32>
    %318 = arith.mulf %317, %316 : vector<8x128xf32>
    %cst_119 = arith.constant 5.000000e-01 : f32
    %319 = vector.broadcast %cst_119 : f32 to vector<8x128xf32>
    %320 = arith.addf %318, %319 : vector<8x128xf32>
    %321 = vector.extract_strided_slice %312 {offsets = [0, 128], sizes = [8, 128], strides = [1, 1]} : vector<8x512xf32> to vector<8x128xf32>
    %cst_120 = arith.constant 5.000000e-01 : f32
    %322 = vector.broadcast %cst_120 : f32 to vector<8x128xf32>
    %323 = arith.mulf %322, %321 : vector<8x128xf32>
    %324 = math.tanh %323 : vector<8x128xf32>
    %cst_121 = arith.constant 5.000000e-01 : f32
    %325 = vector.broadcast %cst_121 : f32 to vector<8x128xf32>
    %326 = arith.mulf %325, %324 : vector<8x128xf32>
    %cst_122 = arith.constant 5.000000e-01 : f32
    %327 = vector.broadcast %cst_122 : f32 to vector<8x128xf32>
    %328 = arith.addf %326, %327 : vector<8x128xf32>
    %329 = vector.extract_strided_slice %312 {offsets = [0, 256], sizes = [8, 128], strides = [1, 1]} : vector<8x512xf32> to vector<8x128xf32>
    %330 = math.tanh %329 : vector<8x128xf32>
    %331 = vector.extract_strided_slice %312 {offsets = [0, 384], sizes = [8, 128], strides = [1, 1]} : vector<8x512xf32> to vector<8x128xf32>
    %cst_123 = arith.constant 5.000000e-01 : f32
    %332 = vector.broadcast %cst_123 : f32 to vector<8x128xf32>
    %333 = arith.mulf %332, %331 : vector<8x128xf32>
    %334 = math.tanh %333 : vector<8x128xf32>
    %cst_124 = arith.constant 5.000000e-01 : f32
    %335 = vector.broadcast %cst_124 : f32 to vector<8x128xf32>
    %336 = arith.mulf %335, %334 : vector<8x128xf32>
    %cst_125 = arith.constant 5.000000e-01 : f32
    %337 = vector.broadcast %cst_125 : f32 to vector<8x128xf32>
    %338 = arith.addf %336, %337 : vector<8x128xf32>
    %339 = arith.mulf %328, %303 : vector<8x128xf32>
    %340 = arith.mulf %320, %330 : vector<8x128xf32>
    %341 = arith.addf %339, %340 : vector<8x128xf32>
    %342 = math.tanh %341 : vector<8x128xf32>
    %343 = arith.mulf %338, %342 : vector<8x128xf32>
    %c9_i32 = arith.constant 9 : i32
    %c8_i32_126 = arith.constant 8 : i32
    %344 = arith.muli %c9_i32, %c8_i32_126 : i32
    %345 = tpu.assume_multiple %344, 8 : i32
    %346 = arith.index_cast %345 : i32 to index
    %c0_127 = arith.constant 0 : index
    %347 = vector.load %arg1[%346, %c0_127] : memref<120x512xf32, #tpu.memory_space<vmem>>, vector<8x512xf32>
    %c0_128 = arith.constant 0 : index
    %c0_129 = arith.constant 0 : index
    %348 = vector.load %arg2[%c0_128, %c0_129] : memref<128x512xf32, #tpu.memory_space<vmem>>, vector<128x512xf32>
    %cst_130 = arith.constant dense<0.000000e+00> : vector<8x512xf32>
    %349 = tpu.matmul %343, %348, %cst_130 {dimension_numbers = #tpu.dot_dimension_numbers<[1], [0], [0], [1], [0, 0, 1, 1], [], []>} : vector<8x128xf32>, vector<128x512xf32>, vector<8x512xf32> -> vector<8x512xf32>
    %350 = arith.addf %347, %349 : vector<8x512xf32>
    %351 = vector.extract_strided_slice %350 {offsets = [0, 0], sizes = [8, 128], strides = [1, 1]} : vector<8x512xf32> to vector<8x128xf32>
    %cst_131 = arith.constant 5.000000e-01 : f32
    %352 = vector.broadcast %cst_131 : f32 to vector<8x128xf32>
    %353 = arith.mulf %352, %351 : vector<8x128xf32>
    %354 = math.tanh %353 : vector<8x128xf32>
    %cst_132 = arith.constant 5.000000e-01 : f32
    %355 = vector.broadcast %cst_132 : f32 to vector<8x128xf32>
    %356 = arith.mulf %355, %354 : vector<8x128xf32>
    %cst_133 = arith.constant 5.000000e-01 : f32
    %357 = vector.broadcast %cst_133 : f32 to vector<8x128xf32>
    %358 = arith.addf %356, %357 : vector<8x128xf32>
    %359 = vector.extract_strided_slice %350 {offsets = [0, 128], sizes = [8, 128], strides = [1, 1]} : vector<8x512xf32> to vector<8x128xf32>
    %cst_134 = arith.constant 5.000000e-01 : f32
    %360 = vector.broadcast %cst_134 : f32 to vector<8x128xf32>
    %361 = arith.mulf %360, %359 : vector<8x128xf32>
    %362 = math.tanh %361 : vector<8x128xf32>
    %cst_135 = arith.constant 5.000000e-01 : f32
    %363 = vector.broadcast %cst_135 : f32 to vector<8x128xf32>
    %364 = arith.mulf %363, %362 : vector<8x128xf32>
    %cst_136 = arith.constant 5.000000e-01 : f32
    %365 = vector.broadcast %cst_136 : f32 to vector<8x128xf32>
    %366 = arith.addf %364, %365 : vector<8x128xf32>
    %367 = vector.extract_strided_slice %350 {offsets = [0, 256], sizes = [8, 128], strides = [1, 1]} : vector<8x512xf32> to vector<8x128xf32>
    %368 = math.tanh %367 : vector<8x128xf32>
    %369 = vector.extract_strided_slice %350 {offsets = [0, 384], sizes = [8, 128], strides = [1, 1]} : vector<8x512xf32> to vector<8x128xf32>
    %cst_137 = arith.constant 5.000000e-01 : f32
    %370 = vector.broadcast %cst_137 : f32 to vector<8x128xf32>
    %371 = arith.mulf %370, %369 : vector<8x128xf32>
    %372 = math.tanh %371 : vector<8x128xf32>
    %cst_138 = arith.constant 5.000000e-01 : f32
    %373 = vector.broadcast %cst_138 : f32 to vector<8x128xf32>
    %374 = arith.mulf %373, %372 : vector<8x128xf32>
    %cst_139 = arith.constant 5.000000e-01 : f32
    %375 = vector.broadcast %cst_139 : f32 to vector<8x128xf32>
    %376 = arith.addf %374, %375 : vector<8x128xf32>
    %377 = arith.mulf %366, %341 : vector<8x128xf32>
    %378 = arith.mulf %358, %368 : vector<8x128xf32>
    %379 = arith.addf %377, %378 : vector<8x128xf32>
    %380 = math.tanh %379 : vector<8x128xf32>
    %381 = arith.mulf %376, %380 : vector<8x128xf32>
    %c10_i32 = arith.constant 10 : i32
    %c8_i32_140 = arith.constant 8 : i32
    %382 = arith.muli %c10_i32, %c8_i32_140 : i32
    %383 = tpu.assume_multiple %382, 8 : i32
    %384 = arith.index_cast %383 : i32 to index
    %c0_141 = arith.constant 0 : index
    %385 = vector.load %arg1[%384, %c0_141] : memref<120x512xf32, #tpu.memory_space<vmem>>, vector<8x512xf32>
    %c0_142 = arith.constant 0 : index
    %c0_143 = arith.constant 0 : index
    %386 = vector.load %arg2[%c0_142, %c0_143] : memref<128x512xf32, #tpu.memory_space<vmem>>, vector<128x512xf32>
    %cst_144 = arith.constant dense<0.000000e+00> : vector<8x512xf32>
    %387 = tpu.matmul %381, %386, %cst_144 {dimension_numbers = #tpu.dot_dimension_numbers<[1], [0], [0], [1], [0, 0, 1, 1], [], []>} : vector<8x128xf32>, vector<128x512xf32>, vector<8x512xf32> -> vector<8x512xf32>
    %388 = arith.addf %385, %387 : vector<8x512xf32>
    %389 = vector.extract_strided_slice %388 {offsets = [0, 0], sizes = [8, 128], strides = [1, 1]} : vector<8x512xf32> to vector<8x128xf32>
    %cst_145 = arith.constant 5.000000e-01 : f32
    %390 = vector.broadcast %cst_145 : f32 to vector<8x128xf32>
    %391 = arith.mulf %390, %389 : vector<8x128xf32>
    %392 = math.tanh %391 : vector<8x128xf32>
    %cst_146 = arith.constant 5.000000e-01 : f32
    %393 = vector.broadcast %cst_146 : f32 to vector<8x128xf32>
    %394 = arith.mulf %393, %392 : vector<8x128xf32>
    %cst_147 = arith.constant 5.000000e-01 : f32
    %395 = vector.broadcast %cst_147 : f32 to vector<8x128xf32>
    %396 = arith.addf %394, %395 : vector<8x128xf32>
    %397 = vector.extract_strided_slice %388 {offsets = [0, 128], sizes = [8, 128], strides = [1, 1]} : vector<8x512xf32> to vector<8x128xf32>
    %cst_148 = arith.constant 5.000000e-01 : f32
    %398 = vector.broadcast %cst_148 : f32 to vector<8x128xf32>
    %399 = arith.mulf %398, %397 : vector<8x128xf32>
    %400 = math.tanh %399 : vector<8x128xf32>
    %cst_149 = arith.constant 5.000000e-01 : f32
    %401 = vector.broadcast %cst_149 : f32 to vector<8x128xf32>
    %402 = arith.mulf %401, %400 : vector<8x128xf32>
    %cst_150 = arith.constant 5.000000e-01 : f32
    %403 = vector.broadcast %cst_150 : f32 to vector<8x128xf32>
    %404 = arith.addf %402, %403 : vector<8x128xf32>
    %405 = vector.extract_strided_slice %388 {offsets = [0, 256], sizes = [8, 128], strides = [1, 1]} : vector<8x512xf32> to vector<8x128xf32>
    %406 = math.tanh %405 : vector<8x128xf32>
    %407 = vector.extract_strided_slice %388 {offsets = [0, 384], sizes = [8, 128], strides = [1, 1]} : vector<8x512xf32> to vector<8x128xf32>
    %cst_151 = arith.constant 5.000000e-01 : f32
    %408 = vector.broadcast %cst_151 : f32 to vector<8x128xf32>
    %409 = arith.mulf %408, %407 : vector<8x128xf32>
    %410 = math.tanh %409 : vector<8x128xf32>
    %cst_152 = arith.constant 5.000000e-01 : f32
    %411 = vector.broadcast %cst_152 : f32 to vector<8x128xf32>
    %412 = arith.mulf %411, %410 : vector<8x128xf32>
    %cst_153 = arith.constant 5.000000e-01 : f32
    %413 = vector.broadcast %cst_153 : f32 to vector<8x128xf32>
    %414 = arith.addf %412, %413 : vector<8x128xf32>
    %415 = arith.mulf %404, %379 : vector<8x128xf32>
    %416 = arith.mulf %396, %406 : vector<8x128xf32>
    %417 = arith.addf %415, %416 : vector<8x128xf32>
    %418 = math.tanh %417 : vector<8x128xf32>
    %419 = arith.mulf %414, %418 : vector<8x128xf32>
    %c11_i32 = arith.constant 11 : i32
    %c8_i32_154 = arith.constant 8 : i32
    %420 = arith.muli %c11_i32, %c8_i32_154 : i32
    %421 = tpu.assume_multiple %420, 8 : i32
    %422 = arith.index_cast %421 : i32 to index
    %c0_155 = arith.constant 0 : index
    %423 = vector.load %arg1[%422, %c0_155] : memref<120x512xf32, #tpu.memory_space<vmem>>, vector<8x512xf32>
    %c0_156 = arith.constant 0 : index
    %c0_157 = arith.constant 0 : index
    %424 = vector.load %arg2[%c0_156, %c0_157] : memref<128x512xf32, #tpu.memory_space<vmem>>, vector<128x512xf32>
    %cst_158 = arith.constant dense<0.000000e+00> : vector<8x512xf32>
    %425 = tpu.matmul %419, %424, %cst_158 {dimension_numbers = #tpu.dot_dimension_numbers<[1], [0], [0], [1], [0, 0, 1, 1], [], []>} : vector<8x128xf32>, vector<128x512xf32>, vector<8x512xf32> -> vector<8x512xf32>
    %426 = arith.addf %423, %425 : vector<8x512xf32>
    %427 = vector.extract_strided_slice %426 {offsets = [0, 0], sizes = [8, 128], strides = [1, 1]} : vector<8x512xf32> to vector<8x128xf32>
    %cst_159 = arith.constant 5.000000e-01 : f32
    %428 = vector.broadcast %cst_159 : f32 to vector<8x128xf32>
    %429 = arith.mulf %428, %427 : vector<8x128xf32>
    %430 = math.tanh %429 : vector<8x128xf32>
    %cst_160 = arith.constant 5.000000e-01 : f32
    %431 = vector.broadcast %cst_160 : f32 to vector<8x128xf32>
    %432 = arith.mulf %431, %430 : vector<8x128xf32>
    %cst_161 = arith.constant 5.000000e-01 : f32
    %433 = vector.broadcast %cst_161 : f32 to vector<8x128xf32>
    %434 = arith.addf %432, %433 : vector<8x128xf32>
    %435 = vector.extract_strided_slice %426 {offsets = [0, 128], sizes = [8, 128], strides = [1, 1]} : vector<8x512xf32> to vector<8x128xf32>
    %cst_162 = arith.constant 5.000000e-01 : f32
    %436 = vector.broadcast %cst_162 : f32 to vector<8x128xf32>
    %437 = arith.mulf %436, %435 : vector<8x128xf32>
    %438 = math.tanh %437 : vector<8x128xf32>
    %cst_163 = arith.constant 5.000000e-01 : f32
    %439 = vector.broadcast %cst_163 : f32 to vector<8x128xf32>
    %440 = arith.mulf %439, %438 : vector<8x128xf32>
    %cst_164 = arith.constant 5.000000e-01 : f32
    %441 = vector.broadcast %cst_164 : f32 to vector<8x128xf32>
    %442 = arith.addf %440, %441 : vector<8x128xf32>
    %443 = vector.extract_strided_slice %426 {offsets = [0, 256], sizes = [8, 128], strides = [1, 1]} : vector<8x512xf32> to vector<8x128xf32>
    %444 = math.tanh %443 : vector<8x128xf32>
    %445 = vector.extract_strided_slice %426 {offsets = [0, 384], sizes = [8, 128], strides = [1, 1]} : vector<8x512xf32> to vector<8x128xf32>
    %cst_165 = arith.constant 5.000000e-01 : f32
    %446 = vector.broadcast %cst_165 : f32 to vector<8x128xf32>
    %447 = arith.mulf %446, %445 : vector<8x128xf32>
    %448 = math.tanh %447 : vector<8x128xf32>
    %cst_166 = arith.constant 5.000000e-01 : f32
    %449 = vector.broadcast %cst_166 : f32 to vector<8x128xf32>
    %450 = arith.mulf %449, %448 : vector<8x128xf32>
    %cst_167 = arith.constant 5.000000e-01 : f32
    %451 = vector.broadcast %cst_167 : f32 to vector<8x128xf32>
    %452 = arith.addf %450, %451 : vector<8x128xf32>
    %453 = arith.mulf %442, %417 : vector<8x128xf32>
    %454 = arith.mulf %434, %444 : vector<8x128xf32>
    %455 = arith.addf %453, %454 : vector<8x128xf32>
    %456 = math.tanh %455 : vector<8x128xf32>
    %457 = arith.mulf %452, %456 : vector<8x128xf32>
    %c12_i32 = arith.constant 12 : i32
    %c8_i32_168 = arith.constant 8 : i32
    %458 = arith.muli %c12_i32, %c8_i32_168 : i32
    %459 = tpu.assume_multiple %458, 8 : i32
    %460 = arith.index_cast %459 : i32 to index
    %c0_169 = arith.constant 0 : index
    %461 = vector.load %arg1[%460, %c0_169] : memref<120x512xf32, #tpu.memory_space<vmem>>, vector<8x512xf32>
    %c0_170 = arith.constant 0 : index
    %c0_171 = arith.constant 0 : index
    %462 = vector.load %arg2[%c0_170, %c0_171] : memref<128x512xf32, #tpu.memory_space<vmem>>, vector<128x512xf32>
    %cst_172 = arith.constant dense<0.000000e+00> : vector<8x512xf32>
    %463 = tpu.matmul %457, %462, %cst_172 {dimension_numbers = #tpu.dot_dimension_numbers<[1], [0], [0], [1], [0, 0, 1, 1], [], []>} : vector<8x128xf32>, vector<128x512xf32>, vector<8x512xf32> -> vector<8x512xf32>
    %464 = arith.addf %461, %463 : vector<8x512xf32>
    %465 = vector.extract_strided_slice %464 {offsets = [0, 0], sizes = [8, 128], strides = [1, 1]} : vector<8x512xf32> to vector<8x128xf32>
    %cst_173 = arith.constant 5.000000e-01 : f32
    %466 = vector.broadcast %cst_173 : f32 to vector<8x128xf32>
    %467 = arith.mulf %466, %465 : vector<8x128xf32>
    %468 = math.tanh %467 : vector<8x128xf32>
    %cst_174 = arith.constant 5.000000e-01 : f32
    %469 = vector.broadcast %cst_174 : f32 to vector<8x128xf32>
    %470 = arith.mulf %469, %468 : vector<8x128xf32>
    %cst_175 = arith.constant 5.000000e-01 : f32
    %471 = vector.broadcast %cst_175 : f32 to vector<8x128xf32>
    %472 = arith.addf %470, %471 : vector<8x128xf32>
    %473 = vector.extract_strided_slice %464 {offsets = [0, 128], sizes = [8, 128], strides = [1, 1]} : vector<8x512xf32> to vector<8x128xf32>
    %cst_176 = arith.constant 5.000000e-01 : f32
    %474 = vector.broadcast %cst_176 : f32 to vector<8x128xf32>
    %475 = arith.mulf %474, %473 : vector<8x128xf32>
    %476 = math.tanh %475 : vector<8x128xf32>
    %cst_177 = arith.constant 5.000000e-01 : f32
    %477 = vector.broadcast %cst_177 : f32 to vector<8x128xf32>
    %478 = arith.mulf %477, %476 : vector<8x128xf32>
    %cst_178 = arith.constant 5.000000e-01 : f32
    %479 = vector.broadcast %cst_178 : f32 to vector<8x128xf32>
    %480 = arith.addf %478, %479 : vector<8x128xf32>
    %481 = vector.extract_strided_slice %464 {offsets = [0, 256], sizes = [8, 128], strides = [1, 1]} : vector<8x512xf32> to vector<8x128xf32>
    %482 = math.tanh %481 : vector<8x128xf32>
    %483 = vector.extract_strided_slice %464 {offsets = [0, 384], sizes = [8, 128], strides = [1, 1]} : vector<8x512xf32> to vector<8x128xf32>
    %cst_179 = arith.constant 5.000000e-01 : f32
    %484 = vector.broadcast %cst_179 : f32 to vector<8x128xf32>
    %485 = arith.mulf %484, %483 : vector<8x128xf32>
    %486 = math.tanh %485 : vector<8x128xf32>
    %cst_180 = arith.constant 5.000000e-01 : f32
    %487 = vector.broadcast %cst_180 : f32 to vector<8x128xf32>
    %488 = arith.mulf %487, %486 : vector<8x128xf32>
    %cst_181 = arith.constant 5.000000e-01 : f32
    %489 = vector.broadcast %cst_181 : f32 to vector<8x128xf32>
    %490 = arith.addf %488, %489 : vector<8x128xf32>
    %491 = arith.mulf %480, %455 : vector<8x128xf32>
    %492 = arith.mulf %472, %482 : vector<8x128xf32>
    %493 = arith.addf %491, %492 : vector<8x128xf32>
    %494 = math.tanh %493 : vector<8x128xf32>
    %495 = arith.mulf %490, %494 : vector<8x128xf32>
    %c13_i32 = arith.constant 13 : i32
    %c8_i32_182 = arith.constant 8 : i32
    %496 = arith.muli %c13_i32, %c8_i32_182 : i32
    %497 = tpu.assume_multiple %496, 8 : i32
    %498 = arith.index_cast %497 : i32 to index
    %c0_183 = arith.constant 0 : index
    %499 = vector.load %arg1[%498, %c0_183] : memref<120x512xf32, #tpu.memory_space<vmem>>, vector<8x512xf32>
    %c0_184 = arith.constant 0 : index
    %c0_185 = arith.constant 0 : index
    %500 = vector.load %arg2[%c0_184, %c0_185] : memref<128x512xf32, #tpu.memory_space<vmem>>, vector<128x512xf32>
    %cst_186 = arith.constant dense<0.000000e+00> : vector<8x512xf32>
    %501 = tpu.matmul %495, %500, %cst_186 {dimension_numbers = #tpu.dot_dimension_numbers<[1], [0], [0], [1], [0, 0, 1, 1], [], []>} : vector<8x128xf32>, vector<128x512xf32>, vector<8x512xf32> -> vector<8x512xf32>
    %502 = arith.addf %499, %501 : vector<8x512xf32>
    %503 = vector.extract_strided_slice %502 {offsets = [0, 0], sizes = [8, 128], strides = [1, 1]} : vector<8x512xf32> to vector<8x128xf32>
    %cst_187 = arith.constant 5.000000e-01 : f32
    %504 = vector.broadcast %cst_187 : f32 to vector<8x128xf32>
    %505 = arith.mulf %504, %503 : vector<8x128xf32>
    %506 = math.tanh %505 : vector<8x128xf32>
    %cst_188 = arith.constant 5.000000e-01 : f32
    %507 = vector.broadcast %cst_188 : f32 to vector<8x128xf32>
    %508 = arith.mulf %507, %506 : vector<8x128xf32>
    %cst_189 = arith.constant 5.000000e-01 : f32
    %509 = vector.broadcast %cst_189 : f32 to vector<8x128xf32>
    %510 = arith.addf %508, %509 : vector<8x128xf32>
    %511 = vector.extract_strided_slice %502 {offsets = [0, 128], sizes = [8, 128], strides = [1, 1]} : vector<8x512xf32> to vector<8x128xf32>
    %cst_190 = arith.constant 5.000000e-01 : f32
    %512 = vector.broadcast %cst_190 : f32 to vector<8x128xf32>
    %513 = arith.mulf %512, %511 : vector<8x128xf32>
    %514 = math.tanh %513 : vector<8x128xf32>
    %cst_191 = arith.constant 5.000000e-01 : f32
    %515 = vector.broadcast %cst_191 : f32 to vector<8x128xf32>
    %516 = arith.mulf %515, %514 : vector<8x128xf32>
    %cst_192 = arith.constant 5.000000e-01 : f32
    %517 = vector.broadcast %cst_192 : f32 to vector<8x128xf32>
    %518 = arith.addf %516, %517 : vector<8x128xf32>
    %519 = vector.extract_strided_slice %502 {offsets = [0, 256], sizes = [8, 128], strides = [1, 1]} : vector<8x512xf32> to vector<8x128xf32>
    %520 = math.tanh %519 : vector<8x128xf32>
    %521 = vector.extract_strided_slice %502 {offsets = [0, 384], sizes = [8, 128], strides = [1, 1]} : vector<8x512xf32> to vector<8x128xf32>
    %cst_193 = arith.constant 5.000000e-01 : f32
    %522 = vector.broadcast %cst_193 : f32 to vector<8x128xf32>
    %523 = arith.mulf %522, %521 : vector<8x128xf32>
    %524 = math.tanh %523 : vector<8x128xf32>
    %cst_194 = arith.constant 5.000000e-01 : f32
    %525 = vector.broadcast %cst_194 : f32 to vector<8x128xf32>
    %526 = arith.mulf %525, %524 : vector<8x128xf32>
    %cst_195 = arith.constant 5.000000e-01 : f32
    %527 = vector.broadcast %cst_195 : f32 to vector<8x128xf32>
    %528 = arith.addf %526, %527 : vector<8x128xf32>
    %529 = arith.mulf %518, %493 : vector<8x128xf32>
    %530 = arith.mulf %510, %520 : vector<8x128xf32>
    %531 = arith.addf %529, %530 : vector<8x128xf32>
    %532 = math.tanh %531 : vector<8x128xf32>
    %533 = arith.mulf %528, %532 : vector<8x128xf32>
    %c14_i32 = arith.constant 14 : i32
    %c8_i32_196 = arith.constant 8 : i32
    %534 = arith.muli %c14_i32, %c8_i32_196 : i32
    %535 = tpu.assume_multiple %534, 8 : i32
    %536 = arith.index_cast %535 : i32 to index
    %c0_197 = arith.constant 0 : index
    %537 = vector.load %arg1[%536, %c0_197] : memref<120x512xf32, #tpu.memory_space<vmem>>, vector<8x512xf32>
    %c0_198 = arith.constant 0 : index
    %c0_199 = arith.constant 0 : index
    %538 = vector.load %arg2[%c0_198, %c0_199] : memref<128x512xf32, #tpu.memory_space<vmem>>, vector<128x512xf32>
    %cst_200 = arith.constant dense<0.000000e+00> : vector<8x512xf32>
    %539 = tpu.matmul %533, %538, %cst_200 {dimension_numbers = #tpu.dot_dimension_numbers<[1], [0], [0], [1], [0, 0, 1, 1], [], []>} : vector<8x128xf32>, vector<128x512xf32>, vector<8x512xf32> -> vector<8x512xf32>
    %540 = arith.addf %537, %539 : vector<8x512xf32>
    %541 = vector.extract_strided_slice %540 {offsets = [0, 0], sizes = [8, 128], strides = [1, 1]} : vector<8x512xf32> to vector<8x128xf32>
    %cst_201 = arith.constant 5.000000e-01 : f32
    %542 = vector.broadcast %cst_201 : f32 to vector<8x128xf32>
    %543 = arith.mulf %542, %541 : vector<8x128xf32>
    %544 = math.tanh %543 : vector<8x128xf32>
    %cst_202 = arith.constant 5.000000e-01 : f32
    %545 = vector.broadcast %cst_202 : f32 to vector<8x128xf32>
    %546 = arith.mulf %545, %544 : vector<8x128xf32>
    %cst_203 = arith.constant 5.000000e-01 : f32
    %547 = vector.broadcast %cst_203 : f32 to vector<8x128xf32>
    %548 = arith.addf %546, %547 : vector<8x128xf32>
    %549 = vector.extract_strided_slice %540 {offsets = [0, 128], sizes = [8, 128], strides = [1, 1]} : vector<8x512xf32> to vector<8x128xf32>
    %cst_204 = arith.constant 5.000000e-01 : f32
    %550 = vector.broadcast %cst_204 : f32 to vector<8x128xf32>
    %551 = arith.mulf %550, %549 : vector<8x128xf32>
    %552 = math.tanh %551 : vector<8x128xf32>
    %cst_205 = arith.constant 5.000000e-01 : f32
    %553 = vector.broadcast %cst_205 : f32 to vector<8x128xf32>
    %554 = arith.mulf %553, %552 : vector<8x128xf32>
    %cst_206 = arith.constant 5.000000e-01 : f32
    %555 = vector.broadcast %cst_206 : f32 to vector<8x128xf32>
    %556 = arith.addf %554, %555 : vector<8x128xf32>
    %557 = vector.extract_strided_slice %540 {offsets = [0, 256], sizes = [8, 128], strides = [1, 1]} : vector<8x512xf32> to vector<8x128xf32>
    %558 = math.tanh %557 : vector<8x128xf32>
    %559 = vector.extract_strided_slice %540 {offsets = [0, 384], sizes = [8, 128], strides = [1, 1]} : vector<8x512xf32> to vector<8x128xf32>
    %cst_207 = arith.constant 5.000000e-01 : f32
    %560 = vector.broadcast %cst_207 : f32 to vector<8x128xf32>
    %561 = arith.mulf %560, %559 : vector<8x128xf32>
    %562 = math.tanh %561 : vector<8x128xf32>
    %cst_208 = arith.constant 5.000000e-01 : f32
    %563 = vector.broadcast %cst_208 : f32 to vector<8x128xf32>
    %564 = arith.mulf %563, %562 : vector<8x128xf32>
    %cst_209 = arith.constant 5.000000e-01 : f32
    %565 = vector.broadcast %cst_209 : f32 to vector<8x128xf32>
    %566 = arith.addf %564, %565 : vector<8x128xf32>
    %567 = arith.mulf %556, %531 : vector<8x128xf32>
    %568 = arith.mulf %548, %558 : vector<8x128xf32>
    %569 = arith.addf %567, %568 : vector<8x128xf32>
    %570 = math.tanh %569 : vector<8x128xf32>
    %571 = arith.mulf %566, %570 : vector<8x128xf32>
    %c15_i32 = arith.constant 15 : i32
    %c0_210 = arith.constant 0 : index
    %c0_211 = arith.constant 0 : index
    %572 = vector.load %arg3[%c0_210, %c0_211] : memref<8x128xf32, #tpu.memory_space<vmem>>, vector<8x128xf32>
    tpu.vector_store %arg3[%c0_210, %c0_211], %571 {strides = array<i32>} : memref<8x128xf32, #tpu.memory_space<vmem>>, vector<8x128xf32>,
    return
  }
  func.func @transform_0(%arg0: i32) -> (i32, i32) {
    %c0_i32 = arith.constant 0 : i32
    %c0_i32_0 = arith.constant 0 : i32
    %c0_i32_1 = arith.constant 0 : i32
    return %c0_i32, %c0_i32_0 : i32, i32
  }
  func.func @transform_1(%arg0: i32) -> (i32, i32) {
    %c0_i32 = arith.constant 0 : i32
    %c0_i32_0 = arith.constant 0 : i32
    %c0_i32_1 = arith.constant 0 : i32
    return %c0_i32, %c0_i32_0 : i32, i32
  }
  func.func @transform_2(%arg0: i32) -> (i32, i32) {
    %c0_i32 = arith.constant 0 : i32
    %c0_i32_0 = arith.constant 0 : i32
    %c0_i32_1 = arith.constant 0 : i32
    return %c0_i32, %c0_i32_0 : i32, i32
  }
}

</mosaic_0001>

<bundles_post_ra>
// kernel: bilstm_forward.1
= control target key start
LH: loop header
LB: loop body
LE: loop exit
PB: predicated region body
PF: predicated region fallthrough
CT: control target
= control target key end

     0   :  { %s4272_s0 = inlined_call_operand.vmem [shape: f32[120,512], index: 0, kind: input, shape index: {}]   ;;  %s4273_s1 = inlined_call_operand.vmem [shape: f32[128,512], index: 1, kind: input, shape index: {}]   ;;  %s4274_s2 = inlined_call_operand.hbm [shape: f32[8,128], index: 2, kind: output, shape index: {}]  }
   0x1   :  { %v2124_v0 = vld [vmem:[%s4273_s1 + $0x1e0] sm:$0xff]  ;;  %v2129_v1 = vld [vmem:[%s4273_s1 + $0x1e8] sm:$0xff]  ;;  %v2134_v2 = vld [vmem:[%s4273_s1 + $0x1f0] sm:$0xff] }
   0x2   :  { %83 = vmatpush.msra.mxu0 %v2124_v0  ;;  %103 = vmatpush.msra.mxu1 %v2129_v1  ;;  %v2141_v3 = vld [vmem:[%s4273_s1 + $0x1c0] sm:$0xff]  ;;  %v2146_v4 = vld [vmem:[%s4273_s1 + $0x1c8] sm:$0xff]  ;;  %v2151_v5 = vld [vmem:[%s4273_s1 + $0x1d0] sm:$0xff] }
   0x3   :  { %123 = vmatpush.msra.mxu2 %v2134_v2  ;;  %v2157_v6 = vld [vmem:[%s4273_s1 + $0x1a0] sm:$0xff]  ;;  %v2162_v7 = vld [vmem:[%s4273_s1 + $0x1a8] sm:$0xff]  ;;  %v2169_v8 = vld [vmem:[%s4273_s1 + $0x1b0] sm:$0xff] }
   0x4   :  { %84 = vmatpush.msra.mxu0 %v2141_v3  ;;  %104 = vmatpush.msra.mxu1 %v2146_v4  ;;  %v2174_v9 = vld [vmem:[%s4273_s1 + $0x1f8] sm:$0xff]  ;;  %v2181_v10 = vld [vmem:[%s4273_s1 + $0x180] sm:$0xff]  ;;  %v2186_v11 = vld [vmem:[%s4273_s1 + $0x188] sm:$0xff] }
   0x5   :  { %124 = vmatpush.msra.mxu2 %v2151_v5  ;;  %143 = vmatpush.msra.mxu3 %v2174_v9  ;;  %v2191_v12 = vld [vmem:[%s4273_s1 + $0x1d8] sm:$0xff]  ;;  %v2198_v13 = vld [vmem:[%s4273_s1 + $0x190] sm:$0xff]  ;;  %v2210_v15 = vld [vmem:[%s4273_s1 + $0x160] sm:$0xff] }
   0x6   :  { %85 = vmatpush.msra.mxu0 %v2157_v6  ;;  %105 = vmatpush.msra.mxu1 %v2162_v7  ;;  %v2203_v14 = vld [vmem:[%s4273_s1 + $0x1b8] sm:$0xff]  ;;  %v2215_v16 = vld [vmem:[%s4273_s1 + $0x168] sm:$0xff]  ;;  %v2222_v17 = vld [vmem:[%s4273_s1 + $0x170] sm:$0xff] }
   0x7   :  { %125 = vmatpush.msra.mxu2 %v2169_v8  ;;  %144 = vmatpush.msra.mxu3 %v2191_v12  ;;  %v2227_v18 = vld [vmem:[%s4273_s1 + $0x198] sm:$0xff]  ;;  %v2234_v19 = vld [vmem:[%s4273_s1 + $0x140] sm:$0xff]  ;;  %v2239_v20 = vld [vmem:[%s4273_s1 + $0x148] sm:$0xff] }
   0x8   :  { %86 = vmatpush.msra.mxu0 %v2181_v10  ;;  %106 = vmatpush.msra.mxu1 %v2186_v11  ;;  %v2246_v21 = vld [vmem:[%s4273_s1 + $0x150] sm:$0xff]  ;;  %v2251_v22 = vld [vmem:[%s4273_s1 + $0x178] sm:$0xff]  ;;  %v2258_v23 = vld [vmem:[%s4273_s1 + $0x120] sm:$0xff] }
   0x9   :  { %126 = vmatpush.msra.mxu2 %v2198_v13  ;;  %145 = vmatpush.msra.mxu3 %v2203_v14  ;;  %v2263_v24 = vld [vmem:[%s4273_s1 + $0x128] sm:$0xff]  ;;  %v2270_v25 = vld [vmem:[%s4273_s1 + $0x130] sm:$0xff]  ;;  %v2275_v26 = vld [vmem:[%s4273_s1 + $0x158] sm:$0xff] }
   0xa   :  { %87 = vmatpush.msra.mxu0 %v2210_v15  ;;  %107 = vmatpush.msra.mxu1 %v2215_v16  ;;  %v2282_v27 = vld [vmem:[%s4273_s1 + $0x100] sm:$0xff]  ;;  %v2287_v28 = vld [vmem:[%s4273_s1 + $0x108] sm:$0xff]  ;;  %v2294_v29 = vld [vmem:[%s4273_s1 + $0x110] sm:$0xff] }
   0xb   :  { %127 = vmatpush.msra.mxu2 %v2222_v17  ;;  %146 = vmatpush.msra.mxu3 %v2227_v18  ;;  %v2299_v30 = vld [vmem:[%s4273_s1 + $0x138] sm:$0xff]  ;;  %v2306_v31 = vld [vmem:[%s4273_s1 + $0xe0] sm:$0xff]  ;;  %v2311_v32 = vld [vmem:[%s4273_s1 + $0xe8] sm:$0xff] }
   0xc   :  { %88 = vmatpush.msra.mxu0 %v2234_v19  ;;  %108 = vmatpush.msra.mxu1 %v2239_v20  ;;  %v2318_v33 = vld [vmem:[%s4273_s1 + $0xf0] sm:$0xff]  ;;  %v2323_v34 = vld [vmem:[%s4273_s1 + $0x118] sm:$0xff]  ;;  %v2330_v35 = vld [vmem:[%s4273_s1 + $0xc0] sm:$0xff] }
   0xd   :  { %128 = vmatpush.msra.mxu2 %v2246_v21  ;;  %147 = vmatpush.msra.mxu3 %v2251_v22  ;;  %v2335_v36 = vld [vmem:[%s4273_s1 + $0xc8] sm:$0xff]  ;;  %v2342_v37 = vld [vmem:[%s4273_s1 + $0xd0] sm:$0xff]  ;;  %v2347_v38 = vld [vmem:[%s4273_s1 + $0xf8] sm:$0xff] }
   0xe   :  { %89 = vmatpush.msra.mxu0 %v2258_v23  ;;  %109 = vmatpush.msra.mxu1 %v2263_v24  ;;  %v2354_v39 = vld [vmem:[%s4273_s1 + $0xa0] sm:$0xff]  ;;  %v2359_v40 = vld [vmem:[%s4273_s1 + $0xa8] sm:$0xff]  ;;  %v2366_v41 = vld [vmem:[%s4273_s1 + $0xb0] sm:$0xff] }
   0xf   :  { %129 = vmatpush.msra.mxu2 %v2270_v25  ;;  %148 = vmatpush.msra.mxu3 %v2275_v26  ;;  %v2371_v42 = vld [vmem:[%s4273_s1 + $0xd8] sm:$0xff]  ;;  %v2378_v43 = vld [vmem:[%s4273_s1 + $0x80] sm:$0xff]  ;;  %v2383_v44 = vld [vmem:[%s4273_s1 + $0x88] sm:$0xff] }
  0x10   :  { %90 = vmatpush.msra.mxu0 %v2282_v27  ;;  %110 = vmatpush.msra.mxu1 %v2287_v28  ;;  %4396 = vst [vmem:[#allocation5_spill] sm:$0xff] %v2378_v43  ;;  %v2390_v45 = vld [vmem:[%s4273_s1 + $0x90] sm:$0xff]  ;;  %v2395_v46 = vld [vmem:[%s4273_s1 + $0xb8] sm:$0xff] }
  0x11   :  { %130 = vmatpush.msra.mxu2 %v2294_v29  ;;  %149 = vmatpush.msra.mxu3 %v2299_v30  ;;  %4397 = vst [vmem:[#allocation6_spill] sm:$0xff] %v2383_v44 }
  0x12   :  { %91 = vmatpush.msra.mxu0 %v2306_v31  ;;  %111 = vmatpush.msra.mxu1 %v2311_v32  ;;  %4398 = vst [vmem:[#allocation7_spill] sm:$0xff] %v2390_v45 }
  0x13   :  { %131 = vmatpush.msra.mxu2 %v2318_v33  ;;  %150 = vmatpush.msra.mxu3 %v2323_v34 }
  0x14   :  { %92 = vmatpush.msra.mxu0 %v2330_v35  ;;  %112 = vmatpush.msra.mxu1 %v2335_v36 }
  0x15   :  { %132 = vmatpush.msra.mxu2 %v2342_v37  ;;  %151 = vmatpush.msra.mxu3 %v2347_v38 }
  0x16   :  { %93 = vmatpush.msra.mxu0 %v2354_v39  ;;  %113 = vmatpush.msra.mxu1 %v2359_v40 }
  0x17   :  { %7 = vsyncpa [#allocation3], 0  ;;  %133 = vmatpush.msra.mxu2 %v2366_v41  ;;  %152 = vmatpush.msra.mxu3 %v2371_v42  ;;  %v2402_v47 = vld [vmem:[%s4273_s1 + $0x60] sm:$0xff]  ;;  %v2407_v48 = vld [vmem:[%s4273_s1 + $0x68] sm:$0xff]  ;;  %v2104_v63 = vmov 0.0   ;;  %s1719_s10 = sshll.u32 %s4274_s2, 4  ;;  %s1720_s10 = int_to_ptr.hbm [resolvable:$true] %s1719_s10 }
  0x18   :  { %4399 = vst [vmem:[#allocation8_spill] sm:$0xff] %v2402_v47  ;;  %94 = vmatpush.msra.mxu0 %v2378_v43  ;;  %114 = vmatpush.msra.mxu1 %v2383_v44  ;;  %v2414_v49 = vld [vmem:[%s4273_s1 + $0x70] sm:$0xff]  ;;  %v2419_v50 = vld [vmem:[%s4273_s1 + $0x98] sm:$0xff]  ;;  %v2426_v51 = vld [vmem:[%s4273_s1 + $0x40] sm:$0xff] }
  0x19   :  { %4400 = vst [vmem:[#allocation9_spill] sm:$0xff] %v2407_v48  ;;  %134 = vmatpush.msra.mxu2 %v2390_v45  ;;  %153 = vmatpush.msra.mxu3 %v2395_v46  ;;  %v2431_v52 = vld [vmem:[%s4273_s1 + $0x48] sm:$0xff]  ;;  %v2438_v53 = vld [vmem:[%s4273_s1 + $0x50] sm:$0xff]  ;;  %v2443_v54 = vld [vmem:[%s4273_s1 + $0x78] sm:$0xff] }
  0x1a   :  { %4401 = vst [vmem:[#allocation10_spill] sm:$0xff] %v2414_v49  ;;  %95 = vmatpush.msra.mxu0 %v2402_v47  ;;  %115 = vmatpush.msra.mxu1 %v2407_v48  ;;  %v2450_v55 = vld [vmem:[%s4273_s1 + $0x20] sm:$0xff]  ;;  %v2455_v56 = vld [vmem:[%s4273_s1 + $0x28] sm:$0xff]  ;;  %v2462_v57 = vld [vmem:[%s4273_s1 + $0x30] sm:$0xff] }
  0x1b   :  { %4402 = vst [vmem:[#allocation11_spill] sm:$0xff] %v2419_v50  ;;  %135 = vmatpush.msra.mxu2 %v2414_v49  ;;  %154 = vmatpush.msra.mxu3 %v2419_v50  ;;  %v2467_v58 = vld [vmem:[%s4273_s1 + $0x58] sm:$0xff]  ;;  %v2474_v59 = vld [vmem:[%s4273_s1] sm:$0xff]  ;;  %v2479_v60 = vld [vmem:[%s4273_s1 + $0x8] sm:$0xff] }
  0x1c   :  { %4403 = vst [vmem:[#allocation12_spill] sm:$0xff] %v2426_v51  ;;  %96 = vmatpush.msra.mxu0 %v2426_v51  ;;  %116 = vmatpush.msra.mxu1 %v2431_v52  ;;  %v2486_v61 = vld [vmem:[%s4273_s1 + $0x10] sm:$0xff]  ;;  %v2495_v62 = vld [vmem:[%s4273_s1 + $0x38] sm:$0xff] }
  0x1d   :  { %4404 = vst [vmem:[#allocation13_spill] sm:$0xff] %v2431_v52  ;;  %136 = vmatpush.msra.mxu2 %v2438_v53  ;;  %155 = vmatpush.msra.mxu3 %v2443_v54 }
  0x1e   :  { %4405 = vst [vmem:[#allocation14_spill] sm:$0xff] %v2438_v53  ;;  %97 = vmatpush.msra.mxu0 %v2450_v55  ;;  %117 = vmatpush.msra.mxu1 %v2455_v56 }
  0x1f   :  { %4406 = vst [vmem:[#allocation15_spill] sm:$0xff] %v2443_v54  ;;  %137 = vmatpush.msra.mxu2 %v2462_v57  ;;  %156 = vmatpush.msra.mxu3 %v2467_v58 }
  0x20   :  { %4407 = vst [vmem:[#allocation16_spill] sm:$0xff] %v2450_v55  ;;  %98 = vmatpush.msra.mxu0 %v2474_v59  ;;  %118 = vmatpush.msra.mxu1 %v2479_v60 }
  0x21   :  { %4408 = vst [vmem:[#allocation17_spill] sm:$0xff] %v2455_v56  ;;  %138 = vmatpush.msra.mxu2 %v2486_v61  ;;  %99 = vmatmul.f32.vlgmr.msra.gmra.mxu0 %v2104_v63 }
  0x22   :  { %4409 = vst [vmem:[#allocation18_spill] sm:$0xff] %v2462_v57  ;;  %119 = vmatmul.f32.vlgmr.msra.gmra.mxu1 %v2104_v63  ;;  %139 = vmatmul.f32.vlgmr.msra.gmra.mxu2 %v2104_v63  ;;  %v2501_v57 = vld [vmem:[%s4273_s1 + $0x18] sm:$0xff] }
  0x23   :  { %4410 = vst [vmem:[#allocation19_spill] sm:$0xff] %v2467_v58  ;;  %157 = vmatpush.msra.mxu3 %v2495_v62  ;;  %192 = vmatpush.msrb.mxu0 %v2124_v0 }
  0x24   :  { %4411 = vst [vmem:[#allocation20_spill] sm:$0xff] %v2474_v59  ;;  %212 = vmatpush.msrb.mxu1 %v2129_v1  ;;  %232 = vmatpush.msrb.mxu2 %v2134_v2 }
  0x25   :  { %4412 = vst [vmem:[#allocation21_spill] sm:$0xff] %v2479_v60  ;;  %158 = vmatpush.msra.mxu3 %v2501_v57  ;;  %193 = vmatpush.msrb.mxu0 %v2141_v3 }
  0x26   :  { %4413 = vst [vmem:[#allocation22_spill] sm:$0xff] %v2486_v61  ;;  %159 = vmatmul.f32.vlgmr.msra.gmra.mxu3 %v2104_v63  ;;  %213 = vmatpush.msrb.mxu1 %v2146_v4 }
  0x27   :  { %4414 = vst [vmem:[#allocation23_spill] sm:$0xff] %v2495_v62  ;;  %252 = vmatpush.msrb.mxu3 %v2174_v9  ;;  %233 = vmatpush.msrb.mxu2 %v2151_v5 }
  0x28   :  { %4415 = vst [vmem:[#allocation24_spill] sm:$0xff] %v2501_v57  ;;  %194 = vmatpush.msrb.mxu0 %v2157_v6  ;;  %214 = vmatpush.msrb.mxu1 %v2162_v7 }
  0x29   :  { %253 = vmatpush.msrb.mxu3 %v2191_v12  ;;  %234 = vmatpush.msrb.mxu2 %v2169_v8  ;;  %v4416_v63 = vld [vmem:[#allocation18_spill] sm:$0xff] }
  0x2a   :  { %195 = vmatpush.msrb.mxu0 %v2181_v10  ;;  %215 = vmatpush.msrb.mxu1 %v2186_v11 }
  0x2b   :  { %254 = vmatpush.msrb.mxu3 %v2203_v14  ;;  %235 = vmatpush.msrb.mxu2 %v2198_v13 }
  0x2c   :  { %196 = vmatpush.msrb.mxu0 %v2210_v15  ;;  %216 = vmatpush.msrb.mxu1 %v2215_v16 }
  0x2d   :  { %255 = vmatpush.msrb.mxu3 %v2227_v18  ;;  %236 = vmatpush.msrb.mxu2 %v2222_v17 }
  0x2e   :  { %197 = vmatpush.msrb.mxu0 %v2234_v19  ;;  %217 = vmatpush.msrb.mxu1 %v2239_v20 }
  0x2f   :  { %256 = vmatpush.msrb.mxu3 %v2251_v22  ;;  %237 = vmatpush.msrb.mxu2 %v2246_v21 }
  0x30   :  { %198 = vmatpush.msrb.mxu0 %v2258_v23  ;;  %218 = vmatpush.msrb.mxu1 %v2263_v24 }
  0x31   :  { %257 = vmatpush.msrb.mxu3 %v2275_v26  ;;  %238 = vmatpush.msrb.mxu2 %v2270_v25 }
  0x32   :  { %199 = vmatpush.msrb.mxu0 %v2282_v27  ;;  %219 = vmatpush.msrb.mxu1 %v2287_v28 }
  0x33   :  { %258 = vmatpush.msrb.mxu3 %v2299_v30  ;;  %239 = vmatpush.msrb.mxu2 %v2294_v29 }
  0x34   :  { %200 = vmatpush.msrb.mxu0 %v2306_v31  ;;  %220 = vmatpush.msrb.mxu1 %v2311_v32 }
  0x35   :  { %259 = vmatpush.msrb.mxu3 %v2323_v34  ;;  %240 = vmatpush.msrb.mxu2 %v2318_v33 }
  0x36   :  { %201 = vmatpush.msrb.mxu0 %v2330_v35  ;;  %221 = vmatpush.msrb.mxu1 %v2335_v36 }
  0x37   :  { %260 = vmatpush.msrb.mxu3 %v2347_v38  ;;  %241 = vmatpush.msrb.mxu2 %v2342_v37 }
  0x38   :  { %202 = vmatpush.msrb.mxu0 %v2354_v39  ;;  %222 = vmatpush.msrb.mxu1 %v2359_v40 }
  0x39   :  { %261 = vmatpush.msrb.mxu3 %v2371_v42  ;;  %242 = vmatpush.msrb.mxu2 %v2366_v41 }
  0x3a   :  { %203 = vmatpush.msrb.mxu0 %v2378_v43  ;;  %223 = vmatpush.msrb.mxu1 %v2383_v44 }
  0x3b   :  { %262 = vmatpush.msrb.mxu3 %v2395_v46  ;;  %243 = vmatpush.msrb.mxu2 %v2390_v45 }
  0x3c   :  { %204 = vmatpush.msrb.mxu0 %v2402_v47  ;;  %224 = vmatpush.msrb.mxu1 %v2407_v48 }
  0x3d   :  { %263 = vmatpush.msrb.mxu3 %v2419_v50  ;;  %244 = vmatpush.msrb.mxu2 %v2414_v49 }
  0x3e   :  { %205 = vmatpush.msrb.mxu0 %v2426_v51  ;;  %225 = vmatpush.msrb.mxu1 %v2431_v52 }
  0x3f   :  { %264 = vmatpush.msrb.mxu3 %v2443_v54  ;;  %245 = vmatpush.msrb.mxu2 %v2438_v53 }
  0x40   :  { %206 = vmatpush.msrb.mxu0 %v2450_v55  ;;  %226 = vmatpush.msrb.mxu1 %v2455_v56 }
  0x41   :  { %265 = vmatpush.msrb.mxu3 %v2467_v58  ;;  %246 = vmatpush.msrb.mxu2 %v4416_v63 }
  0x42   :  { %207 = vmatpush.msrb.mxu0 %v2474_v59  ;;  %227 = vmatpush.msrb.mxu1 %v2479_v60 }
  0x43   :  { %266 = vmatpush.msrb.mxu3 %v2495_v62  ;;  %247 = vmatpush.msrb.mxu2 %v2486_v61 }
  0x44   :  { %301 = vmatpush.msra.mxu0 %v2124_v0  ;;  %321 = vmatpush.msra.mxu1 %v2129_v1 }
  0x45   :  { %267 = vmatpush.msrb.mxu3 %v2501_v57  ;;  %341 = vmatpush.msra.mxu2 %v2134_v2 }
  0x46   :  { %302 = vmatpush.msra.mxu0 %v2141_v3  ;;  %322 = vmatpush.msra.mxu1 %v2146_v4 }
  0x47   :  { %361 = vmatpush.msra.mxu3 %v2174_v9  ;;  %342 = vmatpush.msra.mxu2 %v2151_v5 }
  0x48   :  { %303 = vmatpush.msra.mxu0 %v2157_v6  ;;  %323 = vmatpush.msra.mxu1 %v2162_v7 }
  0x49   :  { %362 = vmatpush.msra.mxu3 %v2191_v12  ;;  %343 = vmatpush.msra.mxu2 %v2169_v8 }
  0x4a   :  { %304 = vmatpush.msra.mxu0 %v2181_v10  ;;  %324 = vmatpush.msra.mxu1 %v2186_v11 }
  0x4b   :  { %363 = vmatpush.msra.mxu3 %v2203_v14  ;;  %344 = vmatpush.msra.mxu2 %v2198_v13 }
  0x4c   :  { %305 = vmatpush.msra.mxu0 %v2210_v15  ;;  %325 = vmatpush.msra.mxu1 %v2215_v16 }
  0x4d   :  { %364 = vmatpush.msra.mxu3 %v2227_v18  ;;  %345 = vmatpush.msra.mxu2 %v2222_v17 }
  0x4e   :  { %306 = vmatpush.msra.mxu0 %v2234_v19  ;;  %326 = vmatpush.msra.mxu1 %v2239_v20 }
  0x4f   :  { %365 = vmatpush.msra.mxu3 %v2251_v22  ;;  %346 = vmatpush.msra.mxu2 %v2246_v21 }
  0x50   :  { %307 = vmatpush.msra.mxu0 %v2258_v23  ;;  %327 = vmatpush.msra.mxu1 %v2263_v24 }
  0x51   :  { %366 = vmatpush.msra.mxu3 %v2275_v26  ;;  %347 = vmatpush.msra.mxu2 %v2270_v25 }
  0x52   :  { %308 = vmatpush.msra.mxu0 %v2282_v27  ;;  %328 = vmatpush.msra.mxu1 %v2287_v28 }
  0x53   :  { %367 = vmatpush.msra.mxu3 %v2299_v30  ;;  %348 = vmatpush.msra.mxu2 %v2294_v29 }
  0x54   :  { %309 = vmatpush.msra.mxu0 %v2306_v31  ;;  %329 = vmatpush.msra.mxu1 %v2311_v32 }
  0x55   :  { %368 = vmatpush.msra.mxu3 %v2323_v34  ;;  %349 = vmatpush.msra.mxu2 %v2318_v33 }
  0x56   :  { %310 = vmatpush.msra.mxu0 %v2330_v35  ;;  %330 = vmatpush.msra.mxu1 %v2335_v36 }
  0x57   :  { %369 = vmatpush.msra.mxu3 %v2347_v38  ;;  %350 = vmatpush.msra.mxu2 %v2342_v37 }
  0x58   :  { %311 = vmatpush.msra.mxu0 %v2354_v39  ;;  %331 = vmatpush.msra.mxu1 %v2359_v40 }
  0x59   :  { %370 = vmatpush.msra.mxu3 %v2371_v42  ;;  %351 = vmatpush.msra.mxu2 %v2366_v41 }
  0x5a   :  { %312 = vmatpush.msra.mxu0 %v2378_v43  ;;  %332 = vmatpush.msra.mxu1 %v2383_v44 }
  0x5b   :  { %371 = vmatpush.msra.mxu3 %v2395_v46  ;;  %352 = vmatpush.msra.mxu2 %v2390_v45 }
  0x5c   :  { %313 = vmatpush.msra.mxu0 %v2402_v47  ;;  %333 = vmatpush.msra.mxu1 %v2407_v48 }
  0x5d   :  { %372 = vmatpush.msra.mxu3 %v2419_v50  ;;  %353 = vmatpush.msra.mxu2 %v2414_v49 }
  0x5e   :  { %314 = vmatpush.msra.mxu0 %v2426_v51  ;;  %334 = vmatpush.msra.mxu1 %v2431_v52  ;;  %v18_v51 = vld [vmem:[%s4272_s0 + $0x18] sm:$0xff] }
  0x5f   :  { %373 = vmatpush.msra.mxu3 %v2443_v54  ;;  %354 = vmatpush.msra.mxu2 %v2438_v53 }
  0x60   :  { %315 = vmatpush.msra.mxu0 %v2450_v55  ;;  %335 = vmatpush.msra.mxu1 %v2455_v56  ;;  %v16_v56 = vld [vmem:[%s4272_s0 + $0x8] sm:$0xff] }
  0x61   :  { %374 = vmatpush.msra.mxu3 %v2467_v58  ;;  %355 = vmatpush.msra.mxu2 %v4416_v63  ;;  %v15_v58 = vld [vmem:[%s4272_s0] sm:$0xff] }
  0x62   :  { %316 = vmatpush.msra.mxu0 %v2474_v59  ;;  %336 = vmatpush.msra.mxu1 %v2479_v60 }
  0x63   :  { %375 = vmatpush.msra.mxu3 %v2495_v62  ;;  %356 = vmatpush.msra.mxu2 %v2486_v61  ;;  %v17_v61 = vld [vmem:[%s4272_s0 + $0x10] sm:$0xff] }
  0x65   :  { %376 = vmatpush.msra.mxu3 %v2501_v57 }
  0x9e   :  { %v100_v55 = vpop.f32.mrf.mxu0 }
  0x9f   :  { %v163_v63 = vadd.f32 %v100_v55, %v15_v58  ;;  %v120_v53 = vpop.f32.mrf.mxu1 }
  0xa0   :  { %v164_v62 = vadd.f32 %v120_v53, %v16_v56 }
  0xa1   :  { %v167_v52 = vmul.f32 0.5, %v163_v63 }
  0xa2   :  { %v171_v59 = vmul.f32 0.5, %v164_v62 }
  0xa3   :  { %1800 = vtanh.f32 %v167_v52 }
  0xa4   :  { %1802 = vtanh.f32 %v171_v59 }
  0xa5   :  { %v140_v57 = vpop.f32.mrf.mxu2 }
  0xa6   :  { %v165_v60 = vadd.f32 %v140_v57, %v17_v61 }
  0xa8   :  { %1804 = vtanh.f32 %v165_v60 }
  0xa9   :  { %v1801_v54 = vpop.eup %1800  ;;  %v160_v49 = vpop.f32.mrf.mxu3 }
  0xaa   :  { %v1803_v55 = vpop.eup %1802  ;;  %v169_v58 = vmul.f32 0.5, %v1801_v54  ;;  %v166_v53 = vadd.f32 %v160_v49, %v18_v51  ;;  %v4421_v49 = vld [vmem:[#allocation9_spill] sm:$0xff]  ;;  %v4422_v51 = vld [vmem:[#allocation10_spill] sm:$0xff]  ;;  %v4423_v54 = vld [vmem:[#allocation15_spill] sm:$0xff] }
  0xab   :  { %v173_v56 = vmul.f32 0.5, %v1803_v55  ;;  %v4424_v55 = vld [vmem:[#allocation12_spill] sm:$0xff] }
  0xac   :  { %v170_v62 = vadd.f32 0.5, %v169_v58  ;;  %v176_v52 = vmul.f32 0.5, %v166_v53  ;;  %v4425_v58 = vld [vmem:[#allocation13_spill] sm:$0xff]  ;;  %v4426_v53 = vld [vmem:[#allocation14_spill] sm:$0xff] }
  0xad   :  { %v174_v63 = vadd.f32 0.5, %v173_v56  ;;  %v4427_v56 = vld [vmem:[#allocation19_spill] sm:$0xff] }
  0xae   :  { %v1805_v48 = vpop.eup %1804  ;;  %1806 = vtanh.f32 %v176_v52  ;;  %v4429_v52 = vld [vmem:[#allocation17_spill] sm:$0xff] }
  0xaf   :  { %v180_v47 = vmul.f32 0.0, %v174_v63  ;;  %v181_v59 = vmul.f32 %v1805_v48, %v170_v62  ;;  %v4420_v48 = vld [vmem:[#allocation8_spill] sm:$0xff]  ;;  %v4430_v63 = vld [vmem:[#allocation18_spill] sm:$0xff] }
  0xb0   :  { %v4428_v62 = vld [vmem:[#allocation16_spill] sm:$0xff] }
  0xb1   :  { %v2645_v50 = vadd.f32 %v181_v59, %v180_v47  ;;  %v4419_v47 = vld [vmem:[#allocation11_spill] sm:$0xff] }
  0xb2   :  { %v4431_v59 = vld [vmem:[#allocation23_spill] sm:$0xff] }
  0xb3   :  { %1808 = vtanh.f32 %v2645_v50 }
  0xb4   :  { %v1807_v57 = vpop.eup %1806 }
  0xb5   :  { %v178_v61 = vmul.f32 0.5, %v1807_v57  ;;  %v4432_v57 = vld [vmem:[#allocation20_spill] sm:$0xff] }
  0xb7   :  { %v179_v60 = vadd.f32 0.5, %v178_v61  ;;  %v4433_v61 = vld [vmem:[#allocation21_spill] sm:$0xff] }
  0xb9   :  { %v1809_v45 = vpop.eup %1808 }
  0xba   :  { %v184_v44 = vmul.f32 %v1809_v45, %v179_v60  ;;  %v4418_v45 = vld [vmem:[#allocation7_spill] sm:$0xff]  ;;  %v4434_v60 = vld [vmem:[#allocation22_spill] sm:$0xff] }
  0xbc   :  { %208 = vmatmul.f32.vlgmr.msrb.gmra.mxu0 %v184_v44  ;;  %228 = vmatmul.f32.vlgmr.msrb.gmra.mxu1 %v184_v44 }
  0xbd   :  { %248 = vmatmul.f32.vlgmr.msrb.gmra.mxu2 %v184_v44  ;;  %268 = vmatmul.f32.vlgmr.msrb.gmra.mxu3 %v184_v44  ;;  %v4417_v44 = vld [vmem:[#allocation6_spill] sm:$0xff] }
  0xbe   :  { %410 = vmatpush.msrb.mxu0 %v2124_v0  ;;  %430 = vmatpush.msrb.mxu1 %v2129_v1 }
  0xbf   :  { %450 = vmatpush.msrb.mxu2 %v2134_v2  ;;  %470 = vmatpush.msrb.mxu3 %v2174_v9 }
  0xc0   :  { %411 = vmatpush.msrb.mxu0 %v2141_v3  ;;  %431 = vmatpush.msrb.mxu1 %v2146_v4 }
  0xc1   :  { %451 = vmatpush.msrb.mxu2 %v2151_v5  ;;  %471 = vmatpush.msrb.mxu3 %v2191_v12 }
  0xc2   :  { %412 = vmatpush.msrb.mxu0 %v2157_v6  ;;  %432 = vmatpush.msrb.mxu1 %v2162_v7 }
  0xc3   :  { %452 = vmatpush.msrb.mxu2 %v2169_v8  ;;  %472 = vmatpush.msrb.mxu3 %v2203_v14 }
  0xc4   :  { %413 = vmatpush.msrb.mxu0 %v2181_v10  ;;  %433 = vmatpush.msrb.mxu1 %v2186_v11 }
  0xc5   :  { %453 = vmatpush.msrb.mxu2 %v2198_v13  ;;  %473 = vmatpush.msrb.mxu3 %v2227_v18 }
  0xc6   :  { %414 = vmatpush.msrb.mxu0 %v2210_v15  ;;  %434 = vmatpush.msrb.mxu1 %v2215_v16 }
  0xc7   :  { %454 = vmatpush.msrb.mxu2 %v2222_v17  ;;  %474 = vmatpush.msrb.mxu3 %v2251_v22 }
  0xc8   :  { %415 = vmatpush.msrb.mxu0 %v2234_v19  ;;  %435 = vmatpush.msrb.mxu1 %v2239_v20 }
  0xc9   :  { %455 = vmatpush.msrb.mxu2 %v2246_v21  ;;  %475 = vmatpush.msrb.mxu3 %v2275_v26 }
  0xca   :  { %416 = vmatpush.msrb.mxu0 %v2258_v23  ;;  %436 = vmatpush.msrb.mxu1 %v2263_v24 }
  0xcb   :  { %456 = vmatpush.msrb.mxu2 %v2270_v25  ;;  %476 = vmatpush.msrb.mxu3 %v2299_v30 }
  0xcc   :  { %417 = vmatpush.msrb.mxu0 %v2282_v27  ;;  %437 = vmatpush.msrb.mxu1 %v2287_v28 }
  0xcd   :  { %457 = vmatpush.msrb.mxu2 %v2294_v29  ;;  %477 = vmatpush.msrb.mxu3 %v2323_v34 }
  0xce   :  { %418 = vmatpush.msrb.mxu0 %v2306_v31  ;;  %438 = vmatpush.msrb.mxu1 %v2311_v32 }
  0xcf   :  { %458 = vmatpush.msrb.mxu2 %v2318_v33  ;;  %478 = vmatpush.msrb.mxu3 %v2347_v38 }
  0xd0   :  { %419 = vmatpush.msrb.mxu0 %v2330_v35  ;;  %439 = vmatpush.msrb.mxu1 %v2335_v36 }
  0xd1   :  { %459 = vmatpush.msrb.mxu2 %v2342_v37  ;;  %479 = vmatpush.msrb.mxu3 %v2371_v42 }
  0xd2   :  { %420 = vmatpush.msrb.mxu0 %v2354_v39  ;;  %440 = vmatpush.msrb.mxu1 %v2359_v40 }
  0xd3   :  { %460 = vmatpush.msrb.mxu2 %v2366_v41  ;;  %480 = vmatpush.msrb.mxu3 %v2395_v46 }
  0xd4   :  { %421 = vmatpush.msrb.mxu0 %v2378_v43  ;;  %441 = vmatpush.msrb.mxu1 %v4417_v44 }
  0xd5   :  { %461 = vmatpush.msrb.mxu2 %v4418_v45  ;;  %481 = vmatpush.msrb.mxu3 %v4419_v47 }
  0xd6   :  { %422 = vmatpush.msrb.mxu0 %v4420_v48  ;;  %442 = vmatpush.msrb.mxu1 %v4421_v49 }
  0xd7   :  { %462 = vmatpush.msrb.mxu2 %v4422_v51  ;;  %482 = vmatpush.msrb.mxu3 %v4423_v54 }
  0xd8   :  { %423 = vmatpush.msrb.mxu0 %v4424_v55  ;;  %443 = vmatpush.msrb.mxu1 %v4425_v58  ;;  %v4435_v55 = vld [vmem:[#allocation24_spill] sm:$0xff] }
  0xd9   :  { %463 = vmatpush.msrb.mxu2 %v4426_v53  ;;  %483 = vmatpush.msrb.mxu3 %v4427_v56  ;;  %v1742_v56 = vld [vmem:[%s4272_s0 + $0x20] sm:$0xff] }
  0xda   :  { %424 = vmatpush.msrb.mxu0 %v4428_v62  ;;  %444 = vmatpush.msrb.mxu1 %v4429_v52  ;;  %v1743_v52 = vld [vmem:[%s4272_s0 + $0x28] sm:$0xff] }
  0xdb   :  { %464 = vmatpush.msrb.mxu2 %v4430_v63  ;;  %484 = vmatpush.msrb.mxu3 %v4431_v59 }
  0xdc   :  { %425 = vmatpush.msrb.mxu0 %v4432_v57  ;;  %445 = vmatpush.msrb.mxu1 %v4433_v61 }
  0xdd   :  { %465 = vmatpush.msrb.mxu2 %v4434_v60  ;;  %485 = vmatpush.msrb.mxu3 %v4435_v55  ;;  %v1744_v60 = vld [vmem:[%s4272_s0 + $0x30] sm:$0xff]  ;;  %v1745_v55 = vld [vmem:[%s4272_s0 + $0x38] sm:$0xff] }
 0x139   :  { %v209_v62 = vpop.f32.mrf.mxu0  ;;  %v229_v63 = vpop.f32.mrf.mxu1 }
 0x13a   :  { %v272_v53 = vadd.f32 %v1742_v56, %v209_v62  ;;  %v273_v59 = vadd.f32 %v1743_v52, %v229_v63 }
 0x13c   :  { %v276_v58 = vmul.f32 0.5, %v272_v53  ;;  %v280_v57 = vmul.f32 0.5, %v273_v59 }
 0x13e   :  { %1810 = vtanh.f32 %v276_v58 }
 0x13f   :  { %1812 = vtanh.f32 %v280_v57 }
 0x140   :  { %v249_v61 = vpop.f32.mrf.mxu2  ;;  %v269_v54 = vpop.f32.mrf.mxu3 }
 0x141   :  { %v274_v51 = vadd.f32 %v1744_v60, %v249_v61  ;;  %v275_v49 = vadd.f32 %v1745_v55, %v269_v54  ;;  %v4441_v55 = vld [vmem:[#allocation9_spill] sm:$0xff]  ;;  %v4442_v61 = vld [vmem:[#allocation10_spill] sm:$0xff]  ;;  %v4443_v60 = vld [vmem:[#allocation15_spill] sm:$0xff] }
 0x143   :  { %1814 = vtanh.f32 %v274_v51  ;;  %v285_v48 = vmul.f32 0.5, %v275_v49 }
 0x144   :  { %v1811_v56 = vpop.eup %1810 }
 0x145   :  { %v1813_v62 = vpop.eup %1812  ;;  %v278_v53 = vmul.f32 0.5, %v1811_v56  ;;  %1816 = vtanh.f32 %v285_v48  ;;  %v4440_v48 = vld [vmem:[#allocation8_spill] sm:$0xff] }
 0x146   :  { %v282_v52 = vmul.f32 0.5, %v1813_v62  ;;  %v4444_v56 = vld [vmem:[#allocation12_spill] sm:$0xff]  ;;  %v4445_v62 = vld [vmem:[#allocation13_spill] sm:$0xff] }
 0x147   :  { %v279_v58 = vadd.f32 0.5, %v278_v53  ;;  %v4446_v53 = vld [vmem:[#allocation14_spill] sm:$0xff] }
 0x148   :  { %v283_v63 = vadd.f32 0.5, %v282_v52  ;;  %v4447_v52 = vld [vmem:[#allocation19_spill] sm:$0xff] }
 0x149   :  { %v1815_v59 = vpop.eup %1814 }
 0x14a   :  { %v289_v47 = vmul.f32 %v283_v63, %v2645_v50  ;;  %v290_v45 = vmul.f32 %v1815_v59, %v279_v58  ;;  %v4436_v50 = vld [vmem:[#allocation5_spill] sm:$0xff]  ;;  %v4448_v58 = vld [vmem:[#allocation16_spill] sm:$0xff]  ;;  %v4450_v59 = vld [vmem:[#allocation18_spill] sm:$0xff] }
 0x14b   :  { %v1817_v44 = vpop.eup %1816  ;;  %v4449_v63 = vld [vmem:[#allocation17_spill] sm:$0xff] }
 0x14c   :  { %v2725_v43 = vadd.f32 %v290_v45, %v289_v47  ;;  %v287_v57 = vmul.f32 0.5, %v1817_v44  ;;  %v4437_v44 = vld [vmem:[#allocation6_spill] sm:$0xff]  ;;  %v4438_v45 = vld [vmem:[#allocation7_spill] sm:$0xff] }
 0x14d   :  { %v4439_v47 = vld [vmem:[#allocation11_spill] sm:$0xff] }
 0x14e   :  { %1818 = vtanh.f32 %v2725_v43  ;;  %v288_v54 = vadd.f32 0.5, %v287_v57  ;;  %v4451_v57 = vld [vmem:[#allocation23_spill] sm:$0xff] }
 0x154   :  { %v1819_v51 = vpop.eup %1818 }
 0x155   :  { %v293_v49 = vmul.f32 %v1819_v51, %v288_v54  ;;  %v4452_v54 = vld [vmem:[#allocation20_spill] sm:$0xff]  ;;  %v4453_v51 = vld [vmem:[#allocation21_spill] sm:$0xff] }
 0x157   :  { %317 = vmatmul.f32.vlgmr.msra.gmra.mxu0 %v293_v49  ;;  %337 = vmatmul.f32.vlgmr.msra.gmra.mxu1 %v293_v49 }
 0x158   :  { %357 = vmatmul.f32.vlgmr.msra.gmra.mxu2 %v293_v49  ;;  %377 = vmatmul.f32.vlgmr.msra.gmra.mxu3 %v293_v49  ;;  %v4454_v49 = vld [vmem:[#allocation22_spill] sm:$0xff] }
 0x159   :  { %519 = vmatpush.msra.mxu0 %v2124_v0  ;;  %539 = vmatpush.msra.mxu1 %v2129_v1 }
 0x15a   :  { %559 = vmatpush.msra.mxu2 %v2134_v2  ;;  %579 = vmatpush.msra.mxu3 %v2174_v9 }
 0x15b   :  { %520 = vmatpush.msra.mxu0 %v2141_v3  ;;  %540 = vmatpush.msra.mxu1 %v2146_v4 }
 0x15c   :  { %560 = vmatpush.msra.mxu2 %v2151_v5  ;;  %580 = vmatpush.msra.mxu3 %v2191_v12 }
 0x15d   :  { %521 = vmatpush.msra.mxu0 %v2157_v6  ;;  %541 = vmatpush.msra.mxu1 %v2162_v7 }
 0x15e   :  { %561 = vmatpush.msra.mxu2 %v2169_v8  ;;  %581 = vmatpush.msra.mxu3 %v2203_v14 }
 0x15f   :  { %522 = vmatpush.msra.mxu0 %v2181_v10  ;;  %542 = vmatpush.msra.mxu1 %v2186_v11 }
 0x160   :  { %562 = vmatpush.msra.mxu2 %v2198_v13  ;;  %582 = vmatpush.msra.mxu3 %v2227_v18 }
 0x161   :  { %523 = vmatpush.msra.mxu0 %v2210_v15  ;;  %543 = vmatpush.msra.mxu1 %v2215_v16 }
 0x162   :  { %563 = vmatpush.msra.mxu2 %v2222_v17  ;;  %583 = vmatpush.msra.mxu3 %v2251_v22 }
 0x163   :  { %524 = vmatpush.msra.mxu0 %v2234_v19  ;;  %544 = vmatpush.msra.mxu1 %v2239_v20 }
 0x164   :  { %564 = vmatpush.msra.mxu2 %v2246_v21  ;;  %584 = vmatpush.msra.mxu3 %v2275_v26 }
 0x165   :  { %525 = vmatpush.msra.mxu0 %v2258_v23  ;;  %545 = vmatpush.msra.mxu1 %v2263_v24 }
 0x166   :  { %565 = vmatpush.msra.mxu2 %v2270_v25  ;;  %585 = vmatpush.msra.mxu3 %v2299_v30 }
 0x167   :  { %526 = vmatpush.msra.mxu0 %v2282_v27  ;;  %546 = vmatpush.msra.mxu1 %v2287_v28 }
 0x168   :  { %566 = vmatpush.msra.mxu2 %v2294_v29  ;;  %586 = vmatpush.msra.mxu3 %v2323_v34 }
 0x169   :  { %527 = vmatpush.msra.mxu0 %v2306_v31  ;;  %547 = vmatpush.msra.mxu1 %v2311_v32 }
 0x16a   :  { %567 = vmatpush.msra.mxu2 %v2318_v33  ;;  %587 = vmatpush.msra.mxu3 %v2347_v38 }
 0x16b   :  { %528 = vmatpush.msra.mxu0 %v2330_v35  ;;  %548 = vmatpush.msra.mxu1 %v2335_v36 }
 0x16c   :  { %568 = vmatpush.msra.mxu2 %v2342_v37  ;;  %588 = vmatpush.msra.mxu3 %v2371_v42 }
 0x16d   :  { %529 = vmatpush.msra.mxu0 %v2354_v39  ;;  %549 = vmatpush.msra.mxu1 %v2359_v40 }
 0x16e   :  { %569 = vmatpush.msra.mxu2 %v2366_v41  ;;  %589 = vmatpush.msra.mxu3 %v2395_v46 }
 0x16f   :  { %530 = vmatpush.msra.mxu0 %v4436_v50  ;;  %550 = vmatpush.msra.mxu1 %v4437_v44 }
 0x170   :  { %570 = vmatpush.msra.mxu2 %v4438_v45  ;;  %590 = vmatpush.msra.mxu3 %v4439_v47 }
 0x171   :  { %531 = vmatpush.msra.mxu0 %v4440_v48  ;;  %551 = vmatpush.msra.mxu1 %v4441_v55 }
 0x172   :  { %571 = vmatpush.msra.mxu2 %v4442_v61  ;;  %591 = vmatpush.msra.mxu3 %v4443_v60 }
 0x173   :  { %532 = vmatpush.msra.mxu0 %v4444_v56  ;;  %552 = vmatpush.msra.mxu1 %v4445_v62  ;;  %v4455_v56 = vld [vmem:[#allocation24_spill] sm:$0xff] }
 0x174   :  { %572 = vmatpush.msra.mxu2 %v4446_v53  ;;  %592 = vmatpush.msra.mxu3 %v4447_v52  ;;  %v1746_v52 = vld [vmem:[%s4272_s0 + $0x40] sm:$0xff] }
 0x175   :  { %533 = vmatpush.msra.mxu0 %v4448_v58  ;;  %553 = vmatpush.msra.mxu1 %v4449_v63  ;;  %v1747_v63 = vld [vmem:[%s4272_s0 + $0x48] sm:$0xff] }
 0x176   :  { %573 = vmatpush.msra.mxu2 %v4450_v59  ;;  %593 = vmatpush.msra.mxu3 %v4451_v57 }
 0x177   :  { %534 = vmatpush.msra.mxu0 %v4452_v54  ;;  %554 = vmatpush.msra.mxu1 %v4453_v51 }
 0x178   :  { %574 = vmatpush.msra.mxu2 %v4454_v49  ;;  %594 = vmatpush.msra.mxu3 %v4455_v56  ;;  %v1748_v49 = vld [vmem:[%s4272_s0 + $0x50] sm:$0xff]  ;;  %v1749_v56 = vld [vmem:[%s4272_s0 + $0x58] sm:$0xff] }
 0x1d4   :  { %v318_v58 = vpop.f32.mrf.mxu0  ;;  %v338_v59 = vpop.f32.mrf.mxu1 }
 0x1d5   :  { %v381_v53 = vadd.f32 %v1746_v52, %v318_v58  ;;  %v382_v57 = vadd.f32 %v1747_v63, %v338_v59 }
 0x1d7   :  { %v385_v62 = vmul.f32 0.5, %v381_v53  ;;  %v389_v54 = vmul.f32 0.5, %v382_v57 }
 0x1d9   :  { %1820 = vtanh.f32 %v385_v62 }
 0x1da   :  { %1822 = vtanh.f32 %v389_v54 }
 0x1db   :  { %v358_v51 = vpop.f32.mrf.mxu2  ;;  %v378_v60 = vpop.f32.mrf.mxu3 }
 0x1dc   :  { %v383_v61 = vadd.f32 %v1748_v49, %v358_v51  ;;  %v384_v55 = vadd.f32 %v1749_v56, %v378_v60  ;;  %v2891_v51 = vld [vmem:[%s4273_s1 + $0x1e0] sm:$0xff]  ;;  %v2903_v49 = vld [vmem:[%s4273_s1 + $0x1f0] sm:$0xff] }
 0x1de   :  { %1824 = vtanh.f32 %v383_v61  ;;  %v394_v48 = vmul.f32 0.5, %v384_v55 }
 0x1df   :  { %v1821_v52 = vpop.eup %1820 }
 0x1e0   :  { %v1823_v58 = vpop.eup %1822  ;;  %v387_v53 = vmul.f32 0.5, %v1821_v52  ;;  %1826 = vtanh.f32 %v394_v48  ;;  %v2909_v52 = vld [vmem:[%s4273_s1 + $0x1f8] sm:$0xff] }
 0x1e1   :  { %v391_v63 = vmul.f32 0.5, %v1823_v58  ;;  %v2915_v58 = vld [vmem:[%s4273_s1 + $0x1c0] sm:$0xff] }
 0x1e2   :  { %v388_v62 = vadd.f32 0.5, %v387_v53  ;;  %v2921_v53 = vld [vmem:[%s4273_s1 + $0x1c8] sm:$0xff] }
 0x1e3   :  { %v392_v59 = vadd.f32 0.5, %v391_v63  ;;  %v2927_v63 = vld [vmem:[%s4273_s1 + $0x1d0] sm:$0xff] }
 0x1e4   :  { %v1825_v57 = vpop.eup %1824 }
 0x1e5   :  { %v398_v47 = vmul.f32 %v392_v59, %v2725_v43  ;;  %v399_v45 = vmul.f32 %v1825_v57, %v388_v62  ;;  %v2933_v62 = vld [vmem:[%s4273_s1 + $0x1d8] sm:$0xff]  ;;  %v2939_v59 = vld [vmem:[%s4273_s1 + $0x1a0] sm:$0xff]  ;;  %v2945_v57 = vld [vmem:[%s4273_s1 + $0x1a8] sm:$0xff] }
 0x1e6   :  { %v1827_v44 = vpop.eup %1826 }
 0x1e7   :  { %v2805_v50 = vadd.f32 %v399_v45, %v398_v47  ;;  %v396_v54 = vmul.f32 0.5, %v1827_v44 }
 0x1e9   :  { %1828 = vtanh.f32 %v2805_v50  ;;  %v397_v60 = vadd.f32 0.5, %v396_v54  ;;  %v2951_v54 = vld [vmem:[%s4273_s1 + $0x1b0] sm:$0xff] }
 0x1ef   :  { %v1829_v61 = vpop.eup %1828 }
 0x1f0   :  { %v402_v55 = vmul.f32 %v1829_v61, %v397_v60  ;;  %v2957_v60 = vld [vmem:[%s4273_s1 + $0x1b8] sm:$0xff]  ;;  %v2963_v61 = vld [vmem:[%s4273_s1 + $0x180] sm:$0xff] }
 0x1f2   :  { %426 = vmatmul.f32.vlgmr.msrb.gmra.mxu0 %v402_v55  ;;  %446 = vmatmul.f32.vlgmr.msrb.gmra.mxu1 %v402_v55 }
 0x1f3   :  { %466 = vmatmul.f32.vlgmr.msrb.gmra.mxu2 %v402_v55  ;;  %486 = vmatmul.f32.vlgmr.msrb.gmra.mxu3 %v402_v55  ;;  %v2969_v55 = vld [vmem:[%s4273_s1 + $0x188] sm:$0xff] }
 0x1f4   :  { %628 = vmatpush.msrb.mxu0 %v2124_v0  ;;  %648 = vmatpush.msrb.mxu1 %v2129_v1  ;;  %v4456_v0 = vld [vmem:[#allocation5_spill] sm:$0xff]  ;;  %v4457_v1 = vld [vmem:[#allocation6_spill] sm:$0xff] }
 0x1f5   :  { %668 = vmatpush.msrb.mxu2 %v2134_v2  ;;  %688 = vmatpush.msrb.mxu3 %v2174_v9  ;;  %v4458_v2 = vld [vmem:[#allocation7_spill] sm:$0xff]  ;;  %v4465_v9 = vld [vmem:[#allocation13_spill] sm:$0xff] }
 0x1f6   :  { %629 = vmatpush.msrb.mxu0 %v2141_v3  ;;  %649 = vmatpush.msrb.mxu1 %v2146_v4  ;;  %v4459_v3 = vld [vmem:[#allocation11_spill] sm:$0xff]  ;;  %v4460_v4 = vld [vmem:[#allocation8_spill] sm:$0xff] }
 0x1f7   :  { %669 = vmatpush.msrb.mxu2 %v2151_v5  ;;  %689 = vmatpush.msrb.mxu3 %v2191_v12  ;;  %v4461_v5 = vld [vmem:[#allocation9_spill] sm:$0xff]  ;;  %v4468_v12 = vld [vmem:[#allocation16_spill] sm:$0xff] }
 0x1f8   :  { %630 = vmatpush.msrb.mxu0 %v2157_v6  ;;  %650 = vmatpush.msrb.mxu1 %v2162_v7  ;;  %v4462_v6 = vld [vmem:[#allocation10_spill] sm:$0xff]  ;;  %v4463_v7 = vld [vmem:[#allocation15_spill] sm:$0xff] }
 0x1f9   :  { %670 = vmatpush.msrb.mxu2 %v2169_v8  ;;  %690 = vmatpush.msrb.mxu3 %v2203_v14  ;;  %v4464_v8 = vld [vmem:[#allocation12_spill] sm:$0xff]  ;;  %v4470_v14 = vld [vmem:[#allocation18_spill] sm:$0xff] }
 0x1fa   :  { %631 = vmatpush.msrb.mxu0 %v2181_v10  ;;  %651 = vmatpush.msrb.mxu1 %v2186_v11  ;;  %v4466_v10 = vld [vmem:[#allocation14_spill] sm:$0xff]  ;;  %v4467_v11 = vld [vmem:[#allocation19_spill] sm:$0xff] }
 0x1fb   :  { %671 = vmatpush.msrb.mxu2 %v2198_v13  ;;  %691 = vmatpush.msrb.mxu3 %v2227_v18  ;;  %v4469_v13 = vld [vmem:[#allocation17_spill] sm:$0xff]  ;;  %v4474_v18 = vld [vmem:[#allocation22_spill] sm:$0xff] }
 0x1fc   :  { %632 = vmatpush.msrb.mxu0 %v2210_v15  ;;  %652 = vmatpush.msrb.mxu1 %v2215_v16  ;;  %v4471_v15 = vld [vmem:[#allocation23_spill] sm:$0xff]  ;;  %v4472_v16 = vld [vmem:[#allocation20_spill] sm:$0xff] }
 0x1fd   :  { %672 = vmatpush.msrb.mxu2 %v2222_v17  ;;  %692 = vmatpush.msrb.mxu3 %v2251_v22  ;;  %v4473_v17 = vld [vmem:[#allocation21_spill] sm:$0xff] }
 0x1fe   :  { %633 = vmatpush.msrb.mxu0 %v2234_v19  ;;  %653 = vmatpush.msrb.mxu1 %v2239_v20  ;;  %v4475_v19 = vld [vmem:[#allocation24_spill] sm:$0xff] }
 0x1ff   :  { %673 = vmatpush.msrb.mxu2 %v2246_v21  ;;  %693 = vmatpush.msrb.mxu3 %v2275_v26  ;;  %v1750_v20 = vld [vmem:[%s4272_s0 + $0x60] sm:$0xff]  ;;  %v1751_v21 = vld [vmem:[%s4272_s0 + $0x68] sm:$0xff] }
 0x200   :  { %634 = vmatpush.msrb.mxu0 %v2258_v23  ;;  %654 = vmatpush.msrb.mxu1 %v2263_v24 }
 0x201   :  { %674 = vmatpush.msrb.mxu2 %v2270_v25  ;;  %694 = vmatpush.msrb.mxu3 %v2299_v30 }
 0x202   :  { %635 = vmatpush.msrb.mxu0 %v2282_v27  ;;  %655 = vmatpush.msrb.mxu1 %v2287_v28  ;;  %v1752_v28 = vld [vmem:[%s4272_s0 + $0x70] sm:$0xff] }
 0x203   :  { %675 = vmatpush.msrb.mxu2 %v2294_v29  ;;  %695 = vmatpush.msrb.mxu3 %v2323_v34  ;;  %v1753_v29 = vld [vmem:[%s4272_s0 + $0x78] sm:$0xff] }
 0x204   :  { %636 = vmatpush.msrb.mxu0 %v2306_v31  ;;  %656 = vmatpush.msrb.mxu1 %v2311_v32 }
 0x205   :  { %676 = vmatpush.msrb.mxu2 %v2318_v33  ;;  %696 = vmatpush.msrb.mxu3 %v2347_v38 }
 0x206   :  { %637 = vmatpush.msrb.mxu0 %v2330_v35  ;;  %657 = vmatpush.msrb.mxu1 %v2335_v36 }
 0x207   :  { %677 = vmatpush.msrb.mxu2 %v2342_v37  ;;  %697 = vmatpush.msrb.mxu3 %v2371_v42 }
 0x208   :  { %638 = vmatpush.msrb.mxu0 %v2354_v39  ;;  %658 = vmatpush.msrb.mxu1 %v2359_v40 }
 0x209   :  { %678 = vmatpush.msrb.mxu2 %v2366_v41  ;;  %698 = vmatpush.msrb.mxu3 %v2395_v46 }
 0x20a   :  { %639 = vmatpush.msrb.mxu0 %v4456_v0  ;;  %659 = vmatpush.msrb.mxu1 %v4457_v1  ;;  %v2975_v0 = vld [vmem:[%s4273_s1 + $0x190] sm:$0xff]  ;;  %v2981_v1 = vld [vmem:[%s4273_s1 + $0x198] sm:$0xff] }
 0x20b   :  { %679 = vmatpush.msrb.mxu2 %v4458_v2  ;;  %699 = vmatpush.msrb.mxu3 %v4459_v3  ;;  %v2987_v2 = vld [vmem:[%s4273_s1 + $0x160] sm:$0xff]  ;;  %v2993_v3 = vld [vmem:[%s4273_s1 + $0x168] sm:$0xff] }
 0x20c   :  { %640 = vmatpush.msrb.mxu0 %v4460_v4  ;;  %660 = vmatpush.msrb.mxu1 %v4461_v5  ;;  %v2999_v4 = vld [vmem:[%s4273_s1 + $0x170] sm:$0xff]  ;;  %v3005_v5 = vld [vmem:[%s4273_s1 + $0x178] sm:$0xff] }
 0x20d   :  { %680 = vmatpush.msrb.mxu2 %v4462_v6  ;;  %700 = vmatpush.msrb.mxu3 %v4463_v7  ;;  %v3011_v6 = vld [vmem:[%s4273_s1 + $0x140] sm:$0xff]  ;;  %v3017_v7 = vld [vmem:[%s4273_s1 + $0x148] sm:$0xff] }
 0x20e   :  { %641 = vmatpush.msrb.mxu0 %v4464_v8  ;;  %661 = vmatpush.msrb.mxu1 %v4465_v9  ;;  %v3023_v8 = vld [vmem:[%s4273_s1 + $0x150] sm:$0xff]  ;;  %v3029_v9 = vld [vmem:[%s4273_s1 + $0x158] sm:$0xff] }
 0x20f   :  { %681 = vmatpush.msrb.mxu2 %v4466_v10  ;;  %701 = vmatpush.msrb.mxu3 %v4467_v11  ;;  %v3035_v10 = vld [vmem:[%s4273_s1 + $0x120] sm:$0xff]  ;;  %v3041_v11 = vld [vmem:[%s4273_s1 + $0x128] sm:$0xff] }
 0x210   :  { %642 = vmatpush.msrb.mxu0 %v4468_v12  ;;  %662 = vmatpush.msrb.mxu1 %v4469_v13  ;;  %v3047_v12 = vld [vmem:[%s4273_s1 + $0x130] sm:$0xff]  ;;  %v3053_v13 = vld [vmem:[%s4273_s1 + $0x138] sm:$0xff] }
 0x211   :  { %682 = vmatpush.msrb.mxu2 %v4470_v14  ;;  %702 = vmatpush.msrb.mxu3 %v4471_v15  ;;  %v3059_v14 = vld [vmem:[%s4273_s1 + $0x100] sm:$0xff]  ;;  %v3065_v15 = vld [vmem:[%s4273_s1 + $0x108] sm:$0xff] }
 0x212   :  { %643 = vmatpush.msrb.mxu0 %v4472_v16  ;;  %663 = vmatpush.msrb.mxu1 %v4473_v17  ;;  %v3071_v16 = vld [vmem:[%s4273_s1 + $0x110] sm:$0xff]  ;;  %v3077_v17 = vld [vmem:[%s4273_s1 + $0x118] sm:$0xff] }
 0x213   :  { %683 = vmatpush.msrb.mxu2 %v4474_v18  ;;  %703 = vmatpush.msrb.mxu3 %v4475_v19  ;;  %v3083_v18 = vld [vmem:[%s4273_s1 + $0xe0] sm:$0xff]  ;;  %v3089_v19 = vld [vmem:[%s4273_s1 + $0xe8] sm:$0xff] }
 0x26f   :  { %v427_v22 = vpop.f32.mrf.mxu0  ;;  %v447_v23 = vpop.f32.mrf.mxu1 }
 0x270   :  { %v490_v24 = vadd.f32 %v1750_v20, %v427_v22  ;;  %v491_v25 = vadd.f32 %v1751_v21, %v447_v23  ;;  %v3095_v20 = vld [vmem:[%s4273_s1 + $0xf0] sm:$0xff]  ;;  %v3101_v21 = vld [vmem:[%s4273_s1 + $0xf8] sm:$0xff]  ;;  %v3107_v22 = vld [vmem:[%s4273_s1 + $0xc0] sm:$0xff] }
 0x271   :  { %v3113_v23 = vld [vmem:[%s4273_s1 + $0xc8] sm:$0xff] }
 0x272   :  { %v494_v26 = vmul.f32 0.5, %v490_v24  ;;  %v498_v27 = vmul.f32 0.5, %v491_v25  ;;  %v3119_v24 = vld [vmem:[%s4273_s1 + $0xd0] sm:$0xff]  ;;  %v3125_v25 = vld [vmem:[%s4273_s1 + $0xd8] sm:$0xff] }
 0x274   :  { %1830 = vtanh.f32 %v494_v26  ;;  %v3131_v26 = vld [vmem:[%s4273_s1 + $0xa0] sm:$0xff] }
 0x275   :  { %1832 = vtanh.f32 %v498_v27  ;;  %v3137_v27 = vld [vmem:[%s4273_s1 + $0xa8] sm:$0xff] }
 0x276   :  { %v467_v30 = vpop.f32.mrf.mxu2  ;;  %v487_v31 = vpop.f32.mrf.mxu3 }
 0x277   :  { %v492_v32 = vadd.f32 %v1752_v28, %v467_v30  ;;  %v493_v33 = vadd.f32 %v1753_v29, %v487_v31  ;;  %v3143_v28 = vld [vmem:[%s4273_s1 + $0xb0] sm:$0xff]  ;;  %v3149_v29 = vld [vmem:[%s4273_s1 + $0xb8] sm:$0xff]  ;;  %v3155_v30 = vld [vmem:[%s4273_s1 + $0x80] sm:$0xff] }
 0x278   :  { %4476 = vst [vmem:[#allocation5_spill] sm:$0xff] %v3155_v30  ;;  %v3161_v31 = vld [vmem:[%s4273_s1 + $0x88] sm:$0xff] }
 0x279   :  { %1834 = vtanh.f32 %v492_v32  ;;  %v503_v34 = vmul.f32 0.5, %v493_v33  ;;  %4477 = vst [vmem:[#allocation6_spill] sm:$0xff] %v3161_v31  ;;  %v3167_v32 = vld [vmem:[%s4273_s1 + $0x90] sm:$0xff]  ;;  %v3173_v33 = vld [vmem:[%s4273_s1 + $0x98] sm:$0xff] }
 0x27a   :  { %v1831_v35 = vpop.eup %1830  ;;  %4478 = vst [vmem:[#allocation7_spill] sm:$0xff] %v3167_v32 }
 0x27b   :  { %v1833_v36 = vpop.eup %1832  ;;  %v496_v37 = vmul.f32 0.5, %v1831_v35  ;;  %1836 = vtanh.f32 %v503_v34  ;;  %4479 = vst [vmem:[#allocation11_spill] sm:$0xff] %v3173_v33  ;;  %v3179_v34 = vld [vmem:[%s4273_s1 + $0x60] sm:$0xff]  ;;  %v3185_v35 = vld [vmem:[%s4273_s1 + $0x68] sm:$0xff] }
 0x27c   :  { %v500_v38 = vmul.f32 0.5, %v1833_v36  ;;  %4480 = vst [vmem:[#allocation8_spill] sm:$0xff] %v3179_v34  ;;  %v3191_v36 = vld [vmem:[%s4273_s1 + $0x70] sm:$0xff] }
 0x27d   :  { %v497_v39 = vadd.f32 0.5, %v496_v37  ;;  %4481 = vst [vmem:[#allocation9_spill] sm:$0xff] %v3185_v35  ;;  %v3197_v37 = vld [vmem:[%s4273_s1 + $0x78] sm:$0xff] }
 0x27e   :  { %v501_v40 = vadd.f32 0.5, %v500_v38  ;;  %4482 = vst [vmem:[#allocation10_spill] sm:$0xff] %v3191_v36  ;;  %v3203_v38 = vld [vmem:[%s4273_s1 + $0x40] sm:$0xff] }
 0x27f   :  { %v1835_v41 = vpop.eup %1834  ;;  %4483 = vst [vmem:[#allocation15_spill] sm:$0xff] %v3197_v37 }
 0x280   :  { %v507_v42 = vmul.f32 %v501_v40, %v2805_v50  ;;  %v508_v43 = vmul.f32 %v1835_v41, %v497_v39  ;;  %v2897_v50 = vld [vmem:[%s4273_s1 + $0x1e8] sm:$0xff]  ;;  %4484 = vst [vmem:[#allocation12_spill] sm:$0xff] %v3203_v38  ;;  %v3215_v40 = vld [vmem:[%s4273_s1 + $0x50] sm:$0xff]  ;;  %v3221_v41 = vld [vmem:[%s4273_s1 + $0x58] sm:$0xff] }
 0x281   :  { %v1837_v46 = vpop.eup %1836  ;;  %v3209_v39 = vld [vmem:[%s4273_s1 + $0x48] sm:$0xff]  ;;  %4486 = vst [vmem:[#allocation14_spill] sm:$0xff] %v3215_v40 }
 0x282   :  { %v2885_v44 = vadd.f32 %v508_v43, %v507_v42  ;;  %v505_v45 = vmul.f32 0.5, %v1837_v46  ;;  %4485 = vst [vmem:[#allocation13_spill] sm:$0xff] %v3209_v39  ;;  %v3227_v42 = vld [vmem:[%s4273_s1 + $0x20] sm:$0xff]  ;;  %v3233_v43 = vld [vmem:[%s4273_s1 + $0x28] sm:$0xff]  ;;  %v3239_v46 = vld [vmem:[%s4273_s1 + $0x30] sm:$0xff] }
 0x283   :  { %4487 = vst [vmem:[#allocation19_spill] sm:$0xff] %v3221_v41 }
 0x284   :  { %1838 = vtanh.f32 %v2885_v44  ;;  %v506_v47 = vadd.f32 0.5, %v505_v45  ;;  %4488 = vst [vmem:[#allocation16_spill] sm:$0xff] %v3227_v42  ;;  %v3245_v45 = vld [vmem:[%s4273_s1 + $0x38] sm:$0xff] }
 0x285   :  { %4489 = vst [vmem:[#allocation17_spill] sm:$0xff] %v3233_v43 }
 0x286   :  { %4490 = vst [vmem:[#allocation18_spill] sm:$0xff] %v3239_v46 }
 0x287   :  { %4491 = vst [vmem:[#allocation23_spill] sm:$0xff] %v3245_v45 }
 0x28a   :  { %v1839_v48 = vpop.eup %1838 }
 0x28b   :  { %v511_v56 = vmul.f32 %v1839_v48, %v506_v47  ;;  %v3251_v47 = vld [vmem:[%s4273_s1] sm:$0xff]  ;;  %v3257_v48 = vld [vmem:[%s4273_s1 + $0x8] sm:$0xff] }
 0x28c   :  { %4492 = vst [vmem:[#allocation20_spill] sm:$0xff] %v3251_v47 }
 0x28d   :  { %535 = vmatmul.f32.vlgmr.msra.gmra.mxu0 %v511_v56  ;;  %555 = vmatmul.f32.vlgmr.msra.gmra.mxu1 %v511_v56  ;;  %4493 = vst [vmem:[#allocation21_spill] sm:$0xff] %v3257_v48 }
 0x28e   :  { %575 = vmatmul.f32.vlgmr.msra.gmra.mxu2 %v511_v56  ;;  %595 = vmatmul.f32.vlgmr.msra.gmra.mxu3 %v511_v56  ;;  %v3263_v56 = vld [vmem:[%s4273_s1 + $0x10] sm:$0xff] }
 0x28f   :  { %737 = vmatpush.msra.mxu0 %v2891_v51  ;;  %757 = vmatpush.msra.mxu1 %v2897_v50  ;;  %4494 = vst [vmem:[#allocation22_spill] sm:$0xff] %v3263_v56 }
 0x290   :  { %777 = vmatpush.msra.mxu2 %v2903_v49  ;;  %797 = vmatpush.msra.mxu3 %v2909_v52 }
 0x291   :  { %738 = vmatpush.msra.mxu0 %v2915_v58  ;;  %758 = vmatpush.msra.mxu1 %v2921_v53 }
 0x292   :  { %778 = vmatpush.msra.mxu2 %v2927_v63  ;;  %798 = vmatpush.msra.mxu3 %v2933_v62 }
 0x293   :  { %739 = vmatpush.msra.mxu0 %v2939_v59  ;;  %759 = vmatpush.msra.mxu1 %v2945_v57 }
 0x294   :  { %779 = vmatpush.msra.mxu2 %v2951_v54  ;;  %799 = vmatpush.msra.mxu3 %v2957_v60 }
 0x295   :  { %740 = vmatpush.msra.mxu0 %v2963_v61  ;;  %760 = vmatpush.msra.mxu1 %v2969_v55 }
 0x296   :  { %780 = vmatpush.msra.mxu2 %v2975_v0  ;;  %800 = vmatpush.msra.mxu3 %v2981_v1 }
 0x297   :  { %741 = vmatpush.msra.mxu0 %v2987_v2  ;;  %761 = vmatpush.msra.mxu1 %v2993_v3 }
 0x298   :  { %781 = vmatpush.msra.mxu2 %v2999_v4  ;;  %801 = vmatpush.msra.mxu3 %v3005_v5 }
 0x299   :  { %742 = vmatpush.msra.mxu0 %v3011_v6  ;;  %762 = vmatpush.msra.mxu1 %v3017_v7 }
 0x29a   :  { %782 = vmatpush.msra.mxu2 %v3023_v8  ;;  %802 = vmatpush.msra.mxu3 %v3029_v9 }
 0x29b   :  { %743 = vmatpush.msra.mxu0 %v3035_v10  ;;  %763 = vmatpush.msra.mxu1 %v3041_v11 }
 0x29c   :  { %783 = vmatpush.msra.mxu2 %v3047_v12  ;;  %803 = vmatpush.msra.mxu3 %v3053_v13 }
 0x29d   :  { %744 = vmatpush.msra.mxu0 %v3059_v14  ;;  %764 = vmatpush.msra.mxu1 %v3065_v15 }
 0x29e   :  { %784 = vmatpush.msra.mxu2 %v3071_v16  ;;  %804 = vmatpush.msra.mxu3 %v3077_v17 }
 0x29f   :  { %745 = vmatpush.msra.mxu0 %v3083_v18  ;;  %765 = vmatpush.msra.mxu1 %v3089_v19 }
 0x2a0   :  { %785 = vmatpush.msra.mxu2 %v3095_v20  ;;  %805 = vmatpush.msra.mxu3 %v3101_v21 }
 0x2a1   :  { %746 = vmatpush.msra.mxu0 %v3107_v22  ;;  %766 = vmatpush.msra.mxu1 %v3113_v23 }
 0x2a2   :  { %786 = vmatpush.msra.mxu2 %v3119_v24  ;;  %806 = vmatpush.msra.mxu3 %v3125_v25 }
 0x2a3   :  { %747 = vmatpush.msra.mxu0 %v3131_v26  ;;  %767 = vmatpush.msra.mxu1 %v3137_v27 }
 0x2a4   :  { %787 = vmatpush.msra.mxu2 %v3143_v28  ;;  %807 = vmatpush.msra.mxu3 %v3149_v29 }
 0x2a5   :  { %748 = vmatpush.msra.mxu0 %v3155_v30  ;;  %768 = vmatpush.msra.mxu1 %v3161_v31 }
 0x2a6   :  { %788 = vmatpush.msra.mxu2 %v3167_v32  ;;  %808 = vmatpush.msra.mxu3 %v3173_v33 }
 0x2a7   :  { %749 = vmatpush.msra.mxu0 %v3179_v34  ;;  %769 = vmatpush.msra.mxu1 %v3185_v35 }
 0x2a8   :  { %789 = vmatpush.msra.mxu2 %v3191_v36  ;;  %809 = vmatpush.msra.mxu3 %v3197_v37 }
 0x2a9   :  { %750 = vmatpush.msra.mxu0 %v3203_v38  ;;  %770 = vmatpush.msra.mxu1 %v3209_v39  ;;  %v1756_v39 = vld [vmem:[%s4272_s0 + $0x90] sm:$0xff] }
 0x2aa   :  { %790 = vmatpush.msra.mxu2 %v3215_v40  ;;  %810 = vmatpush.msra.mxu3 %v3221_v41 }
 0x2ab   :  { %751 = vmatpush.msra.mxu0 %v3227_v42  ;;  %771 = vmatpush.msra.mxu1 %v3233_v43 }
 0x2ac   :  { %791 = vmatpush.msra.mxu2 %v3239_v46  ;;  %811 = vmatpush.msra.mxu3 %v3245_v45  ;;  %v3269_v45 = vld [vmem:[%s4273_s1 + $0x18] sm:$0xff] }
 0x2ad   :  { %752 = vmatpush.msra.mxu0 %v3251_v47  ;;  %772 = vmatpush.msra.mxu1 %v3257_v48  ;;  %4495 = vst [vmem:[#allocation24_spill] sm:$0xff] %v3269_v45  ;;  %v1754_v47 = vld [vmem:[%s4272_s0 + $0x80] sm:$0xff]  ;;  %v1755_v48 = vld [vmem:[%s4272_s0 + $0x88] sm:$0xff] }
 0x2ae   :  { %792 = vmatpush.msra.mxu2 %v3263_v56  ;;  %812 = vmatpush.msra.mxu3 %v3269_v45  ;;  %v1757_v45 = vld [vmem:[%s4272_s0 + $0x98] sm:$0xff] }
 0x30a   :  { %v536_v46 = vpop.f32.mrf.mxu0  ;;  %v556_v43 = vpop.f32.mrf.mxu1 }
 0x30b   :  { %v599_v42 = vadd.f32 %v1754_v47, %v536_v46  ;;  %v600_v41 = vadd.f32 %v1755_v48, %v556_v43 }
 0x30d   :  { %v603_v56 = vmul.f32 0.5, %v599_v42  ;;  %v607_v40 = vmul.f32 0.5, %v600_v41 }
 0x30f   :  { %1840 = vtanh.f32 %v603_v56 }
 0x310   :  { %1842 = vtanh.f32 %v607_v40  ;;  %v4502_v40 = vld [vmem:[#allocation10_spill] sm:$0xff] }
 0x311   :  { %v576_v38 = vpop.f32.mrf.mxu2  ;;  %v596_v37 = vpop.f32.mrf.mxu3 }
 0x312   :  { %v601_v36 = vadd.f32 %v1756_v39, %v576_v38  ;;  %v602_v35 = vadd.f32 %v1757_v45, %v596_v37  ;;  %v4501_v39 = vld [vmem:[#allocation9_spill] sm:$0xff]  ;;  %v4503_v45 = vld [vmem:[#allocation15_spill] sm:$0xff] }
 0x314   :  { %1844 = vtanh.f32 %v601_v36  ;;  %v612_v34 = vmul.f32 0.5, %v602_v35 }
 0x315   :  { %v1841_v46 = vpop.eup %1840 }
 0x316   :  { %v1843_v43 = vpop.eup %1842  ;;  %v605_v42 = vmul.f32 0.5, %v1841_v46  ;;  %1846 = vtanh.f32 %v612_v34  ;;  %v4500_v34 = vld [vmem:[#allocation8_spill] sm:$0xff] }
 0x317   :  { %v609_v41 = vmul.f32 0.5, %v1843_v43  ;;  %v4504_v46 = vld [vmem:[#allocation12_spill] sm:$0xff]  ;;  %v4505_v43 = vld [vmem:[#allocation13_spill] sm:$0xff] }
 0x318   :  { %v606_v47 = vadd.f32 0.5, %v605_v42  ;;  %v4506_v42 = vld [vmem:[#allocation14_spill] sm:$0xff] }
 0x319   :  { %v610_v48 = vadd.f32 0.5, %v609_v41  ;;  %v4507_v41 = vld [vmem:[#allocation19_spill] sm:$0xff] }
 0x31a   :  { %v1845_v56 = vpop.eup %1844 }
 0x31b   :  { %v616_v33 = vmul.f32 %v610_v48, %v2885_v44  ;;  %v617_v32 = vmul.f32 %v1845_v56, %v606_v47  ;;  %v4496_v44 = vld [vmem:[#allocation5_spill] sm:$0xff]  ;;  %v4508_v47 = vld [vmem:[#allocation16_spill] sm:$0xff]  ;;  %v4510_v56 = vld [vmem:[#allocation18_spill] sm:$0xff] }
 0x31c   :  { %v1847_v31 = vpop.eup %1846  ;;  %v4509_v48 = vld [vmem:[#allocation17_spill] sm:$0xff] }
 0x31d   :  { %v3285_v30 = vadd.f32 %v617_v32, %v616_v33  ;;  %v614_v38 = vmul.f32 0.5, %v1847_v31  ;;  %v4497_v31 = vld [vmem:[#allocation6_spill] sm:$0xff]  ;;  %v4498_v32 = vld [vmem:[#allocation7_spill] sm:$0xff] }
 0x31e   :  { %v4499_v33 = vld [vmem:[#allocation11_spill] sm:$0xff] }
 0x31f   :  { %1848 = vtanh.f32 %v3285_v30  ;;  %v615_v37 = vadd.f32 0.5, %v614_v38  ;;  %v4511_v38 = vld [vmem:[#allocation23_spill] sm:$0xff] }
 0x325   :  { %v1849_v36 = vpop.eup %1848 }
 0x326   :  { %v620_v35 = vmul.f32 %v1849_v36, %v615_v37  ;;  %v4512_v37 = vld [vmem:[#allocation20_spill] sm:$0xff]  ;;  %v4513_v36 = vld [vmem:[#allocation21_spill] sm:$0xff] }
 0x328   :  { %644 = vmatmul.f32.vlgmr.msrb.gmra.mxu0 %v620_v35  ;;  %664 = vmatmul.f32.vlgmr.msrb.gmra.mxu1 %v620_v35 }
 0x329   :  { %684 = vmatmul.f32.vlgmr.msrb.gmra.mxu2 %v620_v35  ;;  %704 = vmatmul.f32.vlgmr.msrb.gmra.mxu3 %v620_v35  ;;  %v4514_v35 = vld [vmem:[#allocation22_spill] sm:$0xff] }
 0x32a   :  { %846 = vmatpush.msrb.mxu0 %v2891_v51  ;;  %866 = vmatpush.msrb.mxu1 %v2897_v50 }
 0x32b   :  { %886 = vmatpush.msrb.mxu2 %v2903_v49  ;;  %906 = vmatpush.msrb.mxu3 %v2909_v52 }
 0x32c   :  { %847 = vmatpush.msrb.mxu0 %v2915_v58  ;;  %867 = vmatpush.msrb.mxu1 %v2921_v53 }
 0x32d   :  { %887 = vmatpush.msrb.mxu2 %v2927_v63  ;;  %907 = vmatpush.msrb.mxu3 %v2933_v62 }
 0x32e   :  { %848 = vmatpush.msrb.mxu0 %v2939_v59  ;;  %868 = vmatpush.msrb.mxu1 %v2945_v57 }
 0x32f   :  { %888 = vmatpush.msrb.mxu2 %v2951_v54  ;;  %908 = vmatpush.msrb.mxu3 %v2957_v60 }
 0x330   :  { %849 = vmatpush.msrb.mxu0 %v2963_v61  ;;  %869 = vmatpush.msrb.mxu1 %v2969_v55 }
 0x331   :  { %889 = vmatpush.msrb.mxu2 %v2975_v0  ;;  %909 = vmatpush.msrb.mxu3 %v2981_v1 }
 0x332   :  { %850 = vmatpush.msrb.mxu0 %v2987_v2  ;;  %870 = vmatpush.msrb.mxu1 %v2993_v3 }
 0x333   :  { %890 = vmatpush.msrb.mxu2 %v2999_v4  ;;  %910 = vmatpush.msrb.mxu3 %v3005_v5 }
 0x334   :  { %851 = vmatpush.msrb.mxu0 %v3011_v6  ;;  %871 = vmatpush.msrb.mxu1 %v3017_v7 }
 0x335   :  { %891 = vmatpush.msrb.mxu2 %v3023_v8  ;;  %911 = vmatpush.msrb.mxu3 %v3029_v9 }
 0x336   :  { %852 = vmatpush.msrb.mxu0 %v3035_v10  ;;  %872 = vmatpush.msrb.mxu1 %v3041_v11 }
 0x337   :  { %892 = vmatpush.msrb.mxu2 %v3047_v12  ;;  %912 = vmatpush.msrb.mxu3 %v3053_v13 }
 0x338   :  { %853 = vmatpush.msrb.mxu0 %v3059_v14  ;;  %873 = vmatpush.msrb.mxu1 %v3065_v15 }
 0x339   :  { %893 = vmatpush.msrb.mxu2 %v3071_v16  ;;  %913 = vmatpush.msrb.mxu3 %v3077_v17 }
 0x33a   :  { %854 = vmatpush.msrb.mxu0 %v3083_v18  ;;  %874 = vmatpush.msrb.mxu1 %v3089_v19 }
 0x33b   :  { %894 = vmatpush.msrb.mxu2 %v3095_v20  ;;  %914 = vmatpush.msrb.mxu3 %v3101_v21 }
 0x33c   :  { %855 = vmatpush.msrb.mxu0 %v3107_v22  ;;  %875 = vmatpush.msrb.mxu1 %v3113_v23 }
 0x33d   :  { %895 = vmatpush.msrb.mxu2 %v3119_v24  ;;  %915 = vmatpush.msrb.mxu3 %v3125_v25 }
 0x33e   :  { %856 = vmatpush.msrb.mxu0 %v3131_v26  ;;  %876 = vmatpush.msrb.mxu1 %v3137_v27 }
 0x33f   :  { %896 = vmatpush.msrb.mxu2 %v3143_v28  ;;  %916 = vmatpush.msrb.mxu3 %v3149_v29 }
 0x340   :  { %857 = vmatpush.msrb.mxu0 %v4496_v44  ;;  %877 = vmatpush.msrb.mxu1 %v4497_v31 }
 0x341   :  { %897 = vmatpush.msrb.mxu2 %v4498_v32  ;;  %917 = vmatpush.msrb.mxu3 %v4499_v33 }
 0x342   :  { %858 = vmatpush.msrb.mxu0 %v4500_v34  ;;  %878 = vmatpush.msrb.mxu1 %v4501_v39 }
 0x343   :  { %898 = vmatpush.msrb.mxu2 %v4502_v40  ;;  %918 = vmatpush.msrb.mxu3 %v4503_v45 }
 0x344   :  { %859 = vmatpush.msrb.mxu0 %v4504_v46  ;;  %879 = vmatpush.msrb.mxu1 %v4505_v43  ;;  %v4515_v46 = vld [vmem:[#allocation24_spill] sm:$0xff] }
 0x345   :  { %899 = vmatpush.msrb.mxu2 %v4506_v42  ;;  %919 = vmatpush.msrb.mxu3 %v4507_v41  ;;  %v1758_v41 = vld [vmem:[%s4272_s0 + $0xa0] sm:$0xff] }
 0x346   :  { %860 = vmatpush.msrb.mxu0 %v4508_v47  ;;  %880 = vmatpush.msrb.mxu1 %v4509_v48  ;;  %v1759_v48 = vld [vmem:[%s4272_s0 + $0xa8] sm:$0xff] }
 0x347   :  { %900 = vmatpush.msrb.mxu2 %v4510_v56  ;;  %920 = vmatpush.msrb.mxu3 %v4511_v38 }
 0x348   :  { %861 = vmatpush.msrb.mxu0 %v4512_v37  ;;  %881 = vmatpush.msrb.mxu1 %v4513_v36 }
 0x349   :  { %901 = vmatpush.msrb.mxu2 %v4514_v35  ;;  %921 = vmatpush.msrb.mxu3 %v4515_v46  ;;  %v1760_v35 = vld [vmem:[%s4272_s0 + $0xb0] sm:$0xff]  ;;  %v1761_v46 = vld [vmem:[%s4272_s0 + $0xb8] sm:$0xff] }
 0x3a5   :  { %v645_v47 = vpop.f32.mrf.mxu0  ;;  %v665_v56 = vpop.f32.mrf.mxu1 }
 0x3a6   :  { %v708_v42 = vadd.f32 %v1758_v41, %v645_v47  ;;  %v709_v38 = vadd.f32 %v1759_v48, %v665_v56 }
 0x3a8   :  { %v712_v43 = vmul.f32 0.5, %v708_v42  ;;  %v716_v37 = vmul.f32 0.5, %v709_v38 }
 0x3aa   :  { %1850 = vtanh.f32 %v712_v43 }
 0x3ab   :  { %1852 = vtanh.f32 %v716_v37 }
 0x3ac   :  { %v685_v36 = vpop.f32.mrf.mxu2  ;;  %v705_v45 = vpop.f32.mrf.mxu3 }
 0x3ad   :  { %v710_v40 = vadd.f32 %v1760_v35, %v685_v36  ;;  %v711_v39 = vadd.f32 %v1761_v46, %v705_v45  ;;  %v4521_v46 = vld [vmem:[#allocation9_spill] sm:$0xff]  ;;  %v4522_v36 = vld [vmem:[#allocation10_spill] sm:$0xff]  ;;  %v4523_v35 = vld [vmem:[#allocation15_spill] sm:$0xff] }
 0x3af   :  { %1854 = vtanh.f32 %v710_v40  ;;  %v721_v34 = vmul.f32 0.5, %v711_v39 }
 0x3b0   :  { %v1851_v41 = vpop.eup %1850 }
 0x3b1   :  { %v1853_v47 = vpop.eup %1852  ;;  %v714_v42 = vmul.f32 0.5, %v1851_v41  ;;  %1856 = vtanh.f32 %v721_v34  ;;  %v4520_v34 = vld [vmem:[#allocation8_spill] sm:$0xff] }
 0x3b2   :  { %v718_v48 = vmul.f32 0.5, %v1853_v47  ;;  %v4524_v41 = vld [vmem:[#allocation12_spill] sm:$0xff]  ;;  %v4525_v47 = vld [vmem:[#allocation13_spill] sm:$0xff] }
 0x3b3   :  { %v715_v43 = vadd.f32 0.5, %v714_v42  ;;  %v4526_v42 = vld [vmem:[#allocation14_spill] sm:$0xff] }
 0x3b4   :  { %v719_v56 = vadd.f32 0.5, %v718_v48  ;;  %v4527_v48 = vld [vmem:[#allocation19_spill] sm:$0xff] }
 0x3b5   :  { %v1855_v38 = vpop.eup %1854 }
 0x3b6   :  { %v725_v33 = vmul.f32 %v719_v56, %v3285_v30  ;;  %v726_v32 = vmul.f32 %v1855_v38, %v715_v43  ;;  %v4516_v30 = vld [vmem:[#allocation5_spill] sm:$0xff]  ;;  %v4528_v43 = vld [vmem:[#allocation16_spill] sm:$0xff]  ;;  %v4530_v38 = vld [vmem:[#allocation18_spill] sm:$0xff] }
 0x3b7   :  { %v1857_v31 = vpop.eup %1856  ;;  %v4529_v56 = vld [vmem:[#allocation17_spill] sm:$0xff] }
 0x3b8   :  { %v3365_v44 = vadd.f32 %v726_v32, %v725_v33  ;;  %v723_v37 = vmul.f32 0.5, %v1857_v31  ;;  %v4517_v31 = vld [vmem:[#allocation6_spill] sm:$0xff]  ;;  %v4518_v32 = vld [vmem:[#allocation7_spill] sm:$0xff] }
 0x3b9   :  { %v4519_v33 = vld [vmem:[#allocation11_spill] sm:$0xff] }
 0x3ba   :  { %1858 = vtanh.f32 %v3365_v44  ;;  %v724_v45 = vadd.f32 0.5, %v723_v37  ;;  %v4531_v37 = vld [vmem:[#allocation23_spill] sm:$0xff] }
 0x3c0   :  { %v1859_v40 = vpop.eup %1858 }
 0x3c1   :  { %v729_v39 = vmul.f32 %v1859_v40, %v724_v45  ;;  %v4532_v45 = vld [vmem:[#allocation20_spill] sm:$0xff]  ;;  %v4533_v40 = vld [vmem:[#allocation21_spill] sm:$0xff] }
 0x3c3   :  { %753 = vmatmul.f32.vlgmr.msra.gmra.mxu0 %v729_v39  ;;  %773 = vmatmul.f32.vlgmr.msra.gmra.mxu1 %v729_v39 }
 0x3c4   :  { %793 = vmatmul.f32.vlgmr.msra.gmra.mxu2 %v729_v39  ;;  %813 = vmatmul.f32.vlgmr.msra.gmra.mxu3 %v729_v39  ;;  %v4534_v39 = vld [vmem:[#allocation22_spill] sm:$0xff] }
 0x3c5   :  { %955 = vmatpush.msra.mxu0 %v2891_v51  ;;  %975 = vmatpush.msra.mxu1 %v2897_v50 }
 0x3c6   :  { %995 = vmatpush.msra.mxu2 %v2903_v49  ;;  %1015 = vmatpush.msra.mxu3 %v2909_v52 }
 0x3c7   :  { %956 = vmatpush.msra.mxu0 %v2915_v58  ;;  %976 = vmatpush.msra.mxu1 %v2921_v53 }
 0x3c8   :  { %996 = vmatpush.msra.mxu2 %v2927_v63  ;;  %1016 = vmatpush.msra.mxu3 %v2933_v62 }
 0x3c9   :  { %957 = vmatpush.msra.mxu0 %v2939_v59  ;;  %977 = vmatpush.msra.mxu1 %v2945_v57 }
 0x3ca   :  { %997 = vmatpush.msra.mxu2 %v2951_v54  ;;  %1017 = vmatpush.msra.mxu3 %v2957_v60 }
 0x3cb   :  { %958 = vmatpush.msra.mxu0 %v2963_v61  ;;  %978 = vmatpush.msra.mxu1 %v2969_v55 }
 0x3cc   :  { %998 = vmatpush.msra.mxu2 %v2975_v0  ;;  %1018 = vmatpush.msra.mxu3 %v2981_v1 }
 0x3cd   :  { %959 = vmatpush.msra.mxu0 %v2987_v2  ;;  %979 = vmatpush.msra.mxu1 %v2993_v3 }
 0x3ce   :  { %999 = vmatpush.msra.mxu2 %v2999_v4  ;;  %1019 = vmatpush.msra.mxu3 %v3005_v5 }
 0x3cf   :  { %960 = vmatpush.msra.mxu0 %v3011_v6  ;;  %980 = vmatpush.msra.mxu1 %v3017_v7 }
 0x3d0   :  { %1000 = vmatpush.msra.mxu2 %v3023_v8  ;;  %1020 = vmatpush.msra.mxu3 %v3029_v9 }
 0x3d1   :  { %961 = vmatpush.msra.mxu0 %v3035_v10  ;;  %981 = vmatpush.msra.mxu1 %v3041_v11 }
 0x3d2   :  { %1001 = vmatpush.msra.mxu2 %v3047_v12  ;;  %1021 = vmatpush.msra.mxu3 %v3053_v13 }
 0x3d3   :  { %962 = vmatpush.msra.mxu0 %v3059_v14  ;;  %982 = vmatpush.msra.mxu1 %v3065_v15 }
 0x3d4   :  { %1002 = vmatpush.msra.mxu2 %v3071_v16  ;;  %1022 = vmatpush.msra.mxu3 %v3077_v17 }
 0x3d5   :  { %963 = vmatpush.msra.mxu0 %v3083_v18  ;;  %983 = vmatpush.msra.mxu1 %v3089_v19 }
 0x3d6   :  { %1003 = vmatpush.msra.mxu2 %v3095_v20  ;;  %1023 = vmatpush.msra.mxu3 %v3101_v21 }
 0x3d7   :  { %964 = vmatpush.msra.mxu0 %v3107_v22  ;;  %984 = vmatpush.msra.mxu1 %v3113_v23 }
 0x3d8   :  { %1004 = vmatpush.msra.mxu2 %v3119_v24  ;;  %1024 = vmatpush.msra.mxu3 %v3125_v25 }
 0x3d9   :  { %965 = vmatpush.msra.mxu0 %v3131_v26  ;;  %985 = vmatpush.msra.mxu1 %v3137_v27 }
 0x3da   :  { %1005 = vmatpush.msra.mxu2 %v3143_v28  ;;  %1025 = vmatpush.msra.mxu3 %v3149_v29 }
 0x3db   :  { %966 = vmatpush.msra.mxu0 %v4516_v30  ;;  %986 = vmatpush.msra.mxu1 %v4517_v31 }
 0x3dc   :  { %1006 = vmatpush.msra.mxu2 %v4518_v32  ;;  %1026 = vmatpush.msra.mxu3 %v4519_v33 }
 0x3dd   :  { %967 = vmatpush.msra.mxu0 %v4520_v34  ;;  %987 = vmatpush.msra.mxu1 %v4521_v46 }
 0x3de   :  { %1007 = vmatpush.msra.mxu2 %v4522_v36  ;;  %1027 = vmatpush.msra.mxu3 %v4523_v35 }
 0x3df   :  { %968 = vmatpush.msra.mxu0 %v4524_v41  ;;  %988 = vmatpush.msra.mxu1 %v4525_v47  ;;  %v4535_v41 = vld [vmem:[#allocation24_spill] sm:$0xff] }
 0x3e0   :  { %1008 = vmatpush.msra.mxu2 %v4526_v42  ;;  %1028 = vmatpush.msra.mxu3 %v4527_v48  ;;  %v1762_v48 = vld [vmem:[%s4272_s0 + $0xc0] sm:$0xff] }
 0x3e1   :  { %969 = vmatpush.msra.mxu0 %v4528_v43  ;;  %989 = vmatpush.msra.mxu1 %v4529_v56  ;;  %v1763_v56 = vld [vmem:[%s4272_s0 + $0xc8] sm:$0xff] }
 0x3e2   :  { %1009 = vmatpush.msra.mxu2 %v4530_v38  ;;  %1029 = vmatpush.msra.mxu3 %v4531_v37 }
 0x3e3   :  { %970 = vmatpush.msra.mxu0 %v4532_v45  ;;  %990 = vmatpush.msra.mxu1 %v4533_v40 }
 0x3e4   :  { %1010 = vmatpush.msra.mxu2 %v4534_v39  ;;  %1030 = vmatpush.msra.mxu3 %v4535_v41  ;;  %v1764_v39 = vld [vmem:[%s4272_s0 + $0xd0] sm:$0xff]  ;;  %v1765_v41 = vld [vmem:[%s4272_s0 + $0xd8] sm:$0xff] }
 0x440   :  { %v754_v43 = vpop.f32.mrf.mxu0  ;;  %v774_v38 = vpop.f32.mrf.mxu1 }
 0x441   :  { %v817_v42 = vadd.f32 %v1762_v48, %v754_v43  ;;  %v818_v37 = vadd.f32 %v1763_v56, %v774_v38 }
 0x443   :  { %v821_v47 = vmul.f32 0.5, %v817_v42  ;;  %v825_v45 = vmul.f32 0.5, %v818_v37 }
 0x445   :  { %1860 = vtanh.f32 %v821_v47 }
 0x446   :  { %1862 = vtanh.f32 %v825_v45 }
 0x447   :  { %v794_v40 = vpop.f32.mrf.mxu2  ;;  %v814_v35 = vpop.f32.mrf.mxu3 }
 0x448   :  { %v819_v36 = vadd.f32 %v1764_v39, %v794_v40  ;;  %v820_v46 = vadd.f32 %v1765_v41, %v814_v35  ;;  %v4541_v41 = vld [vmem:[#allocation9_spill] sm:$0xff]  ;;  %v4542_v40 = vld [vmem:[#allocation10_spill] sm:$0xff]  ;;  %v4543_v39 = vld [vmem:[#allocation15_spill] sm:$0xff] }
 0x44a   :  { %1864 = vtanh.f32 %v819_v36  ;;  %v830_v34 = vmul.f32 0.5, %v820_v46 }
 0x44b   :  { %v1861_v48 = vpop.eup %1860 }
 0x44c   :  { %v1863_v43 = vpop.eup %1862  ;;  %v823_v42 = vmul.f32 0.5, %v1861_v48  ;;  %1866 = vtanh.f32 %v830_v34  ;;  %v4540_v34 = vld [vmem:[#allocation8_spill] sm:$0xff] }
 0x44d   :  { %v827_v56 = vmul.f32 0.5, %v1863_v43  ;;  %v4544_v48 = vld [vmem:[#allocation12_spill] sm:$0xff]  ;;  %v4545_v43 = vld [vmem:[#allocation13_spill] sm:$0xff] }
 0x44e   :  { %v824_v47 = vadd.f32 0.5, %v823_v42  ;;  %v4546_v42 = vld [vmem:[#allocation14_spill] sm:$0xff] }
 0x44f   :  { %v828_v38 = vadd.f32 0.5, %v827_v56  ;;  %v4547_v56 = vld [vmem:[#allocation19_spill] sm:$0xff] }
 0x450   :  { %v1865_v37 = vpop.eup %1864 }
 0x451   :  { %v834_v33 = vmul.f32 %v828_v38, %v3365_v44  ;;  %v835_v32 = vmul.f32 %v1865_v37, %v824_v47  ;;  %v4536_v44 = vld [vmem:[#allocation5_spill] sm:$0xff]  ;;  %v4548_v47 = vld [vmem:[#allocation16_spill] sm:$0xff]  ;;  %v4550_v37 = vld [vmem:[#allocation18_spill] sm:$0xff] }
 0x452   :  { %v1867_v31 = vpop.eup %1866  ;;  %v4549_v38 = vld [vmem:[#allocation17_spill] sm:$0xff] }
 0x453   :  { %v3445_v30 = vadd.f32 %v835_v32, %v834_v33  ;;  %v832_v45 = vmul.f32 0.5, %v1867_v31  ;;  %v4537_v31 = vld [vmem:[#allocation6_spill] sm:$0xff]  ;;  %v4538_v32 = vld [vmem:[#allocation7_spill] sm:$0xff] }
 0x454   :  { %v4539_v33 = vld [vmem:[#allocation11_spill] sm:$0xff] }
 0x455   :  { %1868 = vtanh.f32 %v3445_v30  ;;  %v833_v35 = vadd.f32 0.5, %v832_v45  ;;  %v4551_v45 = vld [vmem:[#allocation23_spill] sm:$0xff] }
 0x45b   :  { %v1869_v36 = vpop.eup %1868 }
 0x45c   :  { %v838_v46 = vmul.f32 %v1869_v36, %v833_v35  ;;  %v4552_v35 = vld [vmem:[#allocation20_spill] sm:$0xff]  ;;  %v4553_v36 = vld [vmem:[#allocation21_spill] sm:$0xff] }
 0x45e   :  { %862 = vmatmul.f32.vlgmr.msrb.gmra.mxu0 %v838_v46  ;;  %882 = vmatmul.f32.vlgmr.msrb.gmra.mxu1 %v838_v46 }
 0x45f   :  { %902 = vmatmul.f32.vlgmr.msrb.gmra.mxu2 %v838_v46  ;;  %922 = vmatmul.f32.vlgmr.msrb.gmra.mxu3 %v838_v46  ;;  %v4554_v46 = vld [vmem:[#allocation22_spill] sm:$0xff] }
 0x460   :  { %1064 = vmatpush.msrb.mxu0 %v2891_v51  ;;  %1084 = vmatpush.msrb.mxu1 %v2897_v50 }
 0x461   :  { %1104 = vmatpush.msrb.mxu2 %v2903_v49  ;;  %1124 = vmatpush.msrb.mxu3 %v2909_v52 }
 0x462   :  { %1065 = vmatpush.msrb.mxu0 %v2915_v58  ;;  %1085 = vmatpush.msrb.mxu1 %v2921_v53 }
 0x463   :  { %1105 = vmatpush.msrb.mxu2 %v2927_v63  ;;  %1125 = vmatpush.msrb.mxu3 %v2933_v62 }
 0x464   :  { %1066 = vmatpush.msrb.mxu0 %v2939_v59  ;;  %1086 = vmatpush.msrb.mxu1 %v2945_v57 }
 0x465   :  { %1106 = vmatpush.msrb.mxu2 %v2951_v54  ;;  %1126 = vmatpush.msrb.mxu3 %v2957_v60 }
 0x466   :  { %1067 = vmatpush.msrb.mxu0 %v2963_v61  ;;  %1087 = vmatpush.msrb.mxu1 %v2969_v55 }
 0x467   :  { %1107 = vmatpush.msrb.mxu2 %v2975_v0  ;;  %1127 = vmatpush.msrb.mxu3 %v2981_v1 }
 0x468   :  { %1068 = vmatpush.msrb.mxu0 %v2987_v2  ;;  %1088 = vmatpush.msrb.mxu1 %v2993_v3 }
 0x469   :  { %1108 = vmatpush.msrb.mxu2 %v2999_v4  ;;  %1128 = vmatpush.msrb.mxu3 %v3005_v5 }
 0x46a   :  { %1069 = vmatpush.msrb.mxu0 %v3011_v6  ;;  %1089 = vmatpush.msrb.mxu1 %v3017_v7 }
 0x46b   :  { %1109 = vmatpush.msrb.mxu2 %v3023_v8  ;;  %1129 = vmatpush.msrb.mxu3 %v3029_v9 }
 0x46c   :  { %1070 = vmatpush.msrb.mxu0 %v3035_v10  ;;  %1090 = vmatpush.msrb.mxu1 %v3041_v11 }
 0x46d   :  { %1110 = vmatpush.msrb.mxu2 %v3047_v12  ;;  %1130 = vmatpush.msrb.mxu3 %v3053_v13 }
 0x46e   :  { %1071 = vmatpush.msrb.mxu0 %v3059_v14  ;;  %1091 = vmatpush.msrb.mxu1 %v3065_v15 }
 0x46f   :  { %1111 = vmatpush.msrb.mxu2 %v3071_v16  ;;  %1131 = vmatpush.msrb.mxu3 %v3077_v17 }
 0x470   :  { %1072 = vmatpush.msrb.mxu0 %v3083_v18  ;;  %1092 = vmatpush.msrb.mxu1 %v3089_v19 }
 0x471   :  { %1112 = vmatpush.msrb.mxu2 %v3095_v20  ;;  %1132 = vmatpush.msrb.mxu3 %v3101_v21 }
 0x472   :  { %1073 = vmatpush.msrb.mxu0 %v3107_v22  ;;  %1093 = vmatpush.msrb.mxu1 %v3113_v23 }
 0x473   :  { %1113 = vmatpush.msrb.mxu2 %v3119_v24  ;;  %1133 = vmatpush.msrb.mxu3 %v3125_v25 }
 0x474   :  { %1074 = vmatpush.msrb.mxu0 %v3131_v26  ;;  %1094 = vmatpush.msrb.mxu1 %v3137_v27 }
 0x475   :  { %1114 = vmatpush.msrb.mxu2 %v3143_v28  ;;  %1134 = vmatpush.msrb.mxu3 %v3149_v29 }
 0x476   :  { %1075 = vmatpush.msrb.mxu0 %v4536_v44  ;;  %1095 = vmatpush.msrb.mxu1 %v4537_v31 }
 0x477   :  { %1115 = vmatpush.msrb.mxu2 %v4538_v32  ;;  %1135 = vmatpush.msrb.mxu3 %v4539_v33 }
 0x478   :  { %1076 = vmatpush.msrb.mxu0 %v4540_v34  ;;  %1096 = vmatpush.msrb.mxu1 %v4541_v41 }
 0x479   :  { %1116 = vmatpush.msrb.mxu2 %v4542_v40  ;;  %1136 = vmatpush.msrb.mxu3 %v4543_v39 }
 0x47a   :  { %1077 = vmatpush.msrb.mxu0 %v4544_v48  ;;  %1097 = vmatpush.msrb.mxu1 %v4545_v43  ;;  %v4555_v48 = vld [vmem:[#allocation24_spill] sm:$0xff] }
 0x47b   :  { %1117 = vmatpush.msrb.mxu2 %v4546_v42  ;;  %1137 = vmatpush.msrb.mxu3 %v4547_v56  ;;  %v1766_v56 = vld [vmem:[%s4272_s0 + $0xe0] sm:$0xff] }
 0x47c   :  { %1078 = vmatpush.msrb.mxu0 %v4548_v47  ;;  %1098 = vmatpush.msrb.mxu1 %v4549_v38  ;;  %v1767_v38 = vld [vmem:[%s4272_s0 + $0xe8] sm:$0xff] }
 0x47d   :  { %1118 = vmatpush.msrb.mxu2 %v4550_v37  ;;  %1138 = vmatpush.msrb.mxu3 %v4551_v45 }
 0x47e   :  { %1079 = vmatpush.msrb.mxu0 %v4552_v35  ;;  %1099 = vmatpush.msrb.mxu1 %v4553_v36 }
 0x47f   :  { %1119 = vmatpush.msrb.mxu2 %v4554_v46  ;;  %1139 = vmatpush.msrb.mxu3 %v4555_v48  ;;  %v1768_v46 = vld [vmem:[%s4272_s0 + $0xf0] sm:$0xff]  ;;  %v1769_v48 = vld [vmem:[%s4272_s0 + $0xf8] sm:$0xff] }
 0x4db   :  { %v863_v47 = vpop.f32.mrf.mxu0  ;;  %v883_v37 = vpop.f32.mrf.mxu1 }
 0x4dc   :  { %v926_v42 = vadd.f32 %v1766_v56, %v863_v47  ;;  %v927_v45 = vadd.f32 %v1767_v38, %v883_v37 }
 0x4de   :  { %v930_v43 = vmul.f32 0.5, %v926_v42  ;;  %v934_v35 = vmul.f32 0.5, %v927_v45 }
 0x4e0   :  { %1870 = vtanh.f32 %v930_v43 }
 0x4e1   :  { %1872 = vtanh.f32 %v934_v35 }
 0x4e2   :  { %v903_v36 = vpop.f32.mrf.mxu2  ;;  %v923_v39 = vpop.f32.mrf.mxu3 }
 0x4e3   :  { %v928_v40 = vadd.f32 %v1768_v46, %v903_v36  ;;  %v929_v41 = vadd.f32 %v1769_v48, %v923_v39  ;;  %v3611_v36 = vld [vmem:[%s4273_s1 + $0x1e0] sm:$0xff]  ;;  %v3623_v46 = vld [vmem:[%s4273_s1 + $0x1f0] sm:$0xff] }
 0x4e5   :  { %1874 = vtanh.f32 %v928_v40  ;;  %v939_v34 = vmul.f32 0.5, %v929_v41 }
 0x4e6   :  { %v1871_v56 = vpop.eup %1870 }
 0x4e7   :  { %v1873_v47 = vpop.eup %1872  ;;  %v932_v42 = vmul.f32 0.5, %v1871_v56  ;;  %1876 = vtanh.f32 %v939_v34  ;;  %v3629_v56 = vld [vmem:[%s4273_s1 + $0x1f8] sm:$0xff] }
 0x4e8   :  { %v936_v38 = vmul.f32 0.5, %v1873_v47  ;;  %v3635_v47 = vld [vmem:[%s4273_s1 + $0x1c0] sm:$0xff] }
 0x4e9   :  { %v933_v43 = vadd.f32 0.5, %v932_v42  ;;  %v3641_v42 = vld [vmem:[%s4273_s1 + $0x1c8] sm:$0xff] }
 0x4ea   :  { %v937_v37 = vadd.f32 0.5, %v936_v38  ;;  %v3647_v38 = vld [vmem:[%s4273_s1 + $0x1d0] sm:$0xff] }
 0x4eb   :  { %v1875_v45 = vpop.eup %1874 }
 0x4ec   :  { %v943_v33 = vmul.f32 %v937_v37, %v3445_v30  ;;  %v944_v32 = vmul.f32 %v1875_v45, %v933_v43  ;;  %v3653_v43 = vld [vmem:[%s4273_s1 + $0x1d8] sm:$0xff]  ;;  %v3659_v37 = vld [vmem:[%s4273_s1 + $0x1a0] sm:$0xff]  ;;  %v3665_v45 = vld [vmem:[%s4273_s1 + $0x1a8] sm:$0xff] }
 0x4ed   :  { %v1877_v31 = vpop.eup %1876 }
 0x4ee   :  { %v3525_v44 = vadd.f32 %v944_v32, %v943_v33  ;;  %v941_v35 = vmul.f32 0.5, %v1877_v31 }
 0x4f0   :  { %1878 = vtanh.f32 %v3525_v44  ;;  %v942_v39 = vadd.f32 0.5, %v941_v35  ;;  %v3671_v35 = vld [vmem:[%s4273_s1 + $0x1b0] sm:$0xff] }
 0x4f6   :  { %v1879_v40 = vpop.eup %1878 }
 0x4f7   :  { %v947_v41 = vmul.f32 %v1879_v40, %v942_v39  ;;  %v3677_v39 = vld [vmem:[%s4273_s1 + $0x1b8] sm:$0xff]  ;;  %v3683_v40 = vld [vmem:[%s4273_s1 + $0x180] sm:$0xff] }
 0x4f9   :  { %971 = vmatmul.f32.vlgmr.msra.gmra.mxu0 %v947_v41  ;;  %991 = vmatmul.f32.vlgmr.msra.gmra.mxu1 %v947_v41 }
 0x4fa   :  { %1011 = vmatmul.f32.vlgmr.msra.gmra.mxu2 %v947_v41  ;;  %1031 = vmatmul.f32.vlgmr.msra.gmra.mxu3 %v947_v41  ;;  %v3689_v41 = vld [vmem:[%s4273_s1 + $0x188] sm:$0xff] }
 0x4fb   :  { %1173 = vmatpush.msra.mxu0 %v2891_v51  ;;  %1193 = vmatpush.msra.mxu1 %v2897_v50  ;;  %v4556_v51 = vld [vmem:[#allocation5_spill] sm:$0xff]  ;;  %v4557_v50 = vld [vmem:[#allocation6_spill] sm:$0xff] }
 0x4fc   :  { %1213 = vmatpush.msra.mxu2 %v2903_v49  ;;  %1233 = vmatpush.msra.mxu3 %v2909_v52  ;;  %v4558_v49 = vld [vmem:[#allocation7_spill] sm:$0xff] }
 0x4fd   :  { %1174 = vmatpush.msra.mxu0 %v2915_v58  ;;  %1194 = vmatpush.msra.mxu1 %v2921_v53  ;;  %v4559_v52 = vld [vmem:[#allocation11_spill] sm:$0xff]  ;;  %v4560_v58 = vld [vmem:[#allocation8_spill] sm:$0xff]  ;;  %v4561_v53 = vld [vmem:[#allocation9_spill] sm:$0xff] }
 0x4fe   :  { %1214 = vmatpush.msra.mxu2 %v2927_v63  ;;  %1234 = vmatpush.msra.mxu3 %v2933_v62  ;;  %v4562_v63 = vld [vmem:[#allocation10_spill] sm:$0xff]  ;;  %v4563_v62 = vld [vmem:[#allocation15_spill] sm:$0xff] }
 0x4ff   :  { %1175 = vmatpush.msra.mxu0 %v2939_v59  ;;  %1195 = vmatpush.msra.mxu1 %v2945_v57  ;;  %v4564_v59 = vld [vmem:[#allocation12_spill] sm:$0xff]  ;;  %v4565_v57 = vld [vmem:[#allocation13_spill] sm:$0xff] }
 0x500   :  { %1215 = vmatpush.msra.mxu2 %v2951_v54  ;;  %1235 = vmatpush.msra.mxu3 %v2957_v60  ;;  %v4566_v54 = vld [vmem:[#allocation14_spill] sm:$0xff]  ;;  %v4567_v60 = vld [vmem:[#allocation19_spill] sm:$0xff] }
 0x501   :  { %1176 = vmatpush.msra.mxu0 %v2963_v61  ;;  %1196 = vmatpush.msra.mxu1 %v2969_v55  ;;  %v4568_v61 = vld [vmem:[#allocation16_spill] sm:$0xff]  ;;  %v4569_v55 = vld [vmem:[#allocation17_spill] sm:$0xff] }
 0x502   :  { %1216 = vmatpush.msra.mxu2 %v2975_v0  ;;  %1236 = vmatpush.msra.mxu3 %v2981_v1  ;;  %v4570_v0 = vld [vmem:[#allocation18_spill] sm:$0xff]  ;;  %v4571_v1 = vld [vmem:[#allocation23_spill] sm:$0xff] }
 0x503   :  { %1177 = vmatpush.msra.mxu0 %v2987_v2  ;;  %1197 = vmatpush.msra.mxu1 %v2993_v3  ;;  %v4572_v2 = vld [vmem:[#allocation20_spill] sm:$0xff]  ;;  %v4573_v3 = vld [vmem:[#allocation21_spill] sm:$0xff] }
 0x504   :  { %1217 = vmatpush.msra.mxu2 %v2999_v4  ;;  %1237 = vmatpush.msra.mxu3 %v3005_v5  ;;  %v4574_v4 = vld [vmem:[#allocation22_spill] sm:$0xff]  ;;  %v4575_v5 = vld [vmem:[#allocation24_spill] sm:$0xff] }
 0x505   :  { %1178 = vmatpush.msra.mxu0 %v3011_v6  ;;  %1198 = vmatpush.msra.mxu1 %v3017_v7  ;;  %v1770_v6 = vld [vmem:[%s4272_s0 + $0x100] sm:$0xff]  ;;  %v1771_v7 = vld [vmem:[%s4272_s0 + $0x108] sm:$0xff] }
 0x506   :  { %1218 = vmatpush.msra.mxu2 %v3023_v8  ;;  %1238 = vmatpush.msra.mxu3 %v3029_v9 }
 0x507   :  { %1179 = vmatpush.msra.mxu0 %v3035_v10  ;;  %1199 = vmatpush.msra.mxu1 %v3041_v11 }
 0x508   :  { %1219 = vmatpush.msra.mxu2 %v3047_v12  ;;  %1239 = vmatpush.msra.mxu3 %v3053_v13 }
 0x509   :  { %1180 = vmatpush.msra.mxu0 %v3059_v14  ;;  %1200 = vmatpush.msra.mxu1 %v3065_v15  ;;  %v1772_v14 = vld [vmem:[%s4272_s0 + $0x110] sm:$0xff]  ;;  %v1773_v15 = vld [vmem:[%s4272_s0 + $0x118] sm:$0xff] }
 0x50a   :  { %1220 = vmatpush.msra.mxu2 %v3071_v16  ;;  %1240 = vmatpush.msra.mxu3 %v3077_v17 }
 0x50b   :  { %1181 = vmatpush.msra.mxu0 %v3083_v18  ;;  %1201 = vmatpush.msra.mxu1 %v3089_v19 }
 0x50c   :  { %1221 = vmatpush.msra.mxu2 %v3095_v20  ;;  %1241 = vmatpush.msra.mxu3 %v3101_v21 }
 0x50d   :  { %1182 = vmatpush.msra.mxu0 %v3107_v22  ;;  %1202 = vmatpush.msra.mxu1 %v3113_v23 }
 0x50e   :  { %1222 = vmatpush.msra.mxu2 %v3119_v24  ;;  %1242 = vmatpush.msra.mxu3 %v3125_v25 }
 0x50f   :  { %1183 = vmatpush.msra.mxu0 %v3131_v26  ;;  %1203 = vmatpush.msra.mxu1 %v3137_v27 }
 0x510   :  { %1223 = vmatpush.msra.mxu2 %v3143_v28  ;;  %1243 = vmatpush.msra.mxu3 %v3149_v29 }
 0x511   :  { %1184 = vmatpush.msra.mxu0 %v4556_v51  ;;  %1204 = vmatpush.msra.mxu1 %v4557_v50  ;;  %v3695_v51 = vld [vmem:[%s4273_s1 + $0x190] sm:$0xff]  ;;  %v3701_v50 = vld [vmem:[%s4273_s1 + $0x198] sm:$0xff] }
 0x512   :  { %1224 = vmatpush.msra.mxu2 %v4558_v49  ;;  %1244 = vmatpush.msra.mxu3 %v4559_v52  ;;  %v3707_v49 = vld [vmem:[%s4273_s1 + $0x160] sm:$0xff]  ;;  %v3713_v52 = vld [vmem:[%s4273_s1 + $0x168] sm:$0xff] }
 0x513   :  { %1185 = vmatpush.msra.mxu0 %v4560_v58  ;;  %1205 = vmatpush.msra.mxu1 %v4561_v53  ;;  %v3719_v58 = vld [vmem:[%s4273_s1 + $0x170] sm:$0xff]  ;;  %v3725_v53 = vld [vmem:[%s4273_s1 + $0x178] sm:$0xff] }
 0x514   :  { %1225 = vmatpush.msra.mxu2 %v4562_v63  ;;  %1245 = vmatpush.msra.mxu3 %v4563_v62  ;;  %v3731_v63 = vld [vmem:[%s4273_s1 + $0x140] sm:$0xff]  ;;  %v3737_v62 = vld [vmem:[%s4273_s1 + $0x148] sm:$0xff] }
 0x515   :  { %1186 = vmatpush.msra.mxu0 %v4564_v59  ;;  %1206 = vmatpush.msra.mxu1 %v4565_v57  ;;  %v3743_v59 = vld [vmem:[%s4273_s1 + $0x150] sm:$0xff]  ;;  %v3749_v57 = vld [vmem:[%s4273_s1 + $0x158] sm:$0xff] }
 0x516   :  { %1226 = vmatpush.msra.mxu2 %v4566_v54  ;;  %1246 = vmatpush.msra.mxu3 %v4567_v60  ;;  %v3755_v54 = vld [vmem:[%s4273_s1 + $0x120] sm:$0xff]  ;;  %v3761_v60 = vld [vmem:[%s4273_s1 + $0x128] sm:$0xff] }
 0x517   :  { %1187 = vmatpush.msra.mxu0 %v4568_v61  ;;  %1207 = vmatpush.msra.mxu1 %v4569_v55  ;;  %v3767_v61 = vld [vmem:[%s4273_s1 + $0x130] sm:$0xff]  ;;  %v3773_v55 = vld [vmem:[%s4273_s1 + $0x138] sm:$0xff] }
 0x518   :  { %1227 = vmatpush.msra.mxu2 %v4570_v0  ;;  %1247 = vmatpush.msra.mxu3 %v4571_v1  ;;  %v3779_v0 = vld [vmem:[%s4273_s1 + $0x100] sm:$0xff]  ;;  %v3785_v1 = vld [vmem:[%s4273_s1 + $0x108] sm:$0xff] }
 0x519   :  { %1188 = vmatpush.msra.mxu0 %v4572_v2  ;;  %1208 = vmatpush.msra.mxu1 %v4573_v3  ;;  %v3791_v2 = vld [vmem:[%s4273_s1 + $0x110] sm:$0xff]  ;;  %v3797_v3 = vld [vmem:[%s4273_s1 + $0x118] sm:$0xff] }
 0x51a   :  { %1228 = vmatpush.msra.mxu2 %v4574_v4  ;;  %1248 = vmatpush.msra.mxu3 %v4575_v5  ;;  %v3803_v4 = vld [vmem:[%s4273_s1 + $0xe0] sm:$0xff]  ;;  %v3809_v5 = vld [vmem:[%s4273_s1 + $0xe8] sm:$0xff] }
 0x576   :  { %v972_v8 = vpop.f32.mrf.mxu0  ;;  %v992_v9 = vpop.f32.mrf.mxu1 }
 0x577   :  { %v1035_v10 = vadd.f32 %v1770_v6, %v972_v8  ;;  %v1036_v11 = vadd.f32 %v1771_v7, %v992_v9  ;;  %v3815_v6 = vld [vmem:[%s4273_s1 + $0xf0] sm:$0xff]  ;;  %v3821_v7 = vld [vmem:[%s4273_s1 + $0xf8] sm:$0xff]  ;;  %v3827_v8 = vld [vmem:[%s4273_s1 + $0xc0] sm:$0xff] }
 0x578   :  { %v3833_v9 = vld [vmem:[%s4273_s1 + $0xc8] sm:$0xff] }
 0x579   :  { %v1039_v12 = vmul.f32 0.5, %v1035_v10  ;;  %v1043_v13 = vmul.f32 0.5, %v1036_v11  ;;  %v3839_v10 = vld [vmem:[%s4273_s1 + $0xd0] sm:$0xff]  ;;  %v3845_v11 = vld [vmem:[%s4273_s1 + $0xd8] sm:$0xff] }
 0x57b   :  { %1880 = vtanh.f32 %v1039_v12  ;;  %v3851_v12 = vld [vmem:[%s4273_s1 + $0xa0] sm:$0xff] }
 0x57c   :  { %1882 = vtanh.f32 %v1043_v13  ;;  %v3857_v13 = vld [vmem:[%s4273_s1 + $0xa8] sm:$0xff] }
 0x57d   :  { %v1012_v16 = vpop.f32.mrf.mxu2  ;;  %v1032_v17 = vpop.f32.mrf.mxu3 }
 0x57e   :  { %v1037_v18 = vadd.f32 %v1772_v14, %v1012_v16  ;;  %v1038_v19 = vadd.f32 %v1773_v15, %v1032_v17  ;;  %v3863_v14 = vld [vmem:[%s4273_s1 + $0xb0] sm:$0xff]  ;;  %v3869_v15 = vld [vmem:[%s4273_s1 + $0xb8] sm:$0xff]  ;;  %v3875_v16 = vld [vmem:[%s4273_s1 + $0x80] sm:$0xff] }
 0x57f   :  { %4576 = vst [vmem:[#allocation5_spill] sm:$0xff] %v3875_v16  ;;  %v3881_v17 = vld [vmem:[%s4273_s1 + $0x88] sm:$0xff] }
 0x580   :  { %1884 = vtanh.f32 %v1037_v18  ;;  %v1048_v20 = vmul.f32 0.5, %v1038_v19  ;;  %4577 = vst [vmem:[#allocation6_spill] sm:$0xff] %v3881_v17  ;;  %v3887_v18 = vld [vmem:[%s4273_s1 + $0x90] sm:$0xff]  ;;  %v3893_v19 = vld [vmem:[%s4273_s1 + $0x98] sm:$0xff] }
 0x581   :  { %v1881_v21 = vpop.eup %1880  ;;  %4578 = vst [vmem:[#allocation7_spill] sm:$0xff] %v3887_v18 }
 0x582   :  { %v1883_v22 = vpop.eup %1882  ;;  %v1041_v23 = vmul.f32 0.5, %v1881_v21  ;;  %1886 = vtanh.f32 %v1048_v20  ;;  %4579 = vst [vmem:[#allocation11_spill] sm:$0xff] %v3893_v19  ;;  %v3899_v20 = vld [vmem:[%s4273_s1 + $0x60] sm:$0xff]  ;;  %v3905_v21 = vld [vmem:[%s4273_s1 + $0x68] sm:$0xff] }
 0x583   :  { %v1045_v24 = vmul.f32 0.5, %v1883_v22  ;;  %4580 = vst [vmem:[#allocation8_spill] sm:$0xff] %v3899_v20  ;;  %v3911_v22 = vld [vmem:[%s4273_s1 + $0x70] sm:$0xff] }
 0x584   :  { %v1042_v25 = vadd.f32 0.5, %v1041_v23  ;;  %4581 = vst [vmem:[#allocation9_spill] sm:$0xff] %v3905_v21  ;;  %v3917_v23 = vld [vmem:[%s4273_s1 + $0x78] sm:$0xff] }
 0x585   :  { %v1046_v26 = vadd.f32 0.5, %v1045_v24  ;;  %4582 = vst [vmem:[#allocation10_spill] sm:$0xff] %v3911_v22  ;;  %v3923_v24 = vld [vmem:[%s4273_s1 + $0x40] sm:$0xff] }
 0x586   :  { %v1885_v27 = vpop.eup %1884  ;;  %4583 = vst [vmem:[#allocation15_spill] sm:$0xff] %v3917_v23 }
 0x587   :  { %v1052_v28 = vmul.f32 %v1046_v26, %v3525_v44  ;;  %v1053_v29 = vmul.f32 %v1885_v27, %v1042_v25  ;;  %v3617_v44 = vld [vmem:[%s4273_s1 + $0x1e8] sm:$0xff]  ;;  %4584 = vst [vmem:[#allocation12_spill] sm:$0xff] %v3923_v24  ;;  %v3935_v26 = vld [vmem:[%s4273_s1 + $0x50] sm:$0xff]  ;;  %v3941_v27 = vld [vmem:[%s4273_s1 + $0x58] sm:$0xff] }
 0x588   :  { %v1887_v30 = vpop.eup %1886  ;;  %v3929_v25 = vld [vmem:[%s4273_s1 + $0x48] sm:$0xff]  ;;  %4586 = vst [vmem:[#allocation14_spill] sm:$0xff] %v3935_v26 }
 0x589   :  { %v3605_v31 = vadd.f32 %v1053_v29, %v1052_v28  ;;  %v1050_v32 = vmul.f32 0.5, %v1887_v30  ;;  %4585 = vst [vmem:[#allocation13_spill] sm:$0xff] %v3929_v25  ;;  %v3947_v28 = vld [vmem:[%s4273_s1 + $0x20] sm:$0xff]  ;;  %v3953_v29 = vld [vmem:[%s4273_s1 + $0x28] sm:$0xff]  ;;  %v3959_v30 = vld [vmem:[%s4273_s1 + $0x30] sm:$0xff] }
 0x58a   :  { %4587 = vst [vmem:[#allocation19_spill] sm:$0xff] %v3941_v27 }
 0x58b   :  { %1888 = vtanh.f32 %v3605_v31  ;;  %v1051_v33 = vadd.f32 0.5, %v1050_v32  ;;  %4588 = vst [vmem:[#allocation16_spill] sm:$0xff] %v3947_v28  ;;  %v3965_v32 = vld [vmem:[%s4273_s1 + $0x38] sm:$0xff] }
 0x58c   :  { %4589 = vst [vmem:[#allocation17_spill] sm:$0xff] %v3953_v29 }
 0x58d   :  { %4590 = vst [vmem:[#allocation18_spill] sm:$0xff] %v3959_v30 }
 0x58e   :  { %4591 = vst [vmem:[#allocation23_spill] sm:$0xff] %v3965_v32 }
 0x591   :  { %v1889_v34 = vpop.eup %1888 }
 0x592   :  { %v1056_v48 = vmul.f32 %v1889_v34, %v1051_v33  ;;  %v3971_v33 = vld [vmem:[%s4273_s1] sm:$0xff]  ;;  %v3977_v34 = vld [vmem:[%s4273_s1 + $0x8] sm:$0xff] }
 0x593   :  { %4592 = vst [vmem:[#allocation20_spill] sm:$0xff] %v3971_v33 }
 0x594   :  { %1080 = vmatmul.f32.vlgmr.msrb.gmra.mxu0 %v1056_v48  ;;  %1100 = vmatmul.f32.vlgmr.msrb.gmra.mxu1 %v1056_v48  ;;  %4593 = vst [vmem:[#allocation21_spill] sm:$0xff] %v3977_v34 }
 0x595   :  { %1120 = vmatmul.f32.vlgmr.msrb.gmra.mxu2 %v1056_v48  ;;  %1140 = vmatmul.f32.vlgmr.msrb.gmra.mxu3 %v1056_v48  ;;  %v3983_v48 = vld [vmem:[%s4273_s1 + $0x10] sm:$0xff] }
 0x596   :  { %1282 = vmatpush.msrb.mxu0 %v3611_v36  ;;  %1302 = vmatpush.msrb.mxu1 %v3617_v44  ;;  %4594 = vst [vmem:[#allocation22_spill] sm:$0xff] %v3983_v48 }
 0x597   :  { %1322 = vmatpush.msrb.mxu2 %v3623_v46  ;;  %1342 = vmatpush.msrb.mxu3 %v3629_v56 }
 0x598   :  { %1283 = vmatpush.msrb.mxu0 %v3635_v47  ;;  %1303 = vmatpush.msrb.mxu1 %v3641_v42 }
 0x599   :  { %1323 = vmatpush.msrb.mxu2 %v3647_v38  ;;  %1343 = vmatpush.msrb.mxu3 %v3653_v43 }
 0x59a   :  { %1284 = vmatpush.msrb.mxu0 %v3659_v37  ;;  %1304 = vmatpush.msrb.mxu1 %v3665_v45 }
 0x59b   :  { %1324 = vmatpush.msrb.mxu2 %v3671_v35  ;;  %1344 = vmatpush.msrb.mxu3 %v3677_v39 }
 0x59c   :  { %1285 = vmatpush.msrb.mxu0 %v3683_v40  ;;  %1305 = vmatpush.msrb.mxu1 %v3689_v41 }
 0x59d   :  { %1325 = vmatpush.msrb.mxu2 %v3695_v51  ;;  %1345 = vmatpush.msrb.mxu3 %v3701_v50 }
 0x59e   :  { %1286 = vmatpush.msrb.mxu0 %v3707_v49  ;;  %1306 = vmatpush.msrb.mxu1 %v3713_v52 }
 0x59f   :  { %1326 = vmatpush.msrb.mxu2 %v3719_v58  ;;  %1346 = vmatpush.msrb.mxu3 %v3725_v53 }
 0x5a0   :  { %1287 = vmatpush.msrb.mxu0 %v3731_v63  ;;  %1307 = vmatpush.msrb.mxu1 %v3737_v62 }
 0x5a1   :  { %1327 = vmatpush.msrb.mxu2 %v3743_v59  ;;  %1347 = vmatpush.msrb.mxu3 %v3749_v57 }
 0x5a2   :  { %1288 = vmatpush.msrb.mxu0 %v3755_v54  ;;  %1308 = vmatpush.msrb.mxu1 %v3761_v60 }
 0x5a3   :  { %1328 = vmatpush.msrb.mxu2 %v3767_v61  ;;  %1348 = vmatpush.msrb.mxu3 %v3773_v55 }
 0x5a4   :  { %1289 = vmatpush.msrb.mxu0 %v3779_v0  ;;  %1309 = vmatpush.msrb.mxu1 %v3785_v1 }
 0x5a5   :  { %1329 = vmatpush.msrb.mxu2 %v3791_v2  ;;  %1349 = vmatpush.msrb.mxu3 %v3797_v3 }
 0x5a6   :  { %1290 = vmatpush.msrb.mxu0 %v3803_v4  ;;  %1310 = vmatpush.msrb.mxu1 %v3809_v5 }
 0x5a7   :  { %1330 = vmatpush.msrb.mxu2 %v3815_v6  ;;  %1350 = vmatpush.msrb.mxu3 %v3821_v7 }
 0x5a8   :  { %1291 = vmatpush.msrb.mxu0 %v3827_v8  ;;  %1311 = vmatpush.msrb.mxu1 %v3833_v9 }
 0x5a9   :  { %1331 = vmatpush.msrb.mxu2 %v3839_v10  ;;  %1351 = vmatpush.msrb.mxu3 %v3845_v11 }
 0x5aa   :  { %1292 = vmatpush.msrb.mxu0 %v3851_v12  ;;  %1312 = vmatpush.msrb.mxu1 %v3857_v13 }
 0x5ab   :  { %1332 = vmatpush.msrb.mxu2 %v3863_v14  ;;  %1352 = vmatpush.msrb.mxu3 %v3869_v15 }
 0x5ac   :  { %1293 = vmatpush.msrb.mxu0 %v3875_v16  ;;  %1313 = vmatpush.msrb.mxu1 %v3881_v17 }
 0x5ad   :  { %1333 = vmatpush.msrb.mxu2 %v3887_v18  ;;  %1353 = vmatpush.msrb.mxu3 %v3893_v19 }
 0x5ae   :  { %1294 = vmatpush.msrb.mxu0 %v3899_v20  ;;  %1314 = vmatpush.msrb.mxu1 %v3905_v21 }
 0x5af   :  { %1334 = vmatpush.msrb.mxu2 %v3911_v22  ;;  %1354 = vmatpush.msrb.mxu3 %v3917_v23 }
 0x5b0   :  { %1295 = vmatpush.msrb.mxu0 %v3923_v24  ;;  %1315 = vmatpush.msrb.mxu1 %v3929_v25  ;;  %v1776_v25 = vld [vmem:[%s4272_s0 + $0x130] sm:$0xff] }
 0x5b1   :  { %1335 = vmatpush.msrb.mxu2 %v3935_v26  ;;  %1355 = vmatpush.msrb.mxu3 %v3941_v27 }
 0x5b2   :  { %1296 = vmatpush.msrb.mxu0 %v3947_v28  ;;  %1316 = vmatpush.msrb.mxu1 %v3953_v29 }
 0x5b3   :  { %1336 = vmatpush.msrb.mxu2 %v3959_v30  ;;  %1356 = vmatpush.msrb.mxu3 %v3965_v32  ;;  %v3989_v32 = vld [vmem:[%s4273_s1 + $0x18] sm:$0xff] }
 0x5b4   :  { %1297 = vmatpush.msrb.mxu0 %v3971_v33  ;;  %1317 = vmatpush.msrb.mxu1 %v3977_v34  ;;  %4595 = vst [vmem:[#allocation24_spill] sm:$0xff] %v3989_v32  ;;  %v1774_v33 = vld [vmem:[%s4272_s0 + $0x120] sm:$0xff]  ;;  %v1775_v34 = vld [vmem:[%s4272_s0 + $0x128] sm:$0xff] }
 0x5b5   :  { %1337 = vmatpush.msrb.mxu2 %v3983_v48  ;;  %1357 = vmatpush.msrb.mxu3 %v3989_v32  ;;  %v1777_v32 = vld [vmem:[%s4272_s0 + $0x138] sm:$0xff] }
 0x611   :  { %v1081_v30 = vpop.f32.mrf.mxu0  ;;  %v1101_v29 = vpop.f32.mrf.mxu1 }
 0x612   :  { %v1144_v28 = vadd.f32 %v1774_v33, %v1081_v30  ;;  %v1145_v27 = vadd.f32 %v1775_v34, %v1101_v29 }
 0x614   :  { %v1148_v48 = vmul.f32 0.5, %v1144_v28  ;;  %v1152_v26 = vmul.f32 0.5, %v1145_v27 }
 0x616   :  { %1890 = vtanh.f32 %v1148_v48 }
 0x617   :  { %1892 = vtanh.f32 %v1152_v26  ;;  %v4602_v26 = vld [vmem:[#allocation10_spill] sm:$0xff] }
 0x618   :  { %v1121_v24 = vpop.f32.mrf.mxu2  ;;  %v1141_v23 = vpop.f32.mrf.mxu3 }
 0x619   :  { %v1146_v22 = vadd.f32 %v1776_v25, %v1121_v24  ;;  %v1147_v21 = vadd.f32 %v1777_v32, %v1141_v23  ;;  %v4601_v25 = vld [vmem:[#allocation9_spill] sm:$0xff]  ;;  %v4603_v32 = vld [vmem:[#allocation15_spill] sm:$0xff] }
 0x61b   :  { %1894 = vtanh.f32 %v1146_v22  ;;  %v1157_v20 = vmul.f32 0.5, %v1147_v21 }
 0x61c   :  { %v1891_v30 = vpop.eup %1890 }
 0x61d   :  { %v1893_v29 = vpop.eup %1892  ;;  %v1150_v28 = vmul.f32 0.5, %v1891_v30  ;;  %1896 = vtanh.f32 %v1157_v20  ;;  %v4600_v20 = vld [vmem:[#allocation8_spill] sm:$0xff] }
 0x61e   :  { %v1154_v27 = vmul.f32 0.5, %v1893_v29  ;;  %v4604_v30 = vld [vmem:[#allocation12_spill] sm:$0xff]  ;;  %v4605_v29 = vld [vmem:[#allocation13_spill] sm:$0xff] }
 0x61f   :  { %v1151_v33 = vadd.f32 0.5, %v1150_v28  ;;  %v4606_v28 = vld [vmem:[#allocation14_spill] sm:$0xff] }
 0x620   :  { %v1155_v34 = vadd.f32 0.5, %v1154_v27  ;;  %v4607_v27 = vld [vmem:[#allocation19_spill] sm:$0xff] }
 0x621   :  { %v1895_v48 = vpop.eup %1894 }
 0x622   :  { %v1161_v19 = vmul.f32 %v1155_v34, %v3605_v31  ;;  %v1162_v18 = vmul.f32 %v1895_v48, %v1151_v33  ;;  %v4596_v31 = vld [vmem:[#allocation5_spill] sm:$0xff]  ;;  %v4608_v33 = vld [vmem:[#allocation16_spill] sm:$0xff]  ;;  %v4610_v48 = vld [vmem:[#allocation18_spill] sm:$0xff] }
 0x623   :  { %v1897_v17 = vpop.eup %1896  ;;  %v4609_v34 = vld [vmem:[#allocation17_spill] sm:$0xff] }
 0x624   :  { %v4005_v16 = vadd.f32 %v1162_v18, %v1161_v19  ;;  %v1159_v24 = vmul.f32 0.5, %v1897_v17  ;;  %v4597_v17 = vld [vmem:[#allocation6_spill] sm:$0xff]  ;;  %v4598_v18 = vld [vmem:[#allocation7_spill] sm:$0xff] }
 0x625   :  { %v4599_v19 = vld [vmem:[#allocation11_spill] sm:$0xff] }
 0x626   :  { %1898 = vtanh.f32 %v4005_v16  ;;  %v1160_v23 = vadd.f32 0.5, %v1159_v24  ;;  %v4611_v24 = vld [vmem:[#allocation23_spill] sm:$0xff] }
 0x62c   :  { %v1899_v22 = vpop.eup %1898 }
 0x62d   :  { %v1165_v21 = vmul.f32 %v1899_v22, %v1160_v23  ;;  %v4612_v23 = vld [vmem:[#allocation20_spill] sm:$0xff]  ;;  %v4613_v22 = vld [vmem:[#allocation21_spill] sm:$0xff] }
 0x62f   :  { %1189 = vmatmul.f32.vlgmr.msra.gmra.mxu0 %v1165_v21  ;;  %1209 = vmatmul.f32.vlgmr.msra.gmra.mxu1 %v1165_v21 }
 0x630   :  { %1229 = vmatmul.f32.vlgmr.msra.gmra.mxu2 %v1165_v21  ;;  %1249 = vmatmul.f32.vlgmr.msra.gmra.mxu3 %v1165_v21  ;;  %v4614_v21 = vld [vmem:[#allocation22_spill] sm:$0xff] }
 0x631   :  { %1391 = vmatpush.msra.mxu0 %v3611_v36  ;;  %1411 = vmatpush.msra.mxu1 %v3617_v44 }
 0x632   :  { %1431 = vmatpush.msra.mxu2 %v3623_v46  ;;  %1451 = vmatpush.msra.mxu3 %v3629_v56 }
 0x633   :  { %1392 = vmatpush.msra.mxu0 %v3635_v47  ;;  %1412 = vmatpush.msra.mxu1 %v3641_v42 }
 0x634   :  { %1432 = vmatpush.msra.mxu2 %v3647_v38  ;;  %1452 = vmatpush.msra.mxu3 %v3653_v43 }
 0x635   :  { %1393 = vmatpush.msra.mxu0 %v3659_v37  ;;  %1413 = vmatpush.msra.mxu1 %v3665_v45 }
 0x636   :  { %1433 = vmatpush.msra.mxu2 %v3671_v35  ;;  %1453 = vmatpush.msra.mxu3 %v3677_v39 }
 0x637   :  { %1394 = vmatpush.msra.mxu0 %v3683_v40  ;;  %1414 = vmatpush.msra.mxu1 %v3689_v41 }
 0x638   :  { %1434 = vmatpush.msra.mxu2 %v3695_v51  ;;  %1454 = vmatpush.msra.mxu3 %v3701_v50 }
 0x639   :  { %1395 = vmatpush.msra.mxu0 %v3707_v49  ;;  %1415 = vmatpush.msra.mxu1 %v3713_v52 }
 0x63a   :  { %1435 = vmatpush.msra.mxu2 %v3719_v58  ;;  %1455 = vmatpush.msra.mxu3 %v3725_v53 }
 0x63b   :  { %1396 = vmatpush.msra.mxu0 %v3731_v63  ;;  %1416 = vmatpush.msra.mxu1 %v3737_v62 }
 0x63c   :  { %1436 = vmatpush.msra.mxu2 %v3743_v59  ;;  %1456 = vmatpush.msra.mxu3 %v3749_v57 }
 0x63d   :  { %1397 = vmatpush.msra.mxu0 %v3755_v54  ;;  %1417 = vmatpush.msra.mxu1 %v3761_v60 }
 0x63e   :  { %1437 = vmatpush.msra.mxu2 %v3767_v61  ;;  %1457 = vmatpush.msra.mxu3 %v3773_v55 }
 0x63f   :  { %1398 = vmatpush.msra.mxu0 %v3779_v0  ;;  %1418 = vmatpush.msra.mxu1 %v3785_v1 }
 0x640   :  { %1438 = vmatpush.msra.mxu2 %v3791_v2  ;;  %1458 = vmatpush.msra.mxu3 %v3797_v3 }
 0x641   :  { %1399 = vmatpush.msra.mxu0 %v3803_v4  ;;  %1419 = vmatpush.msra.mxu1 %v3809_v5 }
 0x642   :  { %1439 = vmatpush.msra.mxu2 %v3815_v6  ;;  %1459 = vmatpush.msra.mxu3 %v3821_v7 }
 0x643   :  { %1400 = vmatpush.msra.mxu0 %v3827_v8  ;;  %1420 = vmatpush.msra.mxu1 %v3833_v9 }
 0x644   :  { %1440 = vmatpush.msra.mxu2 %v3839_v10  ;;  %1460 = vmatpush.msra.mxu3 %v3845_v11 }
 0x645   :  { %1401 = vmatpush.msra.mxu0 %v3851_v12  ;;  %1421 = vmatpush.msra.mxu1 %v3857_v13 }
 0x646   :  { %1441 = vmatpush.msra.mxu2 %v3863_v14  ;;  %1461 = vmatpush.msra.mxu3 %v3869_v15 }
 0x647   :  { %1402 = vmatpush.msra.mxu0 %v4596_v31  ;;  %1422 = vmatpush.msra.mxu1 %v4597_v17 }
 0x648   :  { %1442 = vmatpush.msra.mxu2 %v4598_v18  ;;  %1462 = vmatpush.msra.mxu3 %v4599_v19 }
 0x649   :  { %1403 = vmatpush.msra.mxu0 %v4600_v20  ;;  %1423 = vmatpush.msra.mxu1 %v4601_v25 }
 0x64a   :  { %1443 = vmatpush.msra.mxu2 %v4602_v26  ;;  %1463 = vmatpush.msra.mxu3 %v4603_v32 }
 0x64b   :  { %1404 = vmatpush.msra.mxu0 %v4604_v30  ;;  %1424 = vmatpush.msra.mxu1 %v4605_v29  ;;  %v4615_v30 = vld [vmem:[#allocation24_spill] sm:$0xff] }
 0x64c   :  { %1444 = vmatpush.msra.mxu2 %v4606_v28  ;;  %1464 = vmatpush.msra.mxu3 %v4607_v27  ;;  %v1778_v27 = vld [vmem:[%s4272_s0 + $0x140] sm:$0xff] }
 0x64d   :  { %1405 = vmatpush.msra.mxu0 %v4608_v33  ;;  %1425 = vmatpush.msra.mxu1 %v4609_v34  ;;  %v1779_v34 = vld [vmem:[%s4272_s0 + $0x148] sm:$0xff] }
 0x64e   :  { %1445 = vmatpush.msra.mxu2 %v4610_v48  ;;  %1465 = vmatpush.msra.mxu3 %v4611_v24 }
 0x64f   :  { %1406 = vmatpush.msra.mxu0 %v4612_v23  ;;  %1426 = vmatpush.msra.mxu1 %v4613_v22 }
 0x650   :  { %1446 = vmatpush.msra.mxu2 %v4614_v21  ;;  %1466 = vmatpush.msra.mxu3 %v4615_v30  ;;  %v1780_v21 = vld [vmem:[%s4272_s0 + $0x150] sm:$0xff]  ;;  %v1781_v30 = vld [vmem:[%s4272_s0 + $0x158] sm:$0xff] }
 0x6ac   :  { %v1190_v33 = vpop.f32.mrf.mxu0  ;;  %v1210_v48 = vpop.f32.mrf.mxu1 }
 0x6ad   :  { %v1253_v28 = vadd.f32 %v1778_v27, %v1190_v33  ;;  %v1254_v24 = vadd.f32 %v1779_v34, %v1210_v48 }
 0x6af   :  { %v1257_v29 = vmul.f32 0.5, %v1253_v28  ;;  %v1261_v23 = vmul.f32 0.5, %v1254_v24 }
 0x6b1   :  { %1900 = vtanh.f32 %v1257_v29 }
 0x6b2   :  { %1902 = vtanh.f32 %v1261_v23 }
 0x6b3   :  { %v1230_v22 = vpop.f32.mrf.mxu2  ;;  %v1250_v32 = vpop.f32.mrf.mxu3 }
 0x6b4   :  { %v1255_v26 = vadd.f32 %v1780_v21, %v1230_v22  ;;  %v1256_v25 = vadd.f32 %v1781_v30, %v1250_v32  ;;  %v4621_v30 = vld [vmem:[#allocation9_spill] sm:$0xff]  ;;  %v4622_v22 = vld [vmem:[#allocation10_spill] sm:$0xff]  ;;  %v4623_v21 = vld [vmem:[#allocation15_spill] sm:$0xff] }
 0x6b6   :  { %1904 = vtanh.f32 %v1255_v26  ;;  %v1266_v20 = vmul.f32 0.5, %v1256_v25 }
 0x6b7   :  { %v1901_v27 = vpop.eup %1900 }
 0x6b8   :  { %v1903_v33 = vpop.eup %1902  ;;  %v1259_v28 = vmul.f32 0.5, %v1901_v27  ;;  %1906 = vtanh.f32 %v1266_v20  ;;  %v4620_v20 = vld [vmem:[#allocation8_spill] sm:$0xff] }
 0x6b9   :  { %v1263_v34 = vmul.f32 0.5, %v1903_v33  ;;  %v4624_v27 = vld [vmem:[#allocation12_spill] sm:$0xff]  ;;  %v4625_v33 = vld [vmem:[#allocation13_spill] sm:$0xff] }
 0x6ba   :  { %v1260_v29 = vadd.f32 0.5, %v1259_v28  ;;  %v4626_v28 = vld [vmem:[#allocation14_spill] sm:$0xff] }
 0x6bb   :  { %v1264_v48 = vadd.f32 0.5, %v1263_v34  ;;  %v4627_v34 = vld [vmem:[#allocation19_spill] sm:$0xff] }
 0x6bc   :  { %v1905_v24 = vpop.eup %1904 }
 0x6bd   :  { %v1270_v19 = vmul.f32 %v1264_v48, %v4005_v16  ;;  %v1271_v18 = vmul.f32 %v1905_v24, %v1260_v29  ;;  %v4616_v16 = vld [vmem:[#allocation5_spill] sm:$0xff]  ;;  %v4628_v29 = vld [vmem:[#allocation16_spill] sm:$0xff]  ;;  %v4630_v24 = vld [vmem:[#allocation18_spill] sm:$0xff] }
 0x6be   :  { %v1907_v17 = vpop.eup %1906  ;;  %v4629_v48 = vld [vmem:[#allocation17_spill] sm:$0xff] }
 0x6bf   :  { %v4085_v31 = vadd.f32 %v1271_v18, %v1270_v19  ;;  %v1268_v23 = vmul.f32 0.5, %v1907_v17  ;;  %v4617_v17 = vld [vmem:[#allocation6_spill] sm:$0xff]  ;;  %v4618_v18 = vld [vmem:[#allocation7_spill] sm:$0xff] }
 0x6c0   :  { %v4619_v19 = vld [vmem:[#allocation11_spill] sm:$0xff] }
 0x6c1   :  { %1908 = vtanh.f32 %v4085_v31  ;;  %v1269_v32 = vadd.f32 0.5, %v1268_v23  ;;  %v4631_v23 = vld [vmem:[#allocation23_spill] sm:$0xff] }
 0x6c7   :  { %v1909_v26 = vpop.eup %1908 }
 0x6c8   :  { %v1274_v25 = vmul.f32 %v1909_v26, %v1269_v32  ;;  %v4632_v32 = vld [vmem:[#allocation20_spill] sm:$0xff]  ;;  %v4633_v26 = vld [vmem:[#allocation21_spill] sm:$0xff] }
 0x6ca   :  { %1298 = vmatmul.f32.vlgmr.msrb.gmra.mxu0 %v1274_v25  ;;  %1318 = vmatmul.f32.vlgmr.msrb.gmra.mxu1 %v1274_v25 }
 0x6cb   :  { %1338 = vmatmul.f32.vlgmr.msrb.gmra.mxu2 %v1274_v25  ;;  %1358 = vmatmul.f32.vlgmr.msrb.gmra.mxu3 %v1274_v25  ;;  %v4634_v25 = vld [vmem:[#allocation22_spill] sm:$0xff] }
 0x6cc   :  { %1500 = vmatpush.msrb.mxu0 %v3611_v36  ;;  %1520 = vmatpush.msrb.mxu1 %v3617_v44 }
 0x6cd   :  { %1540 = vmatpush.msrb.mxu2 %v3623_v46  ;;  %1560 = vmatpush.msrb.mxu3 %v3629_v56 }
 0x6ce   :  { %1501 = vmatpush.msrb.mxu0 %v3635_v47  ;;  %1521 = vmatpush.msrb.mxu1 %v3641_v42 }
 0x6cf   :  { %1541 = vmatpush.msrb.mxu2 %v3647_v38  ;;  %1561 = vmatpush.msrb.mxu3 %v3653_v43 }
 0x6d0   :  { %1502 = vmatpush.msrb.mxu0 %v3659_v37  ;;  %1522 = vmatpush.msrb.mxu1 %v3665_v45 }
 0x6d1   :  { %1542 = vmatpush.msrb.mxu2 %v3671_v35  ;;  %1562 = vmatpush.msrb.mxu3 %v3677_v39 }
 0x6d2   :  { %1503 = vmatpush.msrb.mxu0 %v3683_v40  ;;  %1523 = vmatpush.msrb.mxu1 %v3689_v41 }
 0x6d3   :  { %1543 = vmatpush.msrb.mxu2 %v3695_v51  ;;  %1563 = vmatpush.msrb.mxu3 %v3701_v50 }
 0x6d4   :  { %1504 = vmatpush.msrb.mxu0 %v3707_v49  ;;  %1524 = vmatpush.msrb.mxu1 %v3713_v52 }
 0x6d5   :  { %1544 = vmatpush.msrb.mxu2 %v3719_v58  ;;  %1564 = vmatpush.msrb.mxu3 %v3725_v53 }
 0x6d6   :  { %1505 = vmatpush.msrb.mxu0 %v3731_v63  ;;  %1525 = vmatpush.msrb.mxu1 %v3737_v62 }
 0x6d7   :  { %1545 = vmatpush.msrb.mxu2 %v3743_v59  ;;  %1565 = vmatpush.msrb.mxu3 %v3749_v57 }
 0x6d8   :  { %1506 = vmatpush.msrb.mxu0 %v3755_v54  ;;  %1526 = vmatpush.msrb.mxu1 %v3761_v60 }
 0x6d9   :  { %1546 = vmatpush.msrb.mxu2 %v3767_v61  ;;  %1566 = vmatpush.msrb.mxu3 %v3773_v55 }
 0x6da   :  { %1507 = vmatpush.msrb.mxu0 %v3779_v0  ;;  %1527 = vmatpush.msrb.mxu1 %v3785_v1 }
 0x6db   :  { %1547 = vmatpush.msrb.mxu2 %v3791_v2  ;;  %1567 = vmatpush.msrb.mxu3 %v3797_v3 }
 0x6dc   :  { %1508 = vmatpush.msrb.mxu0 %v3803_v4  ;;  %1528 = vmatpush.msrb.mxu1 %v3809_v5 }
 0x6dd   :  { %1548 = vmatpush.msrb.mxu2 %v3815_v6  ;;  %1568 = vmatpush.msrb.mxu3 %v3821_v7 }
 0x6de   :  { %1509 = vmatpush.msrb.mxu0 %v3827_v8  ;;  %1529 = vmatpush.msrb.mxu1 %v3833_v9 }
 0x6df   :  { %1549 = vmatpush.msrb.mxu2 %v3839_v10  ;;  %1569 = vmatpush.msrb.mxu3 %v3845_v11 }
 0x6e0   :  { %1510 = vmatpush.msrb.mxu0 %v3851_v12  ;;  %1530 = vmatpush.msrb.mxu1 %v3857_v13 }
 0x6e1   :  { %1550 = vmatpush.msrb.mxu2 %v3863_v14  ;;  %1570 = vmatpush.msrb.mxu3 %v3869_v15 }
 0x6e2   :  { %1511 = vmatpush.msrb.mxu0 %v4616_v16  ;;  %1531 = vmatpush.msrb.mxu1 %v4617_v17 }
 0x6e3   :  { %1551 = vmatpush.msrb.mxu2 %v4618_v18  ;;  %1571 = vmatpush.msrb.mxu3 %v4619_v19 }
 0x6e4   :  { %1512 = vmatpush.msrb.mxu0 %v4620_v20  ;;  %1532 = vmatpush.msrb.mxu1 %v4621_v30 }
 0x6e5   :  { %1552 = vmatpush.msrb.mxu2 %v4622_v22  ;;  %1572 = vmatpush.msrb.mxu3 %v4623_v21 }
 0x6e6   :  { %1513 = vmatpush.msrb.mxu0 %v4624_v27  ;;  %1533 = vmatpush.msrb.mxu1 %v4625_v33  ;;  %v4635_v27 = vld [vmem:[#allocation24_spill] sm:$0xff] }
 0x6e7   :  { %1553 = vmatpush.msrb.mxu2 %v4626_v28  ;;  %1573 = vmatpush.msrb.mxu3 %v4627_v34  ;;  %v1782_v34 = vld [vmem:[%s4272_s0 + $0x160] sm:$0xff] }
 0x6e8   :  { %1514 = vmatpush.msrb.mxu0 %v4628_v29  ;;  %1534 = vmatpush.msrb.mxu1 %v4629_v48  ;;  %v1783_v48 = vld [vmem:[%s4272_s0 + $0x168] sm:$0xff] }
 0x6e9   :  { %1554 = vmatpush.msrb.mxu2 %v4630_v24  ;;  %1574 = vmatpush.msrb.mxu3 %v4631_v23 }
 0x6ea   :  { %1515 = vmatpush.msrb.mxu0 %v4632_v32  ;;  %1535 = vmatpush.msrb.mxu1 %v4633_v26 }
 0x6eb   :  { %1555 = vmatpush.msrb.mxu2 %v4634_v25  ;;  %1575 = vmatpush.msrb.mxu3 %v4635_v27  ;;  %v1784_v25 = vld [vmem:[%s4272_s0 + $0x170] sm:$0xff]  ;;  %v1785_v27 = vld [vmem:[%s4272_s0 + $0x178] sm:$0xff] }
 0x747   :  { %v1299_v29 = vpop.f32.mrf.mxu0  ;;  %v1319_v24 = vpop.f32.mrf.mxu1 }
 0x748   :  { %v1362_v28 = vadd.f32 %v1782_v34, %v1299_v29  ;;  %v1363_v23 = vadd.f32 %v1783_v48, %v1319_v24 }
 0x74a   :  { %v1366_v33 = vmul.f32 0.5, %v1362_v28  ;;  %v1370_v32 = vmul.f32 0.5, %v1363_v23 }
 0x74c   :  { %1910 = vtanh.f32 %v1366_v33 }
 0x74d   :  { %1912 = vtanh.f32 %v1370_v32 }
 0x74e   :  { %v1339_v26 = vpop.f32.mrf.mxu2  ;;  %v1359_v21 = vpop.f32.mrf.mxu3 }
 0x74f   :  { %v1364_v22 = vadd.f32 %v1784_v25, %v1339_v26  ;;  %v1365_v30 = vadd.f32 %v1785_v27, %v1359_v21  ;;  %v1790_v26 = vld [vmem:[%s4272_s0 + $0x1a0] sm:$0xff] }
 0x751   :  { %1914 = vtanh.f32 %v1364_v22  ;;  %v1375_v20 = vmul.f32 0.5, %v1365_v30 }
 0x752   :  { %v1911_v34 = vpop.eup %1910 }
 0x753   :  { %v1913_v29 = vpop.eup %1912  ;;  %v1368_v28 = vmul.f32 0.5, %v1911_v34  ;;  %1916 = vtanh.f32 %v1375_v20 }
 0x754   :  { %v1372_v48 = vmul.f32 0.5, %v1913_v29 }
 0x755   :  { %v1369_v33 = vadd.f32 0.5, %v1368_v28 }
 0x756   :  { %v1373_v24 = vadd.f32 0.5, %v1372_v48 }
 0x757   :  { %v1915_v23 = vpop.eup %1914 }
 0x758   :  { %v1379_v19 = vmul.f32 %v1373_v24, %v4085_v31  ;;  %v1380_v18 = vmul.f32 %v1915_v23, %v1369_v33  ;;  %v1792_v24 = vld [vmem:[%s4272_s0 + $0x1b0] sm:$0xff]  ;;  %v1793_v23 = vld [vmem:[%s4272_s0 + $0x1b8] sm:$0xff] }
 0x759   :  { %v1917_v17 = vpop.eup %1916 }
 0x75a   :  { %v4165_v16 = vadd.f32 %v1380_v18, %v1379_v19  ;;  %v1377_v32 = vmul.f32 0.5, %v1917_v17 }
 0x75c   :  { %1918 = vtanh.f32 %v4165_v16  ;;  %v1378_v21 = vadd.f32 0.5, %v1377_v32 }
 0x762   :  { %v1919_v22 = vpop.eup %1918 }
 0x763   :  { %v1383_v30 = vmul.f32 %v1919_v22, %v1378_v21 }
 0x765   :  { %1407 = vmatmul.f32.vlgmr.msra.gmra.mxu0 %v1383_v30  ;;  %1427 = vmatmul.f32.vlgmr.msra.gmra.mxu1 %v1383_v30 }
 0x766   :  { %1447 = vmatmul.f32.vlgmr.msra.gmra.mxu2 %v1383_v30  ;;  %1467 = vmatmul.f32.vlgmr.msra.gmra.mxu3 %v1383_v30 }
 0x767   :  { %1609 = vmatpush.msra.mxu0 %v3611_v36  ;;  %1629 = vmatpush.msra.mxu1 %v3617_v44  ;;  %v4636_v36 = vld [vmem:[#allocation5_spill] sm:$0xff]  ;;  %v4637_v44 = vld [vmem:[#allocation6_spill] sm:$0xff] }
 0x768   :  { %1649 = vmatpush.msra.mxu2 %v3623_v46  ;;  %1669 = vmatpush.msra.mxu3 %v3629_v56  ;;  %v4638_v46 = vld [vmem:[#allocation7_spill] sm:$0xff] }
 0x769   :  { %1610 = vmatpush.msra.mxu0 %v3635_v47  ;;  %1630 = vmatpush.msra.mxu1 %v3641_v42  ;;  %v4639_v56 = vld [vmem:[#allocation11_spill] sm:$0xff]  ;;  %v4640_v47 = vld [vmem:[#allocation8_spill] sm:$0xff]  ;;  %v4641_v42 = vld [vmem:[#allocation9_spill] sm:$0xff] }
 0x76a   :  { %1650 = vmatpush.msra.mxu2 %v3647_v38  ;;  %1670 = vmatpush.msra.mxu3 %v3653_v43  ;;  %v4642_v38 = vld [vmem:[#allocation10_spill] sm:$0xff]  ;;  %v4643_v43 = vld [vmem:[#allocation15_spill] sm:$0xff] }
 0x76b   :  { %1611 = vmatpush.msra.mxu0 %v3659_v37  ;;  %1631 = vmatpush.msra.mxu1 %v3665_v45  ;;  %v4644_v37 = vld [vmem:[#allocation12_spill] sm:$0xff]  ;;  %v4645_v45 = vld [vmem:[#allocation13_spill] sm:$0xff] }
 0x76c   :  { %1651 = vmatpush.msra.mxu2 %v3671_v35  ;;  %1671 = vmatpush.msra.mxu3 %v3677_v39  ;;  %v4646_v35 = vld [vmem:[#allocation14_spill] sm:$0xff]  ;;  %v4647_v39 = vld [vmem:[#allocation19_spill] sm:$0xff] }
 0x76d   :  { %1612 = vmatpush.msra.mxu0 %v3683_v40  ;;  %1632 = vmatpush.msra.mxu1 %v3689_v41  ;;  %v4648_v40 = vld [vmem:[#allocation16_spill] sm:$0xff]  ;;  %v4649_v41 = vld [vmem:[#allocation17_spill] sm:$0xff] }
 0x76e   :  { %1652 = vmatpush.msra.mxu2 %v3695_v51  ;;  %1672 = vmatpush.msra.mxu3 %v3701_v50  ;;  %v4650_v51 = vld [vmem:[#allocation18_spill] sm:$0xff]  ;;  %v4651_v50 = vld [vmem:[#allocation23_spill] sm:$0xff] }
 0x76f   :  { %1613 = vmatpush.msra.mxu0 %v3707_v49  ;;  %1633 = vmatpush.msra.mxu1 %v3713_v52  ;;  %v4652_v49 = vld [vmem:[#allocation20_spill] sm:$0xff]  ;;  %v4653_v52 = vld [vmem:[#allocation21_spill] sm:$0xff] }
 0x770   :  { %1653 = vmatpush.msra.mxu2 %v3719_v58  ;;  %1673 = vmatpush.msra.mxu3 %v3725_v53  ;;  %v4654_v58 = vld [vmem:[#allocation22_spill] sm:$0xff]  ;;  %v4655_v53 = vld [vmem:[#allocation24_spill] sm:$0xff] }
 0x771   :  { %1614 = vmatpush.msra.mxu0 %v3731_v63  ;;  %1634 = vmatpush.msra.mxu1 %v3737_v62  ;;  %v1786_v63 = vld [vmem:[%s4272_s0 + $0x180] sm:$0xff]  ;;  %v1787_v62 = vld [vmem:[%s4272_s0 + $0x188] sm:$0xff] }
 0x772   :  { %1654 = vmatpush.msra.mxu2 %v3743_v59  ;;  %1674 = vmatpush.msra.mxu3 %v3749_v57 }
 0x773   :  { %1615 = vmatpush.msra.mxu0 %v3755_v54  ;;  %1635 = vmatpush.msra.mxu1 %v3761_v60 }
 0x774   :  { %1655 = vmatpush.msra.mxu2 %v3767_v61  ;;  %1675 = vmatpush.msra.mxu3 %v3773_v55 }
 0x775   :  { %1616 = vmatpush.msra.mxu0 %v3779_v0  ;;  %1636 = vmatpush.msra.mxu1 %v3785_v1  ;;  %v1788_v0 = vld [vmem:[%s4272_s0 + $0x190] sm:$0xff]  ;;  %v1789_v1 = vld [vmem:[%s4272_s0 + $0x198] sm:$0xff] }
 0x776   :  { %1656 = vmatpush.msra.mxu2 %v3791_v2  ;;  %1676 = vmatpush.msra.mxu3 %v3797_v3 }
 0x777   :  { %1617 = vmatpush.msra.mxu0 %v3803_v4  ;;  %1637 = vmatpush.msra.mxu1 %v3809_v5 }
 0x778   :  { %1657 = vmatpush.msra.mxu2 %v3815_v6  ;;  %1677 = vmatpush.msra.mxu3 %v3821_v7 }
 0x779   :  { %1618 = vmatpush.msra.mxu0 %v3827_v8  ;;  %1638 = vmatpush.msra.mxu1 %v3833_v9 }
 0x77a   :  { %1658 = vmatpush.msra.mxu2 %v3839_v10  ;;  %1678 = vmatpush.msra.mxu3 %v3845_v11 }
 0x77b   :  { %1619 = vmatpush.msra.mxu0 %v3851_v12  ;;  %1639 = vmatpush.msra.mxu1 %v3857_v13 }
 0x77c   :  { %1659 = vmatpush.msra.mxu2 %v3863_v14  ;;  %1679 = vmatpush.msra.mxu3 %v3869_v15 }
 0x77d   :  { %1620 = vmatpush.msra.mxu0 %v4636_v36  ;;  %1640 = vmatpush.msra.mxu1 %v4637_v44 }
 0x77e   :  { %1660 = vmatpush.msra.mxu2 %v4638_v46  ;;  %1680 = vmatpush.msra.mxu3 %v4639_v56 }
 0x77f   :  { %1621 = vmatpush.msra.mxu0 %v4640_v47  ;;  %1641 = vmatpush.msra.mxu1 %v4641_v42 }
 0x780   :  { %1661 = vmatpush.msra.mxu2 %v4642_v38  ;;  %1681 = vmatpush.msra.mxu3 %v4643_v43 }
 0x781   :  { %1622 = vmatpush.msra.mxu0 %v4644_v37  ;;  %1642 = vmatpush.msra.mxu1 %v4645_v45 }
 0x782   :  { %1662 = vmatpush.msra.mxu2 %v4646_v35  ;;  %1682 = vmatpush.msra.mxu3 %v4647_v39 }
 0x783   :  { %1623 = vmatpush.msra.mxu0 %v4648_v40  ;;  %1643 = vmatpush.msra.mxu1 %v4649_v41 }
 0x784   :  { %1663 = vmatpush.msra.mxu2 %v4650_v51  ;;  %1683 = vmatpush.msra.mxu3 %v4651_v50 }
 0x785   :  { %1624 = vmatpush.msra.mxu0 %v4652_v49  ;;  %1644 = vmatpush.msra.mxu1 %v4653_v52  ;;  %v1794_v49 = vld [vmem:[%s4272_s0 + $0x1c0] sm:$0xff]  ;;  %v1795_v52 = vld [vmem:[%s4272_s0 + $0x1c8] sm:$0xff] }
 0x786   :  { %1664 = vmatpush.msra.mxu2 %v4654_v58  ;;  %1684 = vmatpush.msra.mxu3 %v4655_v53 }
 0x7e2   :  { %v1408_v59 = vpop.f32.mrf.mxu0  ;;  %v1428_v57 = vpop.f32.mrf.mxu1 }
 0x7e3   :  { %v1471_v54 = vadd.f32 %v1786_v63, %v1408_v59  ;;  %v1472_v60 = vadd.f32 %v1787_v62, %v1428_v57 }
 0x7e5   :  { %v1475_v61 = vmul.f32 0.5, %v1471_v54  ;;  %v1479_v55 = vmul.f32 0.5, %v1472_v60  ;;  %v1796_v54 = vld [vmem:[%s4272_s0 + $0x1d0] sm:$0xff]  ;;  %v1797_v60 = vld [vmem:[%s4272_s0 + $0x1d8] sm:$0xff] }
 0x7e7   :  { %1920 = vtanh.f32 %v1475_v61 }
 0x7e8   :  { %1922 = vtanh.f32 %v1479_v55 }
 0x7e9   :  { %v1448_v2 = vpop.f32.mrf.mxu2  ;;  %v1468_v3 = vpop.f32.mrf.mxu3 }
 0x7ea   :  { %v1473_v4 = vadd.f32 %v1788_v0, %v1448_v2  ;;  %v1474_v5 = vadd.f32 %v1789_v1, %v1468_v3 }
 0x7ec   :  { %1924 = vtanh.f32 %v1473_v4  ;;  %v1484_v6 = vmul.f32 0.5, %v1474_v5 }
 0x7ed   :  { %v1921_v7 = vpop.eup %1920 }
 0x7ee   :  { %v1923_v8 = vpop.eup %1922  ;;  %v1477_v9 = vmul.f32 0.5, %v1921_v7  ;;  %1926 = vtanh.f32 %v1484_v6 }
 0x7ef   :  { %v1481_v10 = vmul.f32 0.5, %v1923_v8 }
 0x7f0   :  { %v1478_v11 = vadd.f32 0.5, %v1477_v9 }
 0x7f1   :  { %v1482_v12 = vadd.f32 0.5, %v1481_v10 }
 0x7f2   :  { %v1925_v13 = vpop.eup %1924 }
 0x7f3   :  { %v1488_v14 = vmul.f32 %v1482_v12, %v4165_v16  ;;  %v1489_v15 = vmul.f32 %v1925_v13, %v1478_v11  ;;  %v1791_v16 = vld [vmem:[%s4272_s0 + $0x1a8] sm:$0xff]  ;;  %s2105_s0 = smov [#allocation2]  }
 0x7f4   :  { %v1927_v31 = vpop.eup %1926  ;;  %s1717_s7 = sshll.u32 %s2105_s0, 4  ;;  %s1718_s7 = int_to_ptr.vmem [resolvable:$true] %s1717_s7 }
 0x7f5   :  { %v1490_v17 = vadd.f32 %v1489_v15, %v1488_v14  ;;  %v1486_v18 = vmul.f32 0.5, %v1927_v31 }
 0x7f7   :  { %1928 = vtanh.f32 %v1490_v17  ;;  %v1487_v19 = vadd.f32 0.5, %v1486_v18 }
 0x7fd   :  { %v1929_v20 = vpop.eup %1928 }
 0x7fe   :  { %v1492_v27 = vmul.f32 %v1929_v20, %v1487_v19 }
 0x800   :  { %1516 = vmatmul.f32.vlgmr.msrb.gmra.mxu0 %v1492_v27  ;;  %1536 = vmatmul.f32.vlgmr.msrb.gmra.mxu1 %v1492_v27 }
 0x801   :  { %1556 = vmatmul.f32.vlgmr.msrb.gmra.mxu2 %v1492_v27  ;;  %1576 = vmatmul.f32.vlgmr.msrb.gmra.mxu3 %v1492_v27 }
 0x87d   :  { %v1517_v25 = vpop.f32.mrf.mxu0  ;;  %v1537_v34 = vpop.f32.mrf.mxu1 }
 0x87e   :  { %v1580_v29 = vadd.f32 %v1790_v26, %v1517_v25  ;;  %v1581_v28 = vadd.f32 %v1791_v16, %v1537_v34 }
 0x880   :  { %v1584_v48 = vmul.f32 0.5, %v1580_v29  ;;  %v1588_v33 = vmul.f32 0.5, %v1581_v28 }
 0x882   :  { %1930 = vtanh.f32 %v1584_v48 }
 0x883   :  { %1932 = vtanh.f32 %v1588_v33 }
 0x884   :  { %v1557_v32 = vpop.f32.mrf.mxu2  ;;  %v1577_v21 = vpop.f32.mrf.mxu3 }
 0x885   :  { %v1582_v22 = vadd.f32 %v1792_v24, %v1557_v32  ;;  %v1583_v30 = vadd.f32 %v1793_v23, %v1577_v21 }
 0x887   :  { %1934 = vtanh.f32 %v1582_v22  ;;  %v1593_v36 = vmul.f32 0.5, %v1583_v30 }
 0x888   :  { %v1931_v44 = vpop.eup %1930 }
 0x889   :  { %v1933_v46 = vpop.eup %1932  ;;  %v1586_v56 = vmul.f32 0.5, %v1931_v44  ;;  %1936 = vtanh.f32 %v1593_v36 }
 0x88a   :  { %v1590_v47 = vmul.f32 0.5, %v1933_v46 }
 0x88b   :  { %v1587_v42 = vadd.f32 0.5, %v1586_v56 }
 0x88c   :  { %v1591_v38 = vadd.f32 0.5, %v1590_v47 }
 0x88d   :  { %v1935_v43 = vpop.eup %1934 }
 0x88e   :  { %v1597_v37 = vmul.f32 %v1591_v38, %v1490_v17  ;;  %v1598_v45 = vmul.f32 %v1935_v43, %v1587_v42 }
 0x88f   :  { %v1937_v35 = vpop.eup %1936 }
 0x890   :  { %v1599_v39 = vadd.f32 %v1598_v45, %v1597_v37  ;;  %v1595_v40 = vmul.f32 0.5, %v1937_v35 }
 0x892   :  { %1938 = vtanh.f32 %v1599_v39  ;;  %v1596_v41 = vadd.f32 0.5, %v1595_v40 }
 0x898   :  { %v1939_v51 = vpop.eup %1938 }
 0x899   :  { %v1601_v50 = vmul.f32 %v1939_v51, %v1596_v41 }
 0x89b   :  { %1625 = vmatmul.f32.vlgmr.msra.gmra.mxu0 %v1601_v50  ;;  %1645 = vmatmul.f32.vlgmr.msra.gmra.mxu1 %v1601_v50 }
 0x89c   :  { %1665 = vmatmul.f32.vlgmr.msra.gmra.mxu2 %v1601_v50  ;;  %1685 = vmatmul.f32.vlgmr.msra.gmra.mxu3 %v1601_v50 }
 0x918   :  { %v1626_v58 = vpop.f32.mrf.mxu0  ;;  %v1646_v53 = vpop.f32.mrf.mxu1 }
 0x919   :  { %v1689_v63 = vadd.f32 %v1794_v49, %v1626_v58  ;;  %v1690_v62 = vadd.f32 %v1795_v52, %v1646_v53 }
 0x91b   :  { %v1693_v59 = vmul.f32 0.5, %v1689_v63  ;;  %v1697_v57 = vmul.f32 0.5, %v1690_v62 }
 0x91d   :  { %1940 = vtanh.f32 %v1693_v59 }
 0x91e   :  { %1942 = vtanh.f32 %v1697_v57 }
 0x91f   :  { %v1666_v61 = vpop.f32.mrf.mxu2  ;;  %v1686_v55 = vpop.f32.mrf.mxu3 }
 0x920   :  { %v1691_v0 = vadd.f32 %v1796_v54, %v1666_v61  ;;  %v1692_v1 = vadd.f32 %v1797_v60, %v1686_v55 }
 0x922   :  { %1944 = vtanh.f32 %v1691_v0  ;;  %v1702_v2 = vmul.f32 0.5, %v1692_v1 }
 0x923   :  { %v1941_v3 = vpop.eup %1940 }
 0x924   :  { %v1943_v4 = vpop.eup %1942  ;;  %v1695_v5 = vmul.f32 0.5, %v1941_v3  ;;  %1946 = vtanh.f32 %v1702_v2 }
 0x925   :  { %v1699_v6 = vmul.f32 0.5, %v1943_v4 }
 0x926   :  { %v1696_v7 = vadd.f32 0.5, %v1695_v5 }
 0x927   :  { %v1700_v8 = vadd.f32 0.5, %v1699_v6 }
 0x928   :  { %v1945_v9 = vpop.eup %1944 }
 0x929   :  { %v1706_v10 = vmul.f32 %v1700_v8, %v1599_v39  ;;  %v1707_v11 = vmul.f32 %v1945_v9, %v1696_v7 }
 0x92a   :  { %v1947_v12 = vpop.eup %1946 }
 0x92b   :  { %v1708_v13 = vadd.f32 %v1707_v11, %v1706_v10  ;;  %v1704_v14 = vmul.f32 0.5, %v1947_v12 }
 0x92d   :  { %1948 = vtanh.f32 %v1708_v13  ;;  %v1705_v15 = vadd.f32 0.5, %v1704_v14 }
 0x933   :  { %v1949_v31 = vpop.eup %1948 }
 0x934   :  { %v1710_v17 = vmul.f32 %v1949_v31, %v1705_v15 }
 0x936   :  { %1711 = vst [vmem:[#allocation2] sm:$0xff] %v1710_v17 }
 0x937   :  { %1722 = dma.vmem_to_hbm [thread:$0]  %s1718_s7, 128, %s1720_s10, [#allocation3]  }
 0x938   :  { %2102 = dma.done.wait [#allocation3], 128  }
 0x939   :  { %2103 = vsyncadd [#allocation3], 4294967168 }
 0x93a   :  { %1727 = vsyncpa [#allocation3], 1 }

</bundles_post_ra>
